<compile_context>
chip_gen: v5e
topology: v5e:2x2
jax: 0.10.0
libtpu: 0.0.40
codegen_flags: <defaults>
</compile_context>

<pallas_src>
import math
import functools

import numpy as np
import jax
import jax.numpy as jnp
from jax.experimental import pallas as pl
from jax.experimental.pallas import tpu as pltpu


def _rmsnorm(x_f32, w, eps):
    var = jnp.mean(x_f32 * x_f32, axis=-1, keepdims=True)
    return w * (x_f32 * jax.lax.rsqrt(var + eps))


def decoder_layer_kernel(x_ref,                     # (S, H)  full sequence of this batch element
                         cq_ref, sq_ref,            # (TQ, num_heads*D)  rotary for Q rows (scale folded)
                         ck_ref, sk_ref,            # (S,  num_kv_heads*D) rotary for K rows
                         pq_ref, pk_ref,            # half-swap permutation matrices
                         w_in_ref, w_post_ref,      # (1, H) f32 RMSNorm weights
                         wq_ref, bq_ref, wk_ref, bk_ref, wv_ref, bv_ref,   # bf16 W, f32 b
                         wo_ref, wg_ref, wu_ref, wd_ref,                   # bf16 W
                         o_ref,                     # (TQ, H) output block
                         *, num_heads, num_kv_heads, head_dim, block_q, eps):
    D = head_dim
    n_rep = num_heads // num_kv_heads
    H = x_ref.shape[-1]
    qi = pl.program_id(1)

    # ---- input RMSNorm over the full sequence (K/V need every position); bf16 feeds the MXU ----
    x_full = x_ref[...].astype(jnp.float32)                               # (S, H)
    xn_bf = _rmsnorm(x_full, w_in_ref[...], eps).astype(jnp.bfloat16)

    # ---- K / V projections over the full sequence (recomputed per q-block: S/TQ redundancy,
    #      cheap relative to attention+MLP and avoids an HBM round trip for K/V) ----
    k = jnp.dot(xn_bf, wk_ref[...], preferred_element_type=jnp.float32) + bk_ref[...]
    v = jnp.dot(xn_bf, wv_ref[...], preferred_element_type=jnp.float32) + bv_ref[...]

    # ---- rotary on K for all kv heads at once (half-swap == one small permutation matmul) ----
    k_rot = (k * ck_ref[...] +
             jnp.dot(k, pk_ref[...], preferred_element_type=jnp.float32) * sk_ref[...])
    k_rot = k_rot.astype(jnp.bfloat16)                                    # (S, num_kv_heads*D)
    v_bf = v.astype(jnp.bfloat16)

    # ---- Q projection + rotary for this query block only ----
    q_start = pl.multiple_of(qi * block_q, block_q)
    x_q = x_ref[pl.ds(q_start, block_q), :].astype(jnp.float32)           # (TQ, H) residual
    xnq_bf = _rmsnorm(x_q, w_in_ref[...], eps).astype(jnp.bfloat16)
    q = jnp.dot(xnq_bf, wq_ref[...], preferred_element_type=jnp.float32) + bq_ref[...]
    # 1/sqrt(D) is folded into cq/sq in the wrapper (rotary is linear in q).
    q_rot = (q * cq_ref[...] +
             jnp.dot(q, pq_ref[...], preferred_element_type=jnp.float32) * sq_ref[...])

    # ---- per-head attention; accumulate head outputs directly through o_proj (no concat) ----
    attn = jnp.zeros((block_q, H), jnp.float32)
    for h in range(num_heads):
        kv = h // n_rep                                                   # repeat_interleave GQA map
        q_h = q_rot[:, h * D:(h + 1) * D].astype(jnp.bfloat16)            # (TQ, D)
        k_h = k_rot[:, kv * D:(kv + 1) * D]                               # (S, D)
        v_h = v_bf[:, kv * D:(kv + 1) * D]                                # (S, D)
        s = jax.lax.dot_general(q_h, k_h, (((1,), (1,)), ((), ())),
                                preferred_element_type=jnp.float32)       # (TQ, S)
        e = jnp.exp(s - jnp.max(s, axis=-1, keepdims=True))
        l = jnp.sum(e, axis=-1, keepdims=True)
        o_h = jnp.dot(e.astype(jnp.bfloat16), v_h, preferred_element_type=jnp.float32)
        o_h = o_h * pl.reciprocal(l, approx=True)                         # deferred softmax norm
        attn = attn + jnp.dot(o_h.astype(jnp.bfloat16), wo_ref[h * D:(h + 1) * D, :],
                              preferred_element_type=jnp.float32)

    h1 = x_q + attn                                                       # residual (f32)

    # ---- post-attention RMSNorm + SwiGLU MLP ----
    hn_bf = _rmsnorm(h1, w_post_ref[...], eps).astype(jnp.bfloat16)
    g = jnp.dot(hn_bf, wg_ref[...], preferred_element_type=jnp.float32)
    u = jnp.dot(hn_bf, wu_ref[...], preferred_element_type=jnp.float32)
    act = (g * pl.reciprocal(1.0 + jnp.exp(-g), approx=True) * u).astype(jnp.bfloat16)  # SiLU * up
    mlp = jnp.dot(act, wd_ref[...], preferred_element_type=jnp.float32)

    o_ref[...] = (h1 + mlp).astype(o_ref.dtype)                           # residual (f32)


def _expand_rotary(cos, sin, n_heads, scale):
    """(S, D/2) cos/sin -> lane-dense (S, n_heads*D) with rotate-half sign and `scale` folded in."""
    cos_full = jnp.concatenate([cos, cos], axis=-1)                       # (S, D)
    sin_full = jnp.concatenate([-sin, sin], axis=-1)                      # (S, D)
    cos_t = (jnp.tile(cos_full, (1, n_heads)) * scale).astype(jnp.float32)
    sin_t = (jnp.tile(sin_full, (1, n_heads)) * scale).astype(jnp.float32)
    return cos_t, sin_t


def _half_swap_perm(n_heads, head_dim):
    """Permutation matrix P s.t. (x @ P)[:, h*D+t] = x[:, h*D + (t+D/2) % D] (per-head half swap)."""
    n = n_heads * head_dim
    idx = np.arange(n)
    src = (idx // head_dim) * head_dim + (idx % head_dim + head_dim // 2) % head_dim
    p = np.zeros((n, n), np.float32)
    p[src, idx] = 1.0
    return jnp.asarray(p)


def qwen2_decoder_layer(x, params, cos, sin, *, num_heads, num_kv_heads, eps, block_q=None):
    B, S, H = x.shape
    D = H // num_heads
    if block_q is None:
        block_q = min(S, 128)
    assert S % block_q == 0 and block_q % 8 == 0
    n_qblk = S // block_q
    scale = 1.0 / math.sqrt(D)

    cq, sq = _expand_rotary(cos, sin, num_heads, scale)                   # (S, num_heads*D)
    ck, sk = _expand_rotary(cos, sin, num_kv_heads, 1.0)                  # (S, num_kv_heads*D)
    pq = _half_swap_perm(num_heads, D)
    pk = _half_swap_perm(num_kv_heads, D)

    bf16, f32 = jnp.bfloat16, jnp.float32
    w_in, w_post = params["w_in"].astype(f32), params["w_post"].astype(f32)
    wq, bq = params["wq_t"].astype(bf16), params["bq"].astype(f32)
    wk, bk = params["wk_t"].astype(bf16), params["bk"].astype(f32)
    wv, bv = params["wv_t"].astype(bf16), params["bv"].astype(f32)
    wo = params["wo_t"].astype(bf16)
    wg, wu, wd = params["wg_t"].astype(bf16), params["wu_t"].astype(bf16), params["wd_t"].astype(bf16)

    kernel = functools.partial(decoder_layer_kernel, num_heads=num_heads,
                               num_kv_heads=num_kv_heads, head_dim=D,
                               block_q=block_q, eps=eps)

    def const_spec(a):   # fully-resident input, block index constant across the grid (no re-DMA)
        return pl.BlockSpec(a.shape, lambda b, qi, _nd=a.ndim: (0,) * _nd)

    consts = [pq, pk, w_in, w_post, wq, bq, wk, bk, wv, bv, wo, wg, wu, wd]

    in_specs = (
        [pl.BlockSpec((pl.Squeezed(), S, H), lambda b, qi: (b, 0, 0)),     # x: full sequence
         pl.BlockSpec((block_q, num_heads * D), lambda b, qi: (qi, 0)),    # cq (rows of this q block)
         pl.BlockSpec((block_q, num_heads * D), lambda b, qi: (qi, 0)),    # sq
         pl.BlockSpec((S, num_kv_heads * D), lambda b, qi: (0, 0)),        # ck (all rows)
         pl.BlockSpec((S, num_kv_heads * D), lambda b, qi: (0, 0))]        # sk
        + [const_spec(a) for a in consts])

    out_spec = pl.BlockSpec((pl.Squeezed(), block_q, H), lambda b, qi: (b, qi, 0))

    return pl.pallas_call(
        kernel,
        out_shape=jax.ShapeDtypeStruct((B, S, H), x.dtype),
        grid=(B, n_qblk),
        in_specs=in_specs,
        out_specs=out_spec,
        compiler_params=pltpu.CompilerParams(
            dimension_semantics=("parallel", "parallel"),
            # raise the scoped-VMEM default (16/32 MiB); stays <= physical on v5e/v6e/v7x.
            # For real Qwen2 sizes on v5e/v6e raise further (~100 MiB) and tile the MLP weights.
            vmem_limit_bytes=56 * 1024 * 1024),
    )(x, cq, sq, ck, sk, *consts)


def reference(x, params, cos, sin, num_heads, num_kv_heads, eps):
    """Pure-JAX f32 reference matching the PyTorch Qwen2DecoderLayer forward (attention_mask=None)."""
    B, S, H = x.shape
    D = H // num_heads

    def rms(v, w):
        vf = v.astype(jnp.float32)
        var = jnp.mean(vf * vf, axis=-1, keepdims=True)
        return w * (vf * jax.lax.rsqrt(var + eps))

    xn = rms(x, params["w_in"])
    q = xn @ params["wq_t"] + params["bq"]
    k = xn @ params["wk_t"] + params["bk"]
    v = xn @ params["wv_t"] + params["bv"]
    q = q.reshape(B, S, num_heads, D)
    k = k.reshape(B, S, num_kv_heads, D)
    v = v.reshape(B, S, num_kv_heads, D)

    def rot(t):
        d2 = D // 2
        t1, t2 = t[..., :d2], t[..., d2:]
        c = cos[None, :, None, :]
        s = sin[None, :, None, :]
        return jnp.concatenate([t1 * c - t2 * s, t1 * s + t2 * c], axis=-1)

    q, k = rot(q), rot(k)
    q = q.transpose(0, 2, 1, 3)
    k = k.transpose(0, 2, 1, 3)
    v = v.transpose(0, 2, 1, 3)
    n_rep = num_heads // num_kv_heads
    k = jnp.repeat(k, n_rep, axis=1)
    v = jnp.repeat(v, n_rep, axis=1)
    s = jnp.einsum("bhqd,bhkd->bhqk", q, k) / math.sqrt(D)
    p = jax.nn.softmax(s, axis=-1)
    o = jnp.einsum("bhqk,bhkd->bhqd", p, v)
    o = o.transpose(0, 2, 1, 3).reshape(B, S, H)
    attn = o @ params["wo_t"]
    h1 = x + attn
    hn = rms(h1, params["w_post"])
    g = hn @ params["wg_t"]
    u = hn @ params["wu_t"]
    mlp = (jax.nn.silu(g) * u) @ params["wd_t"]
    return h1 + mlp


if __name__ == "__main__":
    # Small synthetic config consistent with Qwen2Config structure.
    B, S = 2, 128
    hidden = 128
    num_heads = 4
    num_kv_heads = 2
    head_dim = hidden // num_heads          # 32
    intermediate = 256
    eps = 1e-6
    rope_theta = 10000.0

    key = jax.random.PRNGKey(0)
    ks = jax.random.split(key, 16)

    def w(k, shape, s=0.02):
        return s * jax.random.normal(k, shape, dtype=jnp.float32)

    params = {
        "w_in":   1.0 + w(ks[0], (1, hidden)),
        "w_post": 1.0 + w(ks[1], (1, hidden)),
        "wq_t": w(ks[2],  (hidden, num_heads * head_dim)),
        "bq":   w(ks[3],  (1, num_heads * head_dim)),
        "wk_t": w(ks[4],  (hidden, num_kv_heads * head_dim)),
        "bk":   w(ks[5],  (1, num_kv_heads * head_dim)),
        "wv_t": w(ks[6],  (hidden, num_kv_heads * head_dim)),
        "bv":   w(ks[7],  (1, num_kv_heads * head_dim)),
        "wo_t": w(ks[8],  (num_heads * head_dim, hidden)),
        "wg_t": w(ks[9],  (hidden, intermediate)),
        "wu_t": w(ks[10], (hidden, intermediate)),
        "wd_t": w(ks[11], (intermediate, hidden)),
    }
    x = jax.random.normal(ks[12], (B, S, hidden), dtype=jnp.float32)

    # freqs_cis equivalent: cos/sin of shape (S, head_dim//2).
    pos = jnp.arange(S, dtype=jnp.float32)
    inv_freq = 1.0 / (rope_theta ** (jnp.arange(0, head_dim, 2, dtype=jnp.float32) / head_dim))
    angles = pos[:, None] * inv_freq[None, :]
    cos = jnp.cos(angles)
    sin = jnp.sin(angles)

    out = qwen2_decoder_layer(x, params, cos, sin, num_heads=num_heads,
                              num_kv_heads=num_kv_heads, eps=eps, block_q=64)
    out = jax.block_until_ready(out)

    ref = reference(x, params, cos, sin, num_heads, num_kv_heads, eps)
    err = float(jnp.max(jnp.abs(out - ref)))
    # bf16 MXU operands (weights + activations) => loosened tolerance vs. the f32 reference.
    assert jnp.allclose(out, ref, atol=2e-2, rtol=2e-2), f"max abs err = {err}"
    print("KERNEL_OK")
</pallas_src>

<mosaic_0001>
module attributes {stable_mosaic.version = 11 : i64} {
  func.func @decoder_layer_kernel(%arg0: i32, %arg1: i32, %arg2: memref<1x128x128xf32, #tpu.memory_space<vmem>>, %arg3: memref<64x128xf32, #tpu.memory_space<vmem>>, %arg4: memref<64x128xf32, #tpu.memory_space<vmem>>, %arg5: memref<128x64xf32, #tpu.memory_space<vmem>>, %arg6: memref<128x64xf32, #tpu.memory_space<vmem>>, %arg7: memref<128x128xf32, #tpu.memory_space<vmem>>, %arg8: memref<64x64xf32, #tpu.memory_space<vmem>>, %arg9: memref<1x128xf32, #tpu.memory_space<vmem>>, %arg10: memref<1x128xf32, #tpu.memory_space<vmem>>, %arg11: memref<128x128xbf16, #tpu.memory_space<vmem>>, %arg12: memref<1x128xf32, #tpu.memory_space<vmem>>, %arg13: memref<128x64xbf16, #tpu.memory_space<vmem>>, %arg14: memref<1x64xf32, #tpu.memory_space<vmem>>, %arg15: memref<128x64xbf16, #tpu.memory_space<vmem>>, %arg16: memref<1x64xf32, #tpu.memory_space<vmem>>, %arg17: memref<128x128xbf16, #tpu.memory_space<vmem>>, %arg18: memref<128x256xbf16, #tpu.memory_space<vmem>>, %arg19: memref<128x256xbf16, #tpu.memory_space<vmem>>, %arg20: memref<256x128xbf16, #tpu.memory_space<vmem>>, %arg21: memref<1x64x128xf32, #tpu.memory_space<vmem>>) attributes {dimension_semantics = [#tpu.dimension_semantics<parallel>, #tpu.dimension_semantics<parallel>], iteration_bounds = array<i64: 2, 2>, scalar_prefetch = 0 : i64, scratch_operands = 0 : i64, tpu.core_type = #tpu.core_type<tc>, window_params = [{transform_indices = @transform_0, window_bounds = array<i64: 1, 128, 128>}, {transform_indices = @transform_1, window_bounds = array<i64: 64, 128>}, {transform_indices = @transform_2, window_bounds = array<i64: 64, 128>}, {pipeline_mode = #tpu.pipeline_mode<synchronous>, transform_indices = @transform_3, window_bounds = array<i64: 128, 64>}, {pipeline_mode = #tpu.pipeline_mode<synchronous>, transform_indices = @transform_4, window_bounds = array<i64: 128, 64>}, {pipeline_mode = #tpu.pipeline_mode<synchronous>, transform_indices = @transform_5, window_bounds = array<i64: 128, 128>}, {pipeline_mode = #tpu.pipeline_mode<synchronous>, transform_indices = @transform_6, window_bounds = array<i64: 64, 64>}, {pipeline_mode = #tpu.pipeline_mode<synchronous>, transform_indices = @transform_7, window_bounds = array<i64: 1, 128>}, {pipeline_mode = #tpu.pipeline_mode<synchronous>, transform_indices = @transform_8, window_bounds = array<i64: 1, 128>}, {pipeline_mode = #tpu.pipeline_mode<synchronous>, transform_indices = @transform_9, window_bounds = array<i64: 128, 128>}, {pipeline_mode = #tpu.pipeline_mode<synchronous>, transform_indices = @transform_10, window_bounds = array<i64: 1, 128>}, {pipeline_mode = #tpu.pipeline_mode<synchronous>, transform_indices = @transform_11, window_bounds = array<i64: 128, 64>}, {pipeline_mode = #tpu.pipeline_mode<synchronous>, transform_indices = @transform_12, window_bounds = array<i64: 1, 64>}, {pipeline_mode = #tpu.pipeline_mode<synchronous>, transform_indices = @transform_13, window_bounds = array<i64: 128, 64>}, {pipeline_mode = #tpu.pipeline_mode<synchronous>, transform_indices = @transform_14, window_bounds = array<i64: 1, 64>}, {pipeline_mode = #tpu.pipeline_mode<synchronous>, transform_indices = @transform_15, window_bounds = array<i64: 128, 128>}, {pipeline_mode = #tpu.pipeline_mode<synchronous>, transform_indices = @transform_16, window_bounds = array<i64: 128, 256>}, {pipeline_mode = #tpu.pipeline_mode<synchronous>, transform_indices = @transform_17, window_bounds = array<i64: 128, 256>}, {pipeline_mode = #tpu.pipeline_mode<synchronous>, transform_indices = @transform_18, window_bounds = array<i64: 256, 128>}, {transform_indices = @transform_19, window_bounds = array<i64: 1, 64, 128>}]} {
    %c0 = arith.constant 0 : index
    %c0_0 = arith.constant 0 : index
    %c0_1 = arith.constant 0 : index
    %0 = vector.load %arg2[%c0, %c0_0, %c0_1] : memref<1x128x128xf32, #tpu.memory_space<vmem>>, vector<1x128x128xf32>
    %1 = vector.shape_cast %0 : vector<1x128x128xf32> to vector<128x128xf32>
    %c0_2 = arith.constant 0 : index
    %c0_3 = arith.constant 0 : index
    %2 = vector.load %arg9[%c0_2, %c0_3] : memref<1x128xf32, #tpu.memory_space<vmem>>, vector<1x128xf32>
    %3 = arith.mulf %1, %1 : vector<128x128xf32>
    %cst = arith.constant dense<0.000000e+00> : vector<128xf32>
    %4 = vector.multi_reduction <add>, %3, %cst [1] : vector<128x128xf32> to vector<128xf32>
    %5 = vector.shape_cast %4 : vector<128xf32> to vector<128x1xf32>
    %cst_4 = arith.constant 1.280000e+02 : f32
    %6 = vector.broadcast %cst_4 : f32 to vector<128x1xf32>
    %7 = arith.divf %5, %6 : vector<128x1xf32>
    %cst_5 = arith.constant 9.99999997E-7 : f32
    %8 = vector.broadcast %cst_5 : f32 to vector<128x1xf32>
    %9 = arith.addf %7, %8 : vector<128x1xf32>
    %10 = math.rsqrt %9 : vector<128x1xf32>
    %11 = vector.broadcast %10 : vector<128x1xf32> to vector<128x128xf32>
    %12 = arith.mulf %1, %11 : vector<128x128xf32>
    %13 = vector.broadcast %2 : vector<1x128xf32> to vector<128x128xf32>
    %14 = arith.mulf %13, %12 : vector<128x128xf32>
    %15 = arith.truncf %14 : vector<128x128xf32> to vector<128x128xbf16>
    %c0_6 = arith.constant 0 : index
    %c0_7 = arith.constant 0 : index
    %16 = vector.load %arg13[%c0_6, %c0_7] : memref<128x64xbf16, #tpu.memory_space<vmem>>, vector<128x64xbf16>
    %cst_8 = arith.constant dense<0.000000e+00> : vector<128x64xf32>
    %17 = tpu.matmul %15, %16, %cst_8 {dimension_numbers = #tpu.dot_dimension_numbers<[1], [0], [0], [1], [0, 0, 1, 1], [], []>} : vector<128x128xbf16>, vector<128x64xbf16>, vector<128x64xf32> -> vector<128x64xf32>
    %c0_9 = arith.constant 0 : index
    %c0_10 = arith.constant 0 : index
    %18 = vector.load %arg14[%c0_9, %c0_10] : memref<1x64xf32, #tpu.memory_space<vmem>>, vector<1x64xf32>
    %19 = vector.broadcast %18 : vector<1x64xf32> to vector<128x64xf32>
    %20 = arith.addf %17, %19 : vector<128x64xf32>
    %c0_11 = arith.constant 0 : index
    %c0_12 = arith.constant 0 : index
    %21 = vector.load %arg15[%c0_11, %c0_12] : memref<128x64xbf16, #tpu.memory_space<vmem>>, vector<128x64xbf16>
    %cst_13 = arith.constant dense<0.000000e+00> : vector<128x64xf32>
    %22 = tpu.matmul %15, %21, %cst_13 {dimension_numbers = #tpu.dot_dimension_numbers<[1], [0], [0], [1], [0, 0, 1, 1], [], []>} : vector<128x128xbf16>, vector<128x64xbf16>, vector<128x64xf32> -> vector<128x64xf32>
    %c0_14 = arith.constant 0 : index
    %c0_15 = arith.constant 0 : index
    %23 = vector.load %arg16[%c0_14, %c0_15] : memref<1x64xf32, #tpu.memory_space<vmem>>, vector<1x64xf32>
    %24 = vector.broadcast %23 : vector<1x64xf32> to vector<128x64xf32>
    %25 = arith.addf %22, %24 : vector<128x64xf32>
    %c0_16 = arith.constant 0 : index
    %c0_17 = arith.constant 0 : index
    %26 = vector.load %arg5[%c0_16, %c0_17] : memref<128x64xf32, #tpu.memory_space<vmem>>, vector<128x64xf32>
    %27 = arith.mulf %20, %26 : vector<128x64xf32>
    %c0_18 = arith.constant 0 : index
    %c0_19 = arith.constant 0 : index
    %28 = vector.load %arg8[%c0_18, %c0_19] : memref<64x64xf32, #tpu.memory_space<vmem>>, vector<64x64xf32>
    %cst_20 = arith.constant dense<0.000000e+00> : vector<128x64xf32>
    %29 = tpu.matmul %20, %28, %cst_20 {dimension_numbers = #tpu.dot_dimension_numbers<[1], [0], [0], [1], [0, 0, 1, 1], [], []>} : vector<128x64xf32>, vector<64x64xf32>, vector<128x64xf32> -> vector<128x64xf32>
    %c0_21 = arith.constant 0 : index
    %c0_22 = arith.constant 0 : index
    %30 = vector.load %arg6[%c0_21, %c0_22] : memref<128x64xf32, #tpu.memory_space<vmem>>, vector<128x64xf32>
    %31 = arith.mulf %29, %30 : vector<128x64xf32>
    %32 = arith.addf %27, %31 : vector<128x64xf32>
    %33 = arith.truncf %32 : vector<128x64xf32> to vector<128x64xbf16>
    %34 = arith.truncf %25 : vector<128x64xf32> to vector<128x64xbf16>
    %c64_i32 = arith.constant 64 : i32
    %35 = arith.muli %arg1, %c64_i32 : i32
    %36 = tpu.assume_multiple %35, 64 : i32
    %c0_23 = arith.constant 0 : index
    %37 = arith.index_cast %36 : i32 to index
    %c0_24 = arith.constant 0 : index
    %38 = vector.load %arg2[%c0_23, %37, %c0_24] : memref<1x128x128xf32, #tpu.memory_space<vmem>>, vector<1x64x128xf32>
    %39 = vector.shape_cast %38 : vector<1x64x128xf32> to vector<64x128xf32>
    %c0_25 = arith.constant 0 : index
    %c0_26 = arith.constant 0 : index
    %40 = vector.load %arg9[%c0_25, %c0_26] : memref<1x128xf32, #tpu.memory_space<vmem>>, vector<1x128xf32>
    %41 = arith.mulf %39, %39 : vector<64x128xf32>
    %cst_27 = arith.constant dense<0.000000e+00> : vector<64xf32>
    %42 = vector.multi_reduction <add>, %41, %cst_27 [1] : vector<64x128xf32> to vector<64xf32>
    %43 = vector.shape_cast %42 : vector<64xf32> to vector<64x1xf32>
    %cst_28 = arith.constant 1.280000e+02 : f32
    %44 = vector.broadcast %cst_28 : f32 to vector<64x1xf32>
    %45 = arith.divf %43, %44 : vector<64x1xf32>
    %cst_29 = arith.constant 9.99999997E-7 : f32
    %46 = vector.broadcast %cst_29 : f32 to vector<64x1xf32>
    %47 = arith.addf %45, %46 : vector<64x1xf32>
    %48 = math.rsqrt %47 : vector<64x1xf32>
    %49 = vector.broadcast %48 : vector<64x1xf32> to vector<64x128xf32>
    %50 = arith.mulf %39, %49 : vector<64x128xf32>
    %51 = vector.broadcast %40 : vector<1x128xf32> to vector<64x128xf32>
    %52 = arith.mulf %51, %50 : vector<64x128xf32>
    %53 = arith.truncf %52 : vector<64x128xf32> to vector<64x128xbf16>
    %c0_30 = arith.constant 0 : index
    %c0_31 = arith.constant 0 : index
    %54 = vector.load %arg11[%c0_30, %c0_31] : memref<128x128xbf16, #tpu.memory_space<vmem>>, vector<128x128xbf16>
    %cst_32 = arith.constant dense<0.000000e+00> : vector<64x128xf32>
    %55 = tpu.matmul %53, %54, %cst_32 {dimension_numbers = #tpu.dot_dimension_numbers<[1], [0], [0], [1], [0, 0, 1, 1], [], []>} : vector<64x128xbf16>, vector<128x128xbf16>, vector<64x128xf32> -> vector<64x128xf32>
    %c0_33 = arith.constant 0 : index
    %c0_34 = arith.constant 0 : index
    %56 = vector.load %arg12[%c0_33, %c0_34] : memref<1x128xf32, #tpu.memory_space<vmem>>, vector<1x128xf32>
    %57 = vector.broadcast %56 : vector<1x128xf32> to vector<64x128xf32>
    %58 = arith.addf %55, %57 : vector<64x128xf32>
    %c0_35 = arith.constant 0 : index
    %c0_36 = arith.constant 0 : index
    %59 = vector.load %arg3[%c0_35, %c0_36] : memref<64x128xf32, #tpu.memory_space<vmem>>, vector<64x128xf32>
    %60 = arith.mulf %58, %59 : vector<64x128xf32>
    %c0_37 = arith.constant 0 : index
    %c0_38 = arith.constant 0 : index
    %61 = vector.load %arg7[%c0_37, %c0_38] : memref<128x128xf32, #tpu.memory_space<vmem>>, vector<128x128xf32>
    %cst_39 = arith.constant dense<0.000000e+00> : vector<64x128xf32>
    %62 = tpu.matmul %58, %61, %cst_39 {dimension_numbers = #tpu.dot_dimension_numbers<[1], [0], [0], [1], [0, 0, 1, 1], [], []>} : vector<64x128xf32>, vector<128x128xf32>, vector<64x128xf32> -> vector<64x128xf32>
    %c0_40 = arith.constant 0 : index
    %c0_41 = arith.constant 0 : index
    %63 = vector.load %arg4[%c0_40, %c0_41] : memref<64x128xf32, #tpu.memory_space<vmem>>, vector<64x128xf32>
    %64 = arith.mulf %62, %63 : vector<64x128xf32>
    %65 = arith.addf %60, %64 : vector<64x128xf32>
    %cst_42 = arith.constant 0.000000e+00 : f32
    %66 = vector.broadcast %cst_42 : f32 to vector<64x128xf32>
    %67 = vector.extract_strided_slice %65 {offsets = [0, 0], sizes = [64, 32], strides = [1, 1]} : vector<64x128xf32> to vector<64x32xf32>
    %68 = arith.truncf %67 : vector<64x32xf32> to vector<64x32xbf16>
    %69 = vector.extract_strided_slice %33 {offsets = [0, 0], sizes = [128, 32], strides = [1, 1]} : vector<128x64xbf16> to vector<128x32xbf16>
    %70 = vector.extract_strided_slice %34 {offsets = [0, 0], sizes = [128, 32], strides = [1, 1]} : vector<128x64xbf16> to vector<128x32xbf16>
    %cst_43 = arith.constant dense<0.000000e+00> : vector<64x128xf32>
    %71 = tpu.matmul %68, %69, %cst_43 {dimension_numbers = #tpu.dot_dimension_numbers<[1], [1], [0], [0], [0, 0, 1, 0], [], []>} : vector<64x32xbf16>, vector<128x32xbf16>, vector<64x128xf32> -> vector<64x128xf32>
    %cst_44 = arith.constant dense<0xFF800000> : vector<64xf32>
    %72 = vector.multi_reduction <maximumf>, %71, %cst_44 [1] : vector<64x128xf32> to vector<64xf32>
    %73 = vector.shape_cast %72 : vector<64xf32> to vector<64x1xf32>
    %74 = vector.broadcast %73 : vector<64x1xf32> to vector<64x128xf32>
    %75 = arith.subf %71, %74 : vector<64x128xf32>
    %76 = math.exp %75 : vector<64x128xf32>
    %cst_45 = arith.constant dense<0.000000e+00> : vector<64xf32>
    %77 = vector.multi_reduction <add>, %76, %cst_45 [1] : vector<64x128xf32> to vector<64xf32>
    %78 = vector.shape_cast %77 : vector<64xf32> to vector<64x1xf32>
    %79 = arith.truncf %76 : vector<64x128xf32> to vector<64x128xbf16>
    %cst_46 = arith.constant dense<0.000000e+00> : vector<64x32xf32>
    %80 = tpu.matmul %79, %70, %cst_46 {dimension_numbers = #tpu.dot_dimension_numbers<[1], [0], [0], [1], [0, 0, 1, 1], [], []>} : vector<64x128xbf16>, vector<128x32xbf16>, vector<64x32xf32> -> vector<64x32xf32>
    %81 = tpu.reciprocal %78 {approx = true} : vector<64x1xf32> -> vector<64x1xf32>
    %82 = vector.broadcast %81 : vector<64x1xf32> to vector<64x32xf32>
    %83 = arith.mulf %80, %82 : vector<64x32xf32>
    %84 = arith.truncf %83 : vector<64x32xf32> to vector<64x32xbf16>
    %c0_47 = arith.constant 0 : index
    %c0_48 = arith.constant 0 : index
    %85 = vector.load %arg17[%c0_47, %c0_48] : memref<128x128xbf16, #tpu.memory_space<vmem>>, vector<32x128xbf16>
    %cst_49 = arith.constant dense<0.000000e+00> : vector<64x128xf32>
    %86 = tpu.matmul %84, %85, %cst_49 {dimension_numbers = #tpu.dot_dimension_numbers<[1], [0], [0], [1], [0, 0, 1, 1], [], []>} : vector<64x32xbf16>, vector<32x128xbf16>, vector<64x128xf32> -> vector<64x128xf32>
    %87 = arith.addf %66, %86 : vector<64x128xf32>
    %88 = vector.extract_strided_slice %65 {offsets = [0, 32], sizes = [64, 32], strides = [1, 1]} : vector<64x128xf32> to vector<64x32xf32>
    %89 = arith.truncf %88 : vector<64x32xf32> to vector<64x32xbf16>
    %90 = vector.extract_strided_slice %33 {offsets = [0, 0], sizes = [128, 32], strides = [1, 1]} : vector<128x64xbf16> to vector<128x32xbf16>
    %91 = vector.extract_strided_slice %34 {offsets = [0, 0], sizes = [128, 32], strides = [1, 1]} : vector<128x64xbf16> to vector<128x32xbf16>
    %cst_50 = arith.constant dense<0.000000e+00> : vector<64x128xf32>
    %92 = tpu.matmul %89, %90, %cst_50 {dimension_numbers = #tpu.dot_dimension_numbers<[1], [1], [0], [0], [0, 0, 1, 0], [], []>} : vector<64x32xbf16>, vector<128x32xbf16>, vector<64x128xf32> -> vector<64x128xf32>
    %cst_51 = arith.constant dense<0xFF800000> : vector<64xf32>
    %93 = vector.multi_reduction <maximumf>, %92, %cst_51 [1] : vector<64x128xf32> to vector<64xf32>
    %94 = vector.shape_cast %93 : vector<64xf32> to vector<64x1xf32>
    %95 = vector.broadcast %94 : vector<64x1xf32> to vector<64x128xf32>
    %96 = arith.subf %92, %95 : vector<64x128xf32>
    %97 = math.exp %96 : vector<64x128xf32>
    %cst_52 = arith.constant dense<0.000000e+00> : vector<64xf32>
    %98 = vector.multi_reduction <add>, %97, %cst_52 [1] : vector<64x128xf32> to vector<64xf32>
    %99 = vector.shape_cast %98 : vector<64xf32> to vector<64x1xf32>
    %100 = arith.truncf %97 : vector<64x128xf32> to vector<64x128xbf16>
    %cst_53 = arith.constant dense<0.000000e+00> : vector<64x32xf32>
    %101 = tpu.matmul %100, %91, %cst_53 {dimension_numbers = #tpu.dot_dimension_numbers<[1], [0], [0], [1], [0, 0, 1, 1], [], []>} : vector<64x128xbf16>, vector<128x32xbf16>, vector<64x32xf32> -> vector<64x32xf32>
    %102 = tpu.reciprocal %99 {approx = true} : vector<64x1xf32> -> vector<64x1xf32>
    %103 = vector.broadcast %102 : vector<64x1xf32> to vector<64x32xf32>
    %104 = arith.mulf %101, %103 : vector<64x32xf32>
    %105 = arith.truncf %104 : vector<64x32xf32> to vector<64x32xbf16>
    %c32 = arith.constant 32 : index
    %c0_54 = arith.constant 0 : index
    %106 = vector.load %arg17[%c32, %c0_54] : memref<128x128xbf16, #tpu.memory_space<vmem>>, vector<32x128xbf16>
    %cst_55 = arith.constant dense<0.000000e+00> : vector<64x128xf32>
    %107 = tpu.matmul %105, %106, %cst_55 {dimension_numbers = #tpu.dot_dimension_numbers<[1], [0], [0], [1], [0, 0, 1, 1], [], []>} : vector<64x32xbf16>, vector<32x128xbf16>, vector<64x128xf32> -> vector<64x128xf32>
    %108 = arith.addf %87, %107 : vector<64x128xf32>
    %109 = vector.extract_strided_slice %65 {offsets = [0, 64], sizes = [64, 32], strides = [1, 1]} : vector<64x128xf32> to vector<64x32xf32>
    %110 = arith.truncf %109 : vector<64x32xf32> to vector<64x32xbf16>
    %111 = vector.extract_strided_slice %33 {offsets = [0, 32], sizes = [128, 32], strides = [1, 1]} : vector<128x64xbf16> to vector<128x32xbf16>
    %112 = vector.extract_strided_slice %34 {offsets = [0, 32], sizes = [128, 32], strides = [1, 1]} : vector<128x64xbf16> to vector<128x32xbf16>
    %cst_56 = arith.constant dense<0.000000e+00> : vector<64x128xf32>
    %113 = tpu.matmul %110, %111, %cst_56 {dimension_numbers = #tpu.dot_dimension_numbers<[1], [1], [0], [0], [0, 0, 1, 0], [], []>} : vector<64x32xbf16>, vector<128x32xbf16>, vector<64x128xf32> -> vector<64x128xf32>
    %cst_57 = arith.constant dense<0xFF800000> : vector<64xf32>
    %114 = vector.multi_reduction <maximumf>, %113, %cst_57 [1] : vector<64x128xf32> to vector<64xf32>
    %115 = vector.shape_cast %114 : vector<64xf32> to vector<64x1xf32>
    %116 = vector.broadcast %115 : vector<64x1xf32> to vector<64x128xf32>
    %117 = arith.subf %113, %116 : vector<64x128xf32>
    %118 = math.exp %117 : vector<64x128xf32>
    %cst_58 = arith.constant dense<0.000000e+00> : vector<64xf32>
    %119 = vector.multi_reduction <add>, %118, %cst_58 [1] : vector<64x128xf32> to vector<64xf32>
    %120 = vector.shape_cast %119 : vector<64xf32> to vector<64x1xf32>
    %121 = arith.truncf %118 : vector<64x128xf32> to vector<64x128xbf16>
    %cst_59 = arith.constant dense<0.000000e+00> : vector<64x32xf32>
    %122 = tpu.matmul %121, %112, %cst_59 {dimension_numbers = #tpu.dot_dimension_numbers<[1], [0], [0], [1], [0, 0, 1, 1], [], []>} : vector<64x128xbf16>, vector<128x32xbf16>, vector<64x32xf32> -> vector<64x32xf32>
    %123 = tpu.reciprocal %120 {approx = true} : vector<64x1xf32> -> vector<64x1xf32>
    %124 = vector.broadcast %123 : vector<64x1xf32> to vector<64x32xf32>
    %125 = arith.mulf %122, %124 : vector<64x32xf32>
    %126 = arith.truncf %125 : vector<64x32xf32> to vector<64x32xbf16>
    %c64 = arith.constant 64 : index
    %c0_60 = arith.constant 0 : index
    %127 = vector.load %arg17[%c64, %c0_60] : memref<128x128xbf16, #tpu.memory_space<vmem>>, vector<32x128xbf16>
    %cst_61 = arith.constant dense<0.000000e+00> : vector<64x128xf32>
    %128 = tpu.matmul %126, %127, %cst_61 {dimension_numbers = #tpu.dot_dimension_numbers<[1], [0], [0], [1], [0, 0, 1, 1], [], []>} : vector<64x32xbf16>, vector<32x128xbf16>, vector<64x128xf32> -> vector<64x128xf32>
    %129 = arith.addf %108, %128 : vector<64x128xf32>
    %130 = vector.extract_strided_slice %65 {offsets = [0, 96], sizes = [64, 32], strides = [1, 1]} : vector<64x128xf32> to vector<64x32xf32>
    %131 = arith.truncf %130 : vector<64x32xf32> to vector<64x32xbf16>
    %132 = vector.extract_strided_slice %33 {offsets = [0, 32], sizes = [128, 32], strides = [1, 1]} : vector<128x64xbf16> to vector<128x32xbf16>
    %133 = vector.extract_strided_slice %34 {offsets = [0, 32], sizes = [128, 32], strides = [1, 1]} : vector<128x64xbf16> to vector<128x32xbf16>
    %cst_62 = arith.constant dense<0.000000e+00> : vector<64x128xf32>
    %134 = tpu.matmul %131, %132, %cst_62 {dimension_numbers = #tpu.dot_dimension_numbers<[1], [1], [0], [0], [0, 0, 1, 0], [], []>} : vector<64x32xbf16>, vector<128x32xbf16>, vector<64x128xf32> -> vector<64x128xf32>
    %cst_63 = arith.constant dense<0xFF800000> : vector<64xf32>
    %135 = vector.multi_reduction <maximumf>, %134, %cst_63 [1] : vector<64x128xf32> to vector<64xf32>
    %136 = vector.shape_cast %135 : vector<64xf32> to vector<64x1xf32>
    %137 = vector.broadcast %136 : vector<64x1xf32> to vector<64x128xf32>
    %138 = arith.subf %134, %137 : vector<64x128xf32>
    %139 = math.exp %138 : vector<64x128xf32>
    %cst_64 = arith.constant dense<0.000000e+00> : vector<64xf32>
    %140 = vector.multi_reduction <add>, %139, %cst_64 [1] : vector<64x128xf32> to vector<64xf32>
    %141 = vector.shape_cast %140 : vector<64xf32> to vector<64x1xf32>
    %142 = arith.truncf %139 : vector<64x128xf32> to vector<64x128xbf16>
    %cst_65 = arith.constant dense<0.000000e+00> : vector<64x32xf32>
    %143 = tpu.matmul %142, %133, %cst_65 {dimension_numbers = #tpu.dot_dimension_numbers<[1], [0], [0], [1], [0, 0, 1, 1], [], []>} : vector<64x128xbf16>, vector<128x32xbf16>, vector<64x32xf32> -> vector<64x32xf32>
    %144 = tpu.reciprocal %141 {approx = true} : vector<64x1xf32> -> vector<64x1xf32>
    %145 = vector.broadcast %144 : vector<64x1xf32> to vector<64x32xf32>
    %146 = arith.mulf %143, %145 : vector<64x32xf32>
    %147 = arith.truncf %146 : vector<64x32xf32> to vector<64x32xbf16>
    %c96 = arith.constant 96 : index
    %c0_66 = arith.constant 0 : index
    %148 = vector.load %arg17[%c96, %c0_66] : memref<128x128xbf16, #tpu.memory_space<vmem>>, vector<32x128xbf16>
    %cst_67 = arith.constant dense<0.000000e+00> : vector<64x128xf32>
    %149 = tpu.matmul %147, %148, %cst_67 {dimension_numbers = #tpu.dot_dimension_numbers<[1], [0], [0], [1], [0, 0, 1, 1], [], []>} : vector<64x32xbf16>, vector<32x128xbf16>, vector<64x128xf32> -> vector<64x128xf32>
    %150 = arith.addf %129, %149 : vector<64x128xf32>
    %151 = arith.addf %39, %150 : vector<64x128xf32>
    %c0_68 = arith.constant 0 : index
    %c0_69 = arith.constant 0 : index
    %152 = vector.load %arg10[%c0_68, %c0_69] : memref<1x128xf32, #tpu.memory_space<vmem>>, vector<1x128xf32>
    %153 = arith.mulf %151, %151 : vector<64x128xf32>
    %cst_70 = arith.constant dense<0.000000e+00> : vector<64xf32>
    %154 = vector.multi_reduction <add>, %153, %cst_70 [1] : vector<64x128xf32> to vector<64xf32>
    %155 = vector.shape_cast %154 : vector<64xf32> to vector<64x1xf32>
    %cst_71 = arith.constant 1.280000e+02 : f32
    %156 = vector.broadcast %cst_71 : f32 to vector<64x1xf32>
    %157 = arith.divf %155, %156 : vector<64x1xf32>
    %cst_72 = arith.constant 9.99999997E-7 : f32
    %158 = vector.broadcast %cst_72 : f32 to vector<64x1xf32>
    %159 = arith.addf %157, %158 : vector<64x1xf32>
    %160 = math.rsqrt %159 : vector<64x1xf32>
    %161 = vector.broadcast %160 : vector<64x1xf32> to vector<64x128xf32>
    %162 = arith.mulf %151, %161 : vector<64x128xf32>
    %163 = vector.broadcast %152 : vector<1x128xf32> to vector<64x128xf32>
    %164 = arith.mulf %163, %162 : vector<64x128xf32>
    %165 = arith.truncf %164 : vector<64x128xf32> to vector<64x128xbf16>
    %c0_73 = arith.constant 0 : index
    %c0_74 = arith.constant 0 : index
    %166 = vector.load %arg18[%c0_73, %c0_74] : memref<128x256xbf16, #tpu.memory_space<vmem>>, vector<128x256xbf16>
    %cst_75 = arith.constant dense<0.000000e+00> : vector<64x256xf32>
    %167 = tpu.matmul %165, %166, %cst_75 {dimension_numbers = #tpu.dot_dimension_numbers<[1], [0], [0], [1], [0, 0, 1, 1], [], []>} : vector<64x128xbf16>, vector<128x256xbf16>, vector<64x256xf32> -> vector<64x256xf32>
    %c0_76 = arith.constant 0 : index
    %c0_77 = arith.constant 0 : index
    %168 = vector.load %arg19[%c0_76, %c0_77] : memref<128x256xbf16, #tpu.memory_space<vmem>>, vector<128x256xbf16>
    %cst_78 = arith.constant dense<0.000000e+00> : vector<64x256xf32>
    %169 = tpu.matmul %165, %168, %cst_78 {dimension_numbers = #tpu.dot_dimension_numbers<[1], [0], [0], [1], [0, 0, 1, 1], [], []>} : vector<64x128xbf16>, vector<128x256xbf16>, vector<64x256xf32> -> vector<64x256xf32>
    %cst_79 = arith.constant 0.000000e+00 : f32
    %170 = vector.broadcast %cst_79 : f32 to vector<64x256xf32>
    %171 = arith.subf %170, %167 : vector<64x256xf32>
    %172 = math.exp %171 : vector<64x256xf32>
    %cst_80 = arith.constant 1.000000e+00 : f32
    %173 = vector.broadcast %cst_80 : f32 to vector<64x256xf32>
    %174 = arith.addf %173, %172 : vector<64x256xf32>
    %175 = tpu.reciprocal %174 {approx = true} : vector<64x256xf32> -> vector<64x256xf32>
    %176 = arith.mulf %167, %175 : vector<64x256xf32>
    %177 = arith.mulf %176, %169 : vector<64x256xf32>
    %178 = arith.truncf %177 : vector<64x256xf32> to vector<64x256xbf16>
    %c0_81 = arith.constant 0 : index
    %c0_82 = arith.constant 0 : index
    %179 = vector.load %arg20[%c0_81, %c0_82] : memref<256x128xbf16, #tpu.memory_space<vmem>>, vector<256x128xbf16>
    %cst_83 = arith.constant dense<0.000000e+00> : vector<64x128xf32>
    %180 = tpu.matmul %178, %179, %cst_83 {dimension_numbers = #tpu.dot_dimension_numbers<[1], [0], [0], [1], [0, 0, 1, 1], [], []>} : vector<64x256xbf16>, vector<256x128xbf16>, vector<64x128xf32> -> vector<64x128xf32>
    %181 = arith.addf %151, %180 : vector<64x128xf32>
    %c0_84 = arith.constant 0 : index
    %c0_85 = arith.constant 0 : index
    %c0_86 = arith.constant 0 : index
    %182 = vector.load %arg21[%c0_84, %c0_85, %c0_86] : memref<1x64x128xf32, #tpu.memory_space<vmem>>, vector<1x64x128xf32>
    %183 = vector.shape_cast %182 : vector<1x64x128xf32> to vector<64x128xf32>
    %184 = vector.shape_cast %181 : vector<64x128xf32> to vector<1x64x128xf32>
    tpu.vector_store %arg21[%c0_84, %c0_85, %c0_86], %184 {strides = array<i32>} : memref<1x64x128xf32, #tpu.memory_space<vmem>>, vector<1x64x128xf32>,
    return
  }
  func.func @transform_0(%arg0: i32, %arg1: i32) -> (i32, i32, i32) {
    %c0_i32 = arith.constant 0 : i32
    %c0_i32_0 = arith.constant 0 : i32
    %c0_i32_1 = arith.constant 0 : i32
    return %arg0, %c0_i32, %c0_i32_0 : i32, i32, i32
  }
  func.func @transform_1(%arg0: i32, %arg1: i32) -> (i32, i32) {
    %c0_i32 = arith.constant 0 : i32
    %c0_i32_0 = arith.constant 0 : i32
    return %arg1, %c0_i32 : i32, i32
  }
  func.func @transform_2(%arg0: i32, %arg1: i32) -> (i32, i32) {
    %c0_i32 = arith.constant 0 : i32
    %c0_i32_0 = arith.constant 0 : i32
    return %arg1, %c0_i32 : i32, i32
  }
  func.func @transform_3(%arg0: i32, %arg1: i32) -> (i32, i32) {
    %c0_i32 = arith.constant 0 : i32
    %c0_i32_0 = arith.constant 0 : i32
    %c0_i32_1 = arith.constant 0 : i32
    return %c0_i32, %c0_i32_0 : i32, i32
  }
  func.func @transform_4(%arg0: i32, %arg1: i32) -> (i32, i32) {
    %c0_i32 = arith.constant 0 : i32
    %c0_i32_0 = arith.constant 0 : i32
    %c0_i32_1 = arith.constant 0 : i32
    return %c0_i32, %c0_i32_0 : i32, i32
  }
  func.func @transform_5(%arg0: i32, %arg1: i32) -> (i32, i32) {
    %c0_i32 = arith.constant 0 : i32
    %c0_i32_0 = arith.constant 0 : i32
    %c0_i32_1 = arith.constant 0 : i32
    return %c0_i32, %c0_i32_0 : i32, i32
  }
  func.func @transform_6(%arg0: i32, %arg1: i32) -> (i32, i32) {
    %c0_i32 = arith.constant 0 : i32
    %c0_i32_0 = arith.constant 0 : i32
    %c0_i32_1 = arith.constant 0 : i32
    return %c0_i32, %c0_i32_0 : i32, i32
  }
  func.func @transform_7(%arg0: i32, %arg1: i32) -> (i32, i32) {
    %c0_i32 = arith.constant 0 : i32
    %c0_i32_0 = arith.constant 0 : i32
    %c0_i32_1 = arith.constant 0 : i32
    return %c0_i32, %c0_i32_0 : i32, i32
  }
  func.func @transform_8(%arg0: i32, %arg1: i32) -> (i32, i32) {
    %c0_i32 = arith.constant 0 : i32
    %c0_i32_0 = arith.constant 0 : i32
    %c0_i32_1 = arith.constant 0 : i32
    return %c0_i32, %c0_i32_0 : i32, i32
  }
  func.func @transform_9(%arg0: i32, %arg1: i32) -> (i32, i32) {
    %c0_i32 = arith.constant 0 : i32
    %c0_i32_0 = arith.constant 0 : i32
    %c0_i32_1 = arith.constant 0 : i32
    return %c0_i32, %c0_i32_0 : i32, i32
  }
  func.func @transform_10(%arg0: i32, %arg1: i32) -> (i32, i32) {
    %c0_i32 = arith.constant 0 : i32
    %c0_i32_0 = arith.constant 0 : i32
    %c0_i32_1 = arith.constant 0 : i32
    return %c0_i32, %c0_i32_0 : i32, i32
  }
  func.func @transform_11(%arg0: i32, %arg1: i32) -> (i32, i32) {
    %c0_i32 = arith.constant 0 : i32
    %c0_i32_0 = arith.constant 0 : i32
    %c0_i32_1 = arith.constant 0 : i32
    return %c0_i32, %c0_i32_0 : i32, i32
  }
  func.func @transform_12(%arg0: i32, %arg1: i32) -> (i32, i32) {
    %c0_i32 = arith.constant 0 : i32
    %c0_i32_0 = arith.constant 0 : i32
    %c0_i32_1 = arith.constant 0 : i32
    return %c0_i32, %c0_i32_0 : i32, i32
  }
  func.func @transform_13(%arg0: i32, %arg1: i32) -> (i32, i32) {
    %c0_i32 = arith.constant 0 : i32
    %c0_i32_0 = arith.constant 0 : i32
    %c0_i32_1 = arith.constant 0 : i32
    return %c0_i32, %c0_i32_0 : i32, i32
  }
  func.func @transform_14(%arg0: i32, %arg1: i32) -> (i32, i32) {
    %c0_i32 = arith.constant 0 : i32
    %c0_i32_0 = arith.constant 0 : i32
    %c0_i32_1 = arith.constant 0 : i32
    return %c0_i32, %c0_i32_0 : i32, i32
  }
  func.func @transform_15(%arg0: i32, %arg1: i32) -> (i32, i32) {
    %c0_i32 = arith.constant 0 : i32
    %c0_i32_0 = arith.constant 0 : i32
    %c0_i32_1 = arith.constant 0 : i32
    return %c0_i32, %c0_i32_0 : i32, i32
  }
  func.func @transform_16(%arg0: i32, %arg1: i32) -> (i32, i32) {
    %c0_i32 = arith.constant 0 : i32
    %c0_i32_0 = arith.constant 0 : i32
    %c0_i32_1 = arith.constant 0 : i32
    return %c0_i32, %c0_i32_0 : i32, i32
  }
  func.func @transform_17(%arg0: i32, %arg1: i32) -> (i32, i32) {
    %c0_i32 = arith.constant 0 : i32
    %c0_i32_0 = arith.constant 0 : i32
    %c0_i32_1 = arith.constant 0 : i32
    return %c0_i32, %c0_i32_0 : i32, i32
  }
  func.func @transform_18(%arg0: i32, %arg1: i32) -> (i32, i32) {
    %c0_i32 = arith.constant 0 : i32
    %c0_i32_0 = arith.constant 0 : i32
    %c0_i32_1 = arith.constant 0 : i32
    return %c0_i32, %c0_i32_0 : i32, i32
  }
  func.func @transform_19(%arg0: i32, %arg1: i32) -> (i32, i32, i32) {
    %c0_i32 = arith.constant 0 : i32
    %c0_i32_0 = arith.constant 0 : i32
    return %arg0, %arg1, %c0_i32 : i32, i32, i32
  }
}

</mosaic_0001>

<bundles_post_ra>
// kernel: tpu_custom_call.1
= control target key start
LH: loop header
LB: loop body
LE: loop exit
PB: predicated region body
PF: predicated region fallthrough
CT: control target
= control target key end

     0   :  { %s7099_s0 = inlined_call_operand.vmem [shape: f32[2,128,128], index: 0, kind: input, shape index: {}]   ;;  %s7100_s1 = inlined_call_operand.hbm [shape: f32[128,128], index: 1, kind: input, shape index: {}]   ;;  %s7101_s2 = inlined_call_operand.hbm [shape: f32[128,128], index: 2, kind: input, shape index: {}]   ;;  %s7102_s3 = inlined_call_operand.vmem [shape: f32[128,64], index: 3, kind: input, shape index: {}]   ;;  %s7103_s4 = inlined_call_operand.vmem [shape: f32[128,64], index: 4, kind: input, shape index: {}]   ;;  %s7104_s5 = inlined_call_operand.hbm [shape: f32[128,128], index: 5, kind: input, shape index: {}]   ;;  %s7105_s6 = inlined_call_operand.vmem [shape: f32[64,64], index: 6, kind: input, shape index: {}]   ;;  %s7106_s7 = inlined_call_operand.vmem [shape: f32[1,128], index: 7, kind: input, shape index: {}]   ;;  %s7107_s8 = inlined_call_operand.vmem [shape: f32[1,128], index: 8, kind: input, shape index: {}]   ;;  %s7108_s9 = inlined_call_operand.vmem [shape: bf16[128,128], index: 9, kind: input, shape index: {}]   ;;  %s7109_s10 = inlined_call_operand.vmem [shape: f32[1,128], index: 10, kind: input, shape index: {}]   ;;  %s7110_s11 = inlined_call_operand.vmem [shape: bf16[128,64], index: 11, kind: input, shape index: {}]   ;;  %s7111_s12 = inlined_call_operand.vmem [shape: f32[1,64], index: 12, kind: input, shape index: {}]   ;;  %s7112_s13 = inlined_call_operand.vmem [shape: bf16[128,64], index: 13, kind: input, shape index: {}]   ;;  %s7113_s14 = inlined_call_operand.vmem [shape: f32[1,64], index: 14, kind: input, shape index: {}]   ;;  %s7114_s15 = inlined_call_operand.hbm [shape: bf16[128,128], index: 15, kind: input, shape index: {}]   ;;  %s7115_s16 = inlined_call_operand.hbm [shape: bf16[128,256], index: 16, kind: input, shape index: {}]   ;;  %s7116_s17 = inlined_call_operand.hbm [shape: bf16[128,256], index: 17, kind: input, shape index: {}]   ;;  %s7117_s18 = inlined_call_operand.hbm [shape: bf16[256,128], index: 18, kind: input, shape index: {}]   ;;  %s7118_s19 = inlined_call_operand.hbm [shape: f32[2,128,128], index: 19, kind: output, shape index: {}]  }
   0x1   :  { %7136 = sst [smem:[#allocation28_spill]] %s7099_s0 }
   0x2   :  { %7137 = sst [smem:[#allocation29_spill]] %s7100_s1 }
   0x3   :  { %7138 = sst [smem:[#allocation30_spill]] %s7101_s2 }
   0x4   :  { %7139 = sst [smem:[#allocation31_spill]] %s7102_s3 }
   0x5   :  { %7140 = sst [smem:[#allocation32_spill]] %s7103_s4 }
   0x6   :  { %7141 = sst [smem:[#allocation33_spill]] %s7104_s5 }
   0x7   :  { %7142 = sst [smem:[#allocation34_spill]] %s7105_s6 }
   0x8   :  { %7143 = sst [smem:[#allocation35_spill]] %s7106_s7 }
   0x9   :  { %7144 = sst [smem:[#allocation36_spill]] %s7107_s8 }
   0xa   :  { %7145 = sst [smem:[#allocation37_spill]] %s7108_s9 }
   0xb   :  { %7146 = sst [smem:[#allocation38_spill]] %s7109_s10 }
   0xc   :  { %7147 = sst [smem:[#allocation39_spill]] %s7110_s11 }
   0xd   :  { %7148 = sst [smem:[#allocation40_spill]] %s7111_s12 }
   0xe   :  { %7149 = sst [smem:[#allocation41_spill]] %s7112_s13 }
   0xf   :  { %7150 = sst [smem:[#allocation42_spill]] %s7113_s14 }
  0x10   :  { %7151 = sst [smem:[#allocation43_spill]] %s7114_s15 }
  0x11   :  { %7152 = sst [smem:[#allocation44_spill]] %s7115_s16 }
  0x12   :  { %7153 = sst [smem:[#allocation45_spill]] %s7116_s17 }
  0x13   :  { %7154 = sst [smem:[#allocation46_spill]] %s7117_s18 }
  0x14   :  { %7155 = sst [smem:[#allocation47_spill]] %s7118_s19 }
  0x15   :  { %24 = vsyncpa [#allocation3], 0 }
  0x16   :  { %26 = vsyncpa [#allocation3 + $0x1], 0 }
  0x17   :  { %27 = vsyncpa [#allocation6], 0 }
  0x18   :  { %29 = vsyncpa [#allocation6 + $0x1], 0 }
  0x19   :  { %30 = vsyncpa [#allocation9], 0 }
  0x1a   :  { %31 = vsyncpa [#allocation12], 0 }
  0x1b   :  { %32 = vsyncpa [#allocation4], 0 }
  0x1c   :  { %34 = vsyncpa [#allocation4 + $0x1], 0  ;;  %s5326_s0 = smov 0   ;;  %s5328_s30 = smov 0  }
  0x1d   :  { %s5330_s20 = smov 0   ;;  %s5332_s21 = smov 0  }
  0x1e   :  { %s5334_s1 = smov 0   ;;  %s5336_s22 = smov 0  }
  0x1f   :  { %s5338_s2 = smov 0   ;;  %s5340_s23 = smov 0  }
  0x20   :  { %s5342_s24 = smov 0   ;;  %s5344_s25 = smov 0  }
  0x21   :  { %s5346_s3 = smov 0  }
  0x22 LB: > { %7156 = sst [smem:[#allocation21_spill]] %s5189_s22  ;;  %s5382_s26 = sadd.s32 4294967295, %s5209_s3   ;;  %s5209_s3 = sphi %s5346_s3, %s40_s3   ;;  %s5205_s25 = sphi %s5344_s25, %s7232_s25   ;;  %s5201_s24 = sphi %s5342_s24, %s7231_s24   ;;  %s5197_s23 = sphi %s5340_s23, %s7230_s23   ;;  %s5193_s2 = sphi %s5338_s2, %s7229_s2   ;;  %s5189_s22 = sphi %s5336_s22, %s7228_s22   ;;  %s5185_s1 = sphi %s5334_s1, %s7237_s1   ;;  %s5181_s21 = sphi %s5332_s21, %s7236_s21   ;;  %s5177_s20 = sphi %s5330_s20, %s7235_s20   ;;  %s5173_s30 = sphi %s5328_s30, %s7234_s30   ;;  %s5169_s0 = sphi %s5326_s0, %s7233_s0  }
  0x23   : > { %7157 = sst [smem:[#allocation22_spill]] %s5193_s2  ;;  %p3930_p0 = scmp.ge.s32.totalorder %s5209_s3, 1 }
  0x24   : > { %7158 = sst [smem:[#allocation23_spill]] %s5201_s24  ;;  %p99_p1 = scmp.eq.s32.totalorder %s5382_s26, 0 }
  0x25   : > { %7159 = sst [smem:[#allocation24_spill]] %s5205_s25  ;;  %p486_p2 = scmp.eq.s32.totalorder %s5382_s26, 3 }
  0x26   : > { %p499_p3 = scmp.lt.s32.totalorder %s5209_s3, 5  ;;  %s7160_s5 = sld [smem:[#allocation33_spill]] }
  0x27   : > { %s5211_s8 = smov [#allocation7]   ;;  %s7163_s15 = sld [smem:[#allocation43_spill]] }
  0x28   : > { %p5391_p4 = pnand %p3930_p0, %p499_p3  ;;  %s518_s14 = sshll.u32 %s5211_s8, 4  ;;  %s519_s14 = int_to_ptr.vmem [resolvable:$true] %s518_s14 }
  0x29   : > { %s5212_s28 = smov [#allocation8]   ;;  %s7127_s6 = smov 128  }
  0x2a   : > { %p4448_p5 = pneg %p5391_p4  ;;  %s7129_s8 = smov 8  }
  0x2b   : > { %s7164_s17 = sld [smem:[#allocation45_spill]]  ;;  %s5215_s10 = smov 64  }
  0x2c   : > { %s516_s29 = sshll.u32 %s7160_s5, 4  ;;  %p5399_p6 = pnand %p4448_p5, %p99_p1  ;;  %s517_s29 = int_to_ptr.hbm [resolvable:$true] %s516_s29 }
  0x2d   : > { %s557_s27 = sshll.u32 %s7163_s15, 4  ;;  %s559_s5 = sshll.u32 %s5212_s28, 4  ;;  %s558_s27 = int_to_ptr.hbm [resolvable:$true] %s557_s27  ;;  %s560_s5 = int_to_ptr.vmem [resolvable:$true] %s559_s5 }
  0x2e   : > { %4451 = dma.hbm_to_vmem [thread:$0]  (!%p5399_p6), %s517_s29, 2048, %s519_s14, [#allocation6], %s7127_s6, %s7127_s6, %s7129_s8  }
  0x2f   : > { %s5216_s12 = smov 4   ;;  %s5217_s28 = smov [#allocation11]  }
  0x30   : > { %4454 = dma.hbm_to_vmem [thread:$0]  (!%p5399_p6), %s558_s27, 1024, %s560_s5, [#allocation9], %s5215_s10, %s5215_s10, %s5216_s12  }
  0x31   : > { %s585_s9 = sshll.u32 %s7164_s17, 4  ;;  %s587_s15 = sshll.u32 %s5217_s28, 4  ;;  %s586_s9 = int_to_ptr.hbm [resolvable:$true] %s585_s9  ;;  %s588_s15 = int_to_ptr.vmem [resolvable:$true] %s587_s15 }
  0x32   : > { %s7165_s16 = sld [smem:[#allocation44_spill]]  ;;  %s5218_s29 = smov [#allocation10]  }
  0x33   : > { %4460 = dma.hbm_to_vmem [thread:$0]  (!%p5399_p6), %s586_s9, 2048, %s588_s15, [#allocation12], %s7127_s6, %s7127_s6, %s7129_s8  }
  0x34   : > { %s7166_s18 = sld [smem:[#allocation46_spill]]  ;;  %s573_s11 = sshll.u32 %s5218_s29, 4  ;;  %s574_s11 = int_to_ptr.vmem [resolvable:$true] %s573_s11 }
  0x35   : > { %s5219_s2 = smov [#allocation13]   ;;  %s3929_s15 = sadd.s32 4294967294, %s5209_s3  }
  0x36   : > { %s601_s9 = sshll.u32 %s5219_s2, 4  ;;  %s49_s27 = sadd.s32 1, %s5201_s24  ;;  %s602_s9 = int_to_ptr.vmem [resolvable:$true] %s601_s9 }
  0x37   : > { %p50_p7 = scmp.ge.s32.totalorder %s49_s27, 2  ;;  %s52_s28 = sadd.s32 1, %s5205_s25 }
  0x38   : > { %s571_s14 = sshll.u32 %s7165_s16, 4  ;;  %s85_s5 = sadd.s32 1, %s5189_s22  ;;  %s572_s14 = int_to_ptr.hbm [resolvable:$true] %s571_s14 }
  0x39   : > { %4457 = dma.hbm_to_vmem [thread:$0]  (!%p5399_p6), %s572_s14, 2048, %s574_s11, [#allocation9], %s7127_s6, %s7127_s6, %s7129_s8  }
  0x3a   : > { %s599_s13 = sshll.u32 %s7166_s18, 4  ;;  %p92_p8 = scmp.ne.s32.totalorder %s5189_s22, %s5185_s1  ;;  %s600_s13 = int_to_ptr.hbm [resolvable:$true] %s599_s13 }
  0x3b   : > { %4463 = dma.hbm_to_vmem [thread:$0]  (!%p5399_p6), %s600_s13, 2048, %s602_s9, [#allocation12], %s5215_s10, %s5215_s10, %s5216_s12  }
  0x3c   : > { %s7239_s27 = smov (%p50_p7, %s49_s27), 0  ;;  %s7241_s28 = smov (!%p50_p7, %s52_s28), %s5205_s25 }
  0x3d   : > { %7167 = sst [smem:[#allocation25_spill]] %s7239_s27  ;;  %s82_s4 = ssub.s32 %s5201_s24, %s7239_s27 }
  0x3e   : > { %p93_p9 = scmp.eq.s32.totalorder %s5209_s3, 0  ;;  %p54_p10 = scmp.ge.s32.totalorder %s7241_s28, 2 }
  0x3f   : > { %p83_p11 = scmp.eq.s32.totalorder %s82_s4, 0  ;;  %p98_p13 = scmp.ne.s32.totalorder %s5185_s1, %s5181_s21 }
  0x40   : > { %p5446_p12 = por %p93_p9, %p92_p8  ;;  %s7243_s28 = smov (%p54_p10, %s7241_s28), 0 }
  0x41   : > { %7169 = sst [smem:[#allocation26_spill]] %s7243_s28  ;;  %p5459_p0 = por %p99_p1, %p98_p13 }
  0x42   : > { %s5455_s12 = scalar_select %p83_p11, %s5189_s22, %s85_s5  }
  0x43   : > { %s470_s7 = ssub.s32 %s5205_s25, %s7243_s28  ;;  %s475_s29 = sadd.s32 1, %s5177_s20 }
  0x44   : > { %7170 = sst [smem:[#allocation27_spill]] %s5455_s12  ;;  %s472_s13 = sor.u32 %s470_s7, %s82_s4 }
  0x45   : > { %p473_p3 = scmp.eq.s32.totalorder %s472_s13, 0  ;;  %p485_p5 = scmp.ne.s32.totalorder %s5177_s20, %s5173_s30 }
  0x46   : > { %p491_p6 = scmp.ne.s32.totalorder %s5173_s30, %s5169_s0  ;;  %p492_p7 = scmp.eq.s32.totalorder %s3929_s15, 3 }
  0x47   : > { %s5471_s21 = scalar_select %p473_p3, %s5177_s20, %s475_s29  }
  0x48   : > { %p5475_p8 = por %p486_p2, %p485_p5  ;;  %p5479_p9 = por %p492_p7, %p491_p6 }
  0x49   : > { %p4480_p10 = scmp.lt.s32.totalorder %s5209_s3, 4  ;;  %s623_s9 = sand.u32 1, %s5189_s22  }
  0x4a   : > { %s3937_s5 = sshll.u32 %s623_s9, 6  ;;  %s4329_s4 = sshll.u32 %s5201_s24, 6 }
  0x4b   : > { %s7174_s6 = sld [smem:[#allocation29_spill]]  ;;  %s627_s29 = scalar_lea.vmem [#allocation2], %s3937_s5 }
  0x4c   : > { %s635_s8 = sshll.u32 %s627_s29, 4  ;;  %p4465_p2 = pnand %p4480_p10, %p5446_p12  ;;  %s636_s8 = int_to_ptr.vmem [resolvable:$true] %s635_s8 }
  0x4d   : > { %s7175_s28 = sld [smem:[#allocation30_spill]]  ;;  %s624_s12 = scalar_lea.sflag [#allocation3], %s623_s9 }
  0x4e   : > { %s7176_s22 = smov 8   ;;  %s7177_s24 = smov 128  }
  0x4f   : > { %s649_s7 = scalar_lea.vmem [#allocation5], %s3937_s5  ;;  %s645_s13 = sand.u32 1, %s5209_s3  }
  0x50   : > { %s671_s17 = sand.u32 (!%p5391_p4), 1, %s5185_s1  }
  0x51   : > { %s632_s15 = scalar_lea.hbm %s7174_s6, %s4329_s4  ;;  %s657_s6 = sshll.u32 %s649_s7, 4  ;;  %s658_s6 = int_to_ptr.vmem [resolvable:$true] %s657_s6 }
  0x52   : > { %s633_s16 = sshll.u32 %s632_s15, 4  ;;  %s646_s15 = scalar_lea.sflag [#allocation6], %s645_s13  ;;  %s634_s16 = int_to_ptr.hbm [resolvable:$true] %s633_s16 }
  0x53   : > { %s654_s27 = scalar_lea.hbm %s7175_s28, %s4329_s4  ;;  %669 = sbr.rel (%p5391_p4) target bundleno = 2316 (0x90c), region = 96 }
  0x54   : > { %s655_s25 = sshll.u32 %s654_s27, 4  ;;  %s3944_s18 = sshll.u32 (!%p5391_p4), %s671_s17, 6  ;;  %s656_s25 = int_to_ptr.hbm [resolvable:$true] %s655_s25 }
  0x55   : > { %4467 = dma.hbm_to_vmem [thread:$0]  (!%p4465_p2), %s634_s16, 1024, %s636_s8, %s624_s12, %s7177_s24, %s7177_s24, %s7176_s22  }
  0x56   : > { %4470 = dma.hbm_to_vmem [thread:$0]  (!%p4465_p2), %s656_s25, 1024, %s658_s6, %s646_s15, %s7177_s24, %s7177_s24, %s7176_s22  }
  0x57   : > { %s672_s27 = scalar_lea.sflag (!%p5391_p4), [#allocation3], %s671_s17  ;;  %s5504_s28 = scalar_lea.vmem (!%p5391_p4), [#allocation2], %s3944_s18 }
  0x58   : > { %5144 = dma.done.wait (%p5459_p0), %s672_s27, 1024  }
  0x59   : > { %5146 = vsyncadd (%p5459_p0), %s672_s27, 4294966272  ;;  %s681_s16 = sand.u32 1, %s5382_s26   ;;  %s5511_s22 = scalar_lea.vmem [#allocation5], %s3944_s18 }
  0x5a   : > { %s682_s8 = scalar_lea.sflag [#allocation6], %s681_s16 }
  0x5b   : > { %5148 = dma.done.wait (%p5459_p0), %s682_s8, 1024  }
  0x5c   : > { %5150 = vsyncadd (%p5459_p0), %s682_s8, 4294966272 }
  0x5d   : > { %5152 = dma.done.wait (%p99_p1), [#allocation6], 2048  }
  0x5e   : > { %5154 = vsyncadd (%p99_p1), [#allocation6], 4294965248 }
  0x5f   : > { %5156 = dma.done.wait (%p99_p1), [#allocation9], 3072  }
  0x60   : > { %5158 = vsyncadd (%p99_p1), [#allocation9], 4294964224 }
  0x61   : > { %5160 = dma.done.wait (%p99_p1), [#allocation12], 4096  }
  0x62   : > { %5162 = vsyncadd (%p99_p1), [#allocation12], 4294963200  ;;  %p776_p4 = scmp.lt.s32.totalorder %s5197_s23, 1  ;;  %s7178_s12 = sld [smem:[#allocation28_spill]]  ;;  %v5220_v44 = vmov 128.0  }
  0x63   : > { %s7179_s26 = sld [smem:[#allocation22_spill]]  ;;  %4595 = vrcp.f32 %v5220_v44  ;;  %s5221_s27 = smov 96  }
  0x64   : > { %s777_s19 = scalar_select %p776_p4, %s5197_s23, 1 }
  0x65   : > { %s7180_s7 = sld [smem:[#allocation39_spill]]  ;;  %s5222_s8 = smov 64  }
  0x66   : > { %s4331_s24 = sshll.u32 %s777_s19, 7  ;;  %s7181_s29 = sld [smem:[#allocation37_spill]] }
  0x67   : > { %s7184_s16 = sld [smem:[#allocation35_spill]]  ;;  %s5223_s19 = smov 32  }
  0x68   : > { %s5534_s14 = scalar_lea.vmem %s7178_s12, %s4331_s24  ;;  %s7185_s24 = sld [smem:[#allocation41_spill]] }
  0x69   : > { %v5537_v0 = vld [vmem:[%s5534_s14 + $0x10] sm:$0xff]  ;;  %v5540_v1 = vld [vmem:[%s5534_s14] sm:$0xff]  ;;  %v5552_v6 = vld [vmem:[%s5534_s14 + $0x18] sm:$0xff]  ;;  %s4034_s9 = sshll.u32 %s7179_s26, 6  ;;  %v4596_v47 = vpop.eup %4595  ;;  %s7222_s6 = sld [smem:[#allocation31_spill]] }
  0x6a   : > { %v804_v2 = vmul.f32 %v5537_v0, %v5537_v0  ;;  %v802_v3 = vmul.f32 %v5540_v1, %v5540_v1  ;;  %v5547_v4 = vld [vmem:[%s5534_s14 + $0x20] sm:$0xff]  ;;  %v5555_v7 = vld [vmem:[%s5534_s14 + $0x8] sm:$0xff]  ;;  %v805_v9 = vmul.f32 %v5552_v6, %v5552_v6  ;;  %v5567_v12 = vld [vmem:[%s5534_s14 + $0x38] sm:$0xff]  ;;  %s5613_s5 = scalar_lea.vmem %s5534_s14, %s4034_s9  ;;  %v851_v49 = vmul.f32 128.0, %v4596_v47  ;;  %s7223_s17 = sld [smem:[#allocation32_spill]] }
  0x6b   : > { %v806_v5 = vmul.f32 %v5547_v4, %v5547_v4  ;;  %v5558_v8 = vld [vmem:[%s5534_s14 + $0x28] sm:$0xff]  ;;  %v803_v10 = vmul.f32 %v5555_v7, %v5555_v7  ;;  %v5570_v13 = vld [vmem:[%s5534_s14 + $0x30] sm:$0xff]  ;;  %v5573_v14 = vld [vmem:[%s5534_s14 + $0x40] sm:$0xff]  ;;  %v809_v15 = vmul.f32 %v5567_v12, %v5567_v12  ;;  %vm855_vm0 = vweird.f32 %v4596_v47  ;;  %s7224_s9 = sld [smem:[#allocation42_spill]]  ;;  %s773_s12 = sand.u32 1, %s5173_s30  }
  0x6c   : > { %822 = vadd.xlane.f32.xlu1 %v804_v2  ;;  %818 = vadd.xlane.f32.xlu0 %v802_v3  ;;  %v807_v11 = vmul.f32 %v5558_v8, %v5558_v8  ;;  %v808_v16 = vmul.f32 %v5570_v13, %v5570_v13  ;;  %v810_v17 = vmul.f32 %v5573_v14, %v5573_v14  ;;  %v5582_v18 = vld [vmem:[%s5534_s14 + $0x50] sm:$0xff]  ;;  %v5585_v19 = vld [vmem:[%s5534_s14 + $0x48] sm:$0xff]  ;;  %v5588_v20 = vld [vmem:[%s5534_s14 + $0x58] sm:$0xff]  ;;  %v852_v51 = vsub.f32 1.0, %v851_v49  ;;  %s7225_s25 = sld [smem:[#allocation36_spill]] }
  0x6d   : > { %826 = vadd.xlane.f32.xlu2 %v806_v5  ;;  %v812_v21 = vmul.f32 %v5582_v18, %v5582_v18  ;;  %v811_v22 = vmul.f32 %v5585_v19, %v5585_v19  ;;  %v813_v23 = vmul.f32 %v5588_v20, %v5588_v20  ;;  %v5597_v24 = vld [vmem:[%s5534_s14 + $0x68] sm:$0xff]  ;;  %v5600_v25 = vld [vmem:[%s5534_s14 + $0x60] sm:$0xff]  ;;  %v5603_v26 = vld [vmem:[%s5534_s14 + $0x70] sm:$0xff] }
  0x6e   : > { %v815_v27 = vmul.f32 %v5597_v24, %v5597_v24  ;;  %v814_v28 = vmul.f32 %v5600_v25, %v5600_v25  ;;  %v816_v29 = vmul.f32 %v5603_v26, %v5603_v26  ;;  %v5616_v30 = vld [vmem:[%s5534_s14 + $0x78] sm:$0xff]  ;;  %v5619_v31 = vld [vmem:[%s5613_s5] sm:$0xff]  ;;  %v5622_v32 = vld [vmem:[%s5613_s5 + $0x8] sm:$0xff]  ;;  %v853_v53 = vmul.f32 %v4596_v47, %v852_v51  ;;  %s7186_s10 = smov %s7185_s24  ;;  %s7221_s14 = sld [smem:[#allocation38_spill]] }
  0x6f   : > { %v817_v33 = vmul.f32 %v5616_v30, %v5616_v30  ;;  %v1570_v34 = vmul.f32 %v5619_v31, %v5619_v31  ;;  %v1571_v35 = vmul.f32 %v5622_v32, %v5622_v32  ;;  %v5631_v36 = vld [vmem:[%s5613_s5 + $0x18] sm:$0xff]  ;;  %v5634_v37 = vld [vmem:[%s5613_s5 + $0x10] sm:$0xff]  ;;  %v5637_v38 = vld [vmem:[%s5613_s5 + $0x20] sm:$0xff] }
  0x70   : > { %v1573_v39 = vmul.f32 %v5631_v36, %v5631_v36  ;;  %v1572_v40 = vmul.f32 %v5634_v37, %v5634_v37  ;;  %v1574_v41 = vmul.f32 %v5637_v38, %v5637_v38  ;;  %v5646_v42 = vld [vmem:[%s5613_s5 + $0x28] sm:$0xff]  ;;  %v4339_v45 = vld [vmem:[%s7180_s7 + $0x38] sm:$0xff]  ;;  %v4338_v46 = vld [vmem:[%s7180_s7 + $0x30] sm:$0xff]  ;;  %v854_v59 = vadd.f32 %v4596_v47, %v853_v53 }
  0x71   : > { %v1575_v43 = vmul.f32 %v5646_v42, %v5646_v42  ;;  %1160 = vmatpush.bf16.msra.mxu0 %v4339_v45  ;;  %4412 = vmatpush.bf16.msra.mxu1 %v4339_v45  ;;  %v4337_v48 = vld [vmem:[%s7180_s7 + $0x28] sm:$0xff]  ;;  %v4336_v50 = vld [vmem:[%s7180_s7 + $0x20] sm:$0xff]  ;;  %v4335_v52 = vld [vmem:[%s7180_s7 + $0x18] sm:$0xff] }
  0x72   : > { %v5666_v54 = vld [vmem:[%s5613_s5 + $0x38] sm:$0xff]  ;;  %v5669_v55 = vld [vmem:[%s5613_s5 + $0x30] sm:$0xff]  ;;  %v4333_v60 = vld [vmem:[%s7180_s7 + $0x8] sm:$0xff]  ;;  %v5681_v61 = vsel %vm855_vm0, %v4596_v47, %v854_v59 }
  0x73   : > { %v4334_v56 = vld [vmem:[%s7180_s7 + $0x10] sm:$0xff]  ;;  %v1577_v57 = vmul.f32 %v5666_v54, %v5666_v54  ;;  %v1576_v58 = vmul.f32 %v5669_v55, %v5669_v55  ;;  %v4332_v5 = vld [vmem:[%s7180_s7] sm:$0xff] }
  0x74   : > { %824 = vadd.xlane.f32.xlu1 %v805_v9  ;;  %820 = vadd.xlane.f32.xlu0 %v803_v10 }
  0x75   : > { %828 = vadd.xlane.f32.xlu2 %v807_v11  ;;  %1161 = vmatpush.bf16.msra.mxu0 %v4338_v46 }
  0x76   : > { %4413 = vmatpush.bf16.msra.mxu1 %v4338_v46 }
  0x79   : > { %1162 = vmatpush.bf16.msra.mxu0 %v4337_v48 }
  0x7a   : > { %4414 = vmatpush.bf16.msra.mxu1 %v4337_v48 }
  0x7c   : > { %832 = vadd.xlane.f32.xlu1 %v809_v15  ;;  %830 = vadd.xlane.f32.xlu0 %v808_v16 }
  0x7d   : > { %834 = vadd.xlane.f32.xlu2 %v810_v17  ;;  %1163 = vmatpush.bf16.msra.mxu0 %v4336_v50 }
  0x7e   : > { %4415 = vmatpush.bf16.msra.mxu1 %v4336_v50  ;;  %v4355_v50 = vld [vmem:[%s7181_s29 + $0x38] sm:$0xff] }
  0x7f   : > { %1778 = vmatpush.bf16.msra.mxu3 %v4355_v50 }
  0x81   : > { %1164 = vmatpush.bf16.msra.mxu0 %v4335_v52 }
  0x82   : > { %4416 = vmatpush.bf16.msra.mxu1 %v4335_v52 }
  0x84   : > { %838 = vadd.xlane.f32.xlu1 %v812_v21  ;;  %836 = vadd.xlane.f32.xlu0 %v811_v22 }
  0x85   : > { %840 = vadd.xlane.f32.xlu2 %v813_v23  ;;  %1165 = vmatpush.bf16.msra.mxu0 %v4334_v56 }
  0x86   : > { %4417 = vmatpush.bf16.msra.mxu1 %v4334_v56 }
  0x89   : > { %1166 = vmatpush.bf16.msra.mxu0 %v4333_v60 }
  0x8a   : > { %4418 = vmatpush.bf16.msra.mxu1 %v4333_v60  ;;  %v4354_v60 = vld [vmem:[%s7181_s29 + $0x30] sm:$0xff] }
  0x8b   : > { %1779 = vmatpush.bf16.msra.mxu3 %v4354_v60 }
  0x8c   : > { %844 = vadd.xlane.f32.xlu1 %v815_v27  ;;  %842 = vadd.xlane.f32.xlu0 %v814_v28 }
  0x8d   : > { %846 = vadd.xlane.f32.xlu2 %v816_v29  ;;  %1167 = vmatpush.bf16.msra.mxu0 %v4332_v5 }
  0x8e   : > { %4419 = vmatpush.bf16.msra.mxu1 %v4332_v5 }
  0x94   : > { %848 = vadd.xlane.f32.xlu0 %v817_v33  ;;  %1578 = vadd.xlane.f32.xlu1 %v1570_v34 }
  0x95   : > { %1580 = vadd.xlane.f32.xlu2 %v1571_v35 }
  0x9c   : > { %1584 = vadd.xlane.f32.xlu1 %v1573_v39  ;;  %1582 = vadd.xlane.f32.xlu0 %v1572_v40 }
  0x9d   : > { %1586 = vadd.xlane.f32.xlu2 %v1574_v41 }
  0xa4   : > { %1588 = vadd.xlane.f32.xlu0 %v1575_v43  ;;  %1590 = vadd.xlane.f32.xlu1 %v1576_v58 }
  0xa5   : > { %1592 = vadd.xlane.f32.xlu2 %v1577_v57 }
  0xdf   : > { %v823_v62 = vpop.xlane.xlu1 %822  ;;  %v819_v63 = vpop.xlane.xlu0 %818 }
  0xe0   : > { %v857_v2 = vmul.f32 %v5681_v61, %v819_v63  ;;  %v827_v3 = vpop.xlane.xlu2 %826  ;;  %v859_v10 = vmul.f32 %v5681_v61, %v823_v62 }
  0xe1   : > { %v861_v29 = vmul.f32 %v5681_v61, %v827_v3 }
  0xe2   : > { %v873_v9 = vadd.f32 1e-06, %v857_v2  ;;  %v5688_v11 = vadd.f32 1e-06, %v859_v10 }
  0xe3   : > { %v5698_v39 = vadd.f32 1e-06, %v861_v29 }
  0xe4   : > { %4597 = vrsqrt.f32 %v873_v9  ;;  %vm895_vm2 = vweird.f32 %v873_v9  ;;  %vm915_vm7 = vweird.f32 %v5688_v11 }
  0xe5   : > { %4599 = vrsqrt.f32 %v5688_v11  ;;  %vm935_vm13 = vweird.f32 %v5698_v39 }
  0xe7   : > { %v825_v15 = vpop.xlane.xlu1 %824  ;;  %v821_v16 = vpop.xlane.xlu0 %820 }
  0xe8   : > { %v860_v17 = vmul.f32 %v5681_v61, %v825_v15  ;;  %v858_v21 = vmul.f32 %v5681_v61, %v821_v16  ;;  %v829_v22 = vpop.xlane.xlu2 %828 }
  0xe9   : > { %v862_v35 = vmul.f32 %v5681_v61, %v829_v22 }
  0xea   : > { %v5692_v23 = vadd.f32 1e-06, %v860_v17  ;;  %v874_v27 = vadd.f32 1e-06, %v858_v21  ;;  %v4598_v28 = vpop.eup %4597  ;;  %v4353_v21 = vld [vmem:[%s7181_s29 + $0x28] sm:$0xff] }
  0xeb   : > { %v890_v33 = vmul.f32 %v4598_v28, %v873_v9  ;;  %v5702_v45 = vpop.eup %4599  ;;  %v5706_v48 = vadd.f32 1e-06, %v862_v35  ;;  %vm896_vm1 = vweird.f32 %v4598_v28  ;;  %1780 = vmatpush.bf16.msra.mxu3 %v4353_v21 }
  0xec   : > { %4601 = vrsqrt.f32 %v5692_v23  ;;  %v910_v51 = vmul.f32 %v5702_v45, %v5688_v11  ;;  %vm5730_vm3 = vmor %vm895_vm2, %vm896_vm1  ;;  %vm905_vm5 = vweird.f32 %v874_v27  ;;  %vm916_vm8 = vweird.f32 %v5702_v45 }
  0xed   : > { %4603 = vrsqrt.f32 %v874_v27  ;;  %v891_v34 = vmul.f32 %v4598_v28, %v890_v33  ;;  %vm925_vm9 = vweird.f32 %v5692_v23  ;;  %vm5808_vm12 = vmor %vm915_vm7, %vm916_vm8  ;;  %vm945_vm15 = vweird.f32 %v5706_v48 }
  0xee   : > { %4605 = vrsqrt.f32 %v5698_v39  ;;  %v911_v62 = vmul.f32 %v5702_v45, %v910_v51 }
  0xef   : > { %v833_v40 = vpop.xlane.xlu1 %832  ;;  %v831_v41 = vpop.xlane.xlu0 %830  ;;  %v892_v43 = vmul.f32 0.5, %v891_v34  ;;  %4607 = vrsqrt.f32 %v5706_v48 }
  0xf0   : > { %v5700_v44 = vpop.xlane.xlu2 %834  ;;  %v864_v15 = vmul.f32 %v5681_v61, %v833_v40  ;;  %v863_v17 = vmul.f32 %v5681_v61, %v831_v41  ;;  %v912_v29 = vmul.f32 0.5, %v911_v62  ;;  %v4346_v62 = vld [vmem:[%s7186_s10 + $0x30] sm:$0xff] }
  0xf1   : > { %v893_v47 = vsub.f32 1.5, %v892_v43 }
  0xf2   : > { %v5704_v46 = vpop.eup %4601  ;;  %v5745_v40 = vadd.f32 1e-06, %v864_v15 }
  0xf3   : > { %v4604_v49 = vpop.eup %4603  ;;  %v920_v52 = vmul.f32 %v5704_v46, %v5692_v23  ;;  %v894_v56 = vmul.f32 %v4598_v28, %v893_v47  ;;  %v4347_v47 = vld [vmem:[%s7185_s24 + $0x38] sm:$0xff]  ;;  %vm926_vm10 = vweird.f32 %v5704_v46  ;;  %s7220_s24 = sld [smem:[#allocation40_spill]] }
  0xf4   : > { %v900_v53 = vmul.f32 %v4604_v49, %v874_v27  ;;  %v5728_v5 = vpop.eup %4605  ;;  %vm906_vm4 = vweird.f32 %v4604_v49  ;;  %v5751_v27 = vld [vmem:[%s7184_s16] ss:$0 sm:$0xff]  ;;  %1277 = vmatpush.bf16.msrb.mxu1 %v4347_v47  ;;  %4609 = vrsqrt.f32 %v5745_v40  ;;  %vm5795_vm11 = vmor %vm925_vm9, %vm926_vm10  ;;  %v4345_v47 = vld [vmem:[%s7186_s10 + $0x28] sm:$0xff]  ;;  %s7219_s16 = sld [smem:[#allocation34_spill]] }
  0xf5   : > { %v921_v63 = vmul.f32 %v5704_v46, %v920_v52  ;;  %v898_v9 = vsel %vm5730_vm3, %v4598_v28, %v894_v56  ;;  %v5741_v22 = vpop.eup %4607  ;;  %v930_v35 = vmul.f32 %v5728_v5, %v5698_v39  ;;  %vm907_vm6 = vmor %vm905_vm5, %vm906_vm4  ;;  %v5753_v28 = vadd.f32 1e-06, %v863_v17 }
  0xf6   : > { %v901_v57 = vmul.f32 %v4604_v49, %v900_v53  ;;  %v1049_v41 = vmul.f32 %v898_v9, %v5540_v1  ;;  %v940_v1 = vmul.f32 %v5741_v22, %v5706_v48  ;;  %v4352_v53 = vld [vmem:[%s7181_s29 + $0x20] sm:$0xff]  ;;  %vm936_vm14 = vweird.f32 %v5728_v5 }
  0xf7   : > { %v5717_v58 = vpop.xlane.xlu1 %838  ;;  %v5719_v59 = vpop.xlane.xlu0 %836  ;;  %v922_v33 = vmul.f32 0.5, %v921_v63  ;;  %1781 = vmatpush.bf16.msra.mxu3 %v4352_v53  ;;  %4611 = vrsqrt.f32 %v5753_v28  ;;  %vm946_vm0 = vweird.f32 %v5741_v22  ;;  %vm5900_vm3 = vmor %vm935_vm13, %vm936_vm14 }
  0xf8   : > { %v902_v2 = vmul.f32 0.5, %v901_v57  ;;  %v5726_v3 = vpop.xlane.xlu2 %840  ;;  %v931_v57 = vmul.f32 %v5728_v5, %v930_v35  ;;  %v865_v35 = vmul.f32 %v5681_v61, %v5700_v44  ;;  %1278 = vmatpush.bf16.msrb.mxu1 %v4346_v62  ;;  %v4343_v44 = vld [vmem:[%s7186_s10 + $0x18] sm:$0xff] }
  0xf9   : > { %v923_v56 = vsub.f32 1.5, %v922_v33 }
  0xfa   : > { %v903_v16 = vsub.f32 1.5, %v902_v2  ;;  %v5813_v23 = vpop.eup %4609  ;;  %v5822_v11 = vadd.f32 1e-06, %v865_v35 }
  0xfb   : > { %v924_v33 = vmul.f32 %v5704_v46, %v923_v56 }
  0xfc   : > { %v904_v34 = vmul.f32 %v4604_v49, %v903_v16  ;;  %v941_v16 = vmul.f32 %v5741_v22, %v940_v1  ;;  %1279 = vmatpush.bf16.msrb.mxu1 %v4345_v47 }
  0xfd   : > { %v5820_v53 = vpop.eup %4611 }
  0xfe   : > { %v908_v43 = vsel %vm907_vm6, %v4604_v49, %v904_v34  ;;  %v913_v49 = vsub.f32 1.5, %v912_v29  ;;  %v4351_v29 = vld [vmem:[%s7181_s29 + $0x18] sm:$0xff]  ;;  %v932_v34 = vmul.f32 0.5, %v931_v57  ;;  %v942_v1 = vmul.f32 0.5, %v941_v16  ;;  %vm5915_vm6 = vmor %vm945_vm15, %vm946_vm0 }
  0xff   : > { %v845_v50 = vpop.xlane.xlu1 %844  ;;  %v843_v51 = vpop.xlane.xlu0 %842  ;;  %v1050_v52 = vmul.f32 %v908_v43, %v5555_v7  ;;  %v1068_v7 = vmul.f32 %v5751_v27, %v1049_v41  ;;  %1782 = vmatpush.bf16.msra.mxu3 %v4351_v29  ;;  %v928_v57 = vsel %vm5795_vm11, %v5704_v46, %v924_v33  ;;  %v867_v46 = vmul.f32 %v5681_v61, %v5717_v58  ;;  %v4349_v29 = vld [vmem:[%s7181_s29 + $0x8] sm:$0xff] }
 0x100   : > { %v870_v60 = vmul.f32 %v5681_v61, %v845_v50  ;;  %v869_v63 = vmul.f32 %v5681_v61, %v843_v51  ;;  %v847_v15 = vpop.xlane.xlu2 %846  ;;  %v914_v41 = vmul.f32 %v5702_v45, %v913_v49  ;;  %v933_v49 = vsub.f32 1.5, %v932_v34 }
 0x101   : > { %v1069_v2 = vmul.f32 %v5751_v27, %v1050_v52  ;;  %v871_v21 = vmul.f32 %v5681_v61, %v847_v15  ;;  %v4350_v52 = vld [vmem:[%s7181_s29 + $0x10] sm:$0xff]  ;;  %v950_v16 = vmul.f32 %v5820_v53, %v5753_v28  ;;  %vm965_vm11 = vweird.f32 %v5745_v40 }
 0x102   : > { %v5778_v10 = vadd.f32 1e-06, %v870_v60  ;;  %v5781_v17 = vadd.f32 1e-06, %v869_v63  ;;  %v4344_v60 = vld [vmem:[%s7186_s10 + $0x20] sm:$0xff]  ;;  %v918_v62 = vsel %vm5808_vm12, %v5702_v45, %v914_v41  ;;  %v960_v63 = vmul.f32 %v5813_v23, %v5745_v40 }
 0x103   : > { %v5783_v9 = vpack.c.bf16 %v1069_v2, %v1068_v7  ;;  %v5815_v50 = vadd.f32 1e-06, %v871_v21  ;;  %1783 = vmatpush.bf16.msra.mxu3 %v4350_v52  ;;  %v866_v7 = vmul.f32 %v5681_v61, %v5719_v59  ;;  %v943_v45 = vsub.f32 1.5, %v942_v1  ;;  %1280 = vmatpush.bf16.msrb.mxu1 %v4344_v60 }
 0x104   : > { %4613 = vrsqrt.f32 %v5778_v10  ;;  %v1052_v21 = vmul.f32 %v928_v57, %v5552_v6  ;;  %v5856_v59 = vmul.f32 %v5728_v5, %v933_v49  ;;  %v1051_v34 = vmul.f32 %v918_v62, %v5537_v0  ;;  %v4348_v57 = vld [vmem:[%s7181_s29] sm:$0xff] }
 0x105   : > { %1168 = vmatmul.bf16.vlgmr.msra.gmra.mxu0 %v5783_v9  ;;  %4615 = vrsqrt.f32 %v5781_v17  ;;  %v961_v35 = vmul.f32 %v5813_v23, %v960_v63  ;;  %v5868_v41 = vadd.f32 1e-06, %v867_v46  ;;  %v5870_v43 = vadd.f32 1e-06, %v866_v7  ;;  %v4342_v63 = vld [vmem:[%s7186_s10 + $0x10] sm:$0xff] }
 0x106   : > { %4617 = vrsqrt.f32 %v5815_v50  ;;  %v5879_v52 = vmul.f32 %v5820_v53, %v950_v16  ;;  %v5882_v0 = vmul.f32 %v5741_v22, %v943_v45  ;;  %vm1025_vm1 = vweird.f32 %v5778_v10 }
 0x107   : > { %v849_v51 = vpop.xlane.xlu0 %848  ;;  %4619 = vrsqrt.f32 %v5822_v11  ;;  %1784 = vmatpush.bf16.msra.mxu3 %v4349_v29  ;;  %v1579_v1 = vpop.xlane.xlu1 %1578  ;;  %1281 = vmatpush.bf16.msrb.mxu1 %v4343_v44  ;;  %vm1015_vm4 = vweird.f32 %v5781_v17  ;;  %v1070_v45 = vmul.f32 %v5751_v27, %v1051_v34  ;;  %v5909_v29 = vmul.f32 0.5, %v961_v35 }
 0x108   : > { %v872_v56 = vmul.f32 %v5681_v61, %v849_v51  ;;  %v1581_v46 = vpop.xlane.xlu2 %1580  ;;  %v5933_v35 = vmul.f32 %v5681_v61, %v5726_v3  ;;  %vm1035_vm9 = vweird.f32 %v5815_v50  ;;  %vm966_vm12 = vweird.f32 %v5813_v23 }
 0x109   : > { %vm955_vm15 = vweird.f32 %v5753_v28 }
 0x10a   : > { %v5842_v2 = vadd.f32 1e-06, %v872_v56  ;;  %v5844_v15 = vpop.eup %4613  ;;  %v1071_v56 = vmul.f32 %v5751_v27, %v1052_v21 }
 0x10b   : > { %v5853_v58 = vpop.eup %4615  ;;  %v1020_v33 = vmul.f32 %v5844_v15, %v5778_v10  ;;  %vm1026_vm2 = vweird.f32 %v5844_v15  ;;  %1785 = vmatpush.bf16.msra.mxu3 %v4348_v57  ;;  %1282 = vmatpush.bf16.msrb.mxu1 %v4342_v63 }
 0x10c   : > { %v1010_v6 = vmul.f32 %v5853_v58, %v5781_v17  ;;  %4621 = vrsqrt.f32 %v5842_v2  ;;  %v5876_v51 = vpop.eup %4617  ;;  %vm1016_vm5 = vweird.f32 %v5853_v58  ;;  %vm5927_vm7 = vmor %vm1025_vm1, %vm1026_vm2  ;;  %v5935_v44 = vpack.c.bf16 %v1071_v56, %v1070_v45 }
 0x10d   : > { %v1021_v47 = vmul.f32 %v5844_v15, %v1020_v33  ;;  %v1030_v62 = vmul.f32 %v5876_v51, %v5815_v50  ;;  %v5907_v21 = vpop.eup %4619  ;;  %4623 = vrsqrt.f32 %v5870_v43  ;;  %vm5943_vm8 = vmor %vm1015_vm4, %vm1016_vm5  ;;  %v938_v17 = vsel %vm5900_vm3, %v5728_v5, %v5856_v59 }
 0x10e   : > { %v1011_v49 = vmul.f32 %v5853_v58, %v1010_v6  ;;  %v1594_v5 = vmul.f32 %v1579_v1, %v5681_v61  ;;  %vm1036_vm10 = vweird.f32 %v5876_v51  ;;  %vm1045_vm13 = vweird.f32 %v5842_v2  ;;  %vm6057_vm5 = vmor %vm965_vm11, %vm966_vm12 }
 0x10f   : > { %v1022_v60 = vmul.f32 0.5, %v1021_v47  ;;  %v1031_v6 = vmul.f32 %v5876_v51, %v1030_v62  ;;  %v1583_v56 = vpop.xlane.xlu0 %1582  ;;  %v1585_v59 = vpop.xlane.xlu1 %1584  ;;  %vm5998_vm0 = vmor %vm1035_vm9, %vm1036_vm10  ;;  %vm956_vm2 = vweird.f32 %v5820_v53 }
 0x110   : > { %v1012_v16 = vmul.f32 0.5, %v1011_v49  ;;  %v1595_v49 = vmul.f32 %v1581_v46, %v5681_v61  ;;  %v948_v46 = vsel %vm5915_vm6, %v5741_v22, %v5882_v0  ;;  %v5988_v39 = vadd.f32 1e-06, %v1594_v5  ;;  %vm6072_vm6 = vmor %vm955_vm15, %vm956_vm2 }
 0x111   : > { %v1023_v33 = vsub.f32 1.5, %v1022_v60  ;;  %v1032_v60 = vmul.f32 0.5, %v1031_v6  ;;  %v1597_v34 = vmul.f32 %v1585_v59, %v5681_v61  ;;  %v1054_v50 = vmul.f32 %v948_v46, %v5558_v8 }
 0x112   : > { %v5921_v47 = vpop.eup %4621  ;;  %v1013_v48 = vsub.f32 1.5, %v1012_v16  ;;  %v4341_v16 = vld [vmem:[%s7186_s10 + $0x8] sm:$0xff]  ;;  %v5963_v63 = vadd.f32 1e-06, %v1595_v49  ;;  %v952_v49 = vmul.f32 0.5, %v5879_v52 }
 0x113   : > { %v1024_v57 = vmul.f32 %v5844_v15, %v1023_v33  ;;  %v1040_v3 = vmul.f32 %v5921_v47, %v5842_v2  ;;  %v1033_v45 = vsub.f32 1.5, %v1032_v60  ;;  %v5976_v7 = vpop.eup %4623  ;;  %vm1046_vm14 = vweird.f32 %v5921_v47  ;;  %1283 = vmatpush.bf16.msrb.mxu1 %v4341_v16 }
 0x114   : > { %v1014_v62 = vmul.f32 %v5853_v58, %v1013_v48  ;;  %4625 = vrsqrt.f32 %v5963_v63  ;;  %v1596_v48 = vmul.f32 %v1583_v56, %v5681_v61  ;;  %vm6007_vm1 = vmor %vm1045_vm13, %vm1046_vm14  ;;  %v1053_v56 = vmul.f32 %v938_v17, %v5547_v4 }
 0x115   : > { %1173 = vmatmul.bf16.gmra.mxu0 %v5935_v44  ;;  %v1041_v33 = vmul.f32 %v5921_v47, %v1040_v3  ;;  %v1028_v6 = vsel %vm5927_vm7, %v5844_v15, %v1024_v57  ;;  %v1034_v57 = vmul.f32 %v5876_v51, %v1033_v45  ;;  %v1587_v3 = vpop.xlane.xlu2 %1586  ;;  %4627 = vrsqrt.f32 %v5988_v39 }
 0x116   : > { %v1018_v22 = vsel %vm5943_vm8, %v5853_v58, %v1014_v62  ;;  %v1062_v0 = vmul.f32 %v1028_v6, %v5597_v24  ;;  %v4340_v24 = vld [vmem:[%s7186_s10] sm:$0xff]  ;;  %v6014_v62 = vadd.f32 1e-06, %v1597_v34  ;;  %v970_v16 = vmul.f32 %v5907_v21, %v5822_v11 }
 0x117   : > { %v1042_v15 = vmul.f32 0.5, %v1041_v33  ;;  %v1061_v1 = vmul.f32 %v1018_v22, %v5600_v25  ;;  %1284 = vmatpush.bf16.msrb.mxu1 %v4340_v24  ;;  %v6021_v2 = vadd.f32 1e-06, %v1596_v48  ;;  %v1589_v6 = vpop.xlane.xlu0 %1588  ;;  %v963_v4 = vsub.f32 1.5, %v5909_v29 }
 0x118   : > { %v1081_v58 = vmul.f32 %v5751_v27, %v1062_v0  ;;  %4629 = vrsqrt.f32 %v6014_v62  ;;  %v1598_v8 = vmul.f32 %v1587_v3, %v5681_v61  ;;  %v953_v17 = vsub.f32 1.5, %v952_v49 }
 0x119   : > { %v1043_v10 = vsub.f32 1.5, %v1042_v15  ;;  %v1080_v60 = vmul.f32 %v5751_v27, %v1061_v1  ;;  %v1038_v46 = vsel %vm5998_vm0, %v5876_v51, %v1034_v57  ;;  %v1072_v29 = vmul.f32 %v5751_v27, %v1053_v56 }
 0x11a   : > { %v4626_v5 = vpop.eup %4625  ;;  %v1073_v0 = vmul.f32 %v5751_v27, %v1054_v50  ;;  %4631 = vrsqrt.f32 %v6021_v2  ;;  %v1599_v15 = vmul.f32 %v1589_v6, %v5681_v61  ;;  %v971_v1 = vmul.f32 %v5907_v21, %v970_v16 }
 0x11b   : > { %v1044_v45 = vmul.f32 %v5921_v47, %v1043_v10  ;;  %v6019_v33 = vpack.c.bf16 %v1081_v58, %v1080_v60  ;;  %v1621_v22 = vmul.f32 %v4626_v5, %v5963_v63  ;;  %4633 = vrsqrt.f32 %v5868_v41  ;;  %v4628_v58 = vpop.eup %4627 }
 0x11c   : > { %v6042_v51 = vadd.f32 1e-06, %v5933_v35  ;;  %v1063_v34 = vmul.f32 %v1038_v46, %v5603_v26  ;;  %v6047_v49 = vadd.f32 1e-06, %v1598_v8  ;;  %vm1626_vm3 = vweird.f32 %v5963_v63 }
 0x11d   : > { %1198 = vmatmul.bf16.vlgmr.msra.gmra.mxu1 %v6019_v33  ;;  %v1048_v59 = vsel %vm6007_vm1, %v5921_v47, %v1044_v45  ;;  %v1622_v24 = vmul.f32 %v4626_v5, %v1621_v22  ;;  %v964_v47 = vmul.f32 %v5813_v23, %v963_v4  ;;  %vm1627_vm4 = vweird.f32 %v4626_v5 }
 0x11e   : > { %v1064_v48 = vmul.f32 %v1048_v59, %v5616_v30  ;;  %v1611_v25 = vmul.f32 %v4628_v58, %v5988_v39  ;;  %v6051_v10 = vpop.eup %4629  ;;  %v954_v26 = vmul.f32 %v5820_v53, %v953_v17  ;;  %v980_v30 = vmul.f32 %v5976_v7, %v5870_v43  ;;  %vm6087_vm8 = vmor %vm1626_vm3, %vm1627_vm4 }
 0x11f   : > { %v1623_v57 = vmul.f32 0.5, %v1622_v24  ;;  %v6064_v60 = vpack.c.bf16 %v1073_v0, %v1072_v29  ;;  %v6066_v3 = vadd.f32 1e-06, %v1599_v15  ;;  %vm1616_vm7 = vweird.f32 %v5988_v39 }
 0x120   : > { %v1612_v56 = vmul.f32 %v4628_v58, %v1611_v25  ;;  %v1641_v50 = vmul.f32 %v6051_v10, %v6014_v62  ;;  %v6079_v16 = vpop.eup %4631  ;;  %v1082_v45 = vmul.f32 %v5751_v27, %v1063_v34  ;;  %v1083_v6 = vmul.f32 %v5751_v27, %v1064_v48 }
 0x121   : > { %v1624_v40 = vsub.f32 1.5, %v1623_v57  ;;  %vm1617_vm9 = vweird.f32 %v4628_v58  ;;  %4635 = vrsqrt.f32 %v6047_v49  ;;  %v6092_v4 = vpop.eup %4633  ;;  %v1631_v59 = vmul.f32 %v6079_v16, %v6021_v2 }
 0x122   : > { %v1613_v17 = vmul.f32 0.5, %v1612_v56  ;;  %v1642_v46 = vmul.f32 %v6051_v10, %v1641_v50  ;;  %v981_v22 = vmul.f32 %v5976_v7, %v980_v30  ;;  %v958_v63 = vsel %vm6072_vm6, %v5820_v53, %v954_v26  ;;  %vm6112_vm10 = vmor %vm1616_vm7, %vm1617_vm9 }
 0x123   : > { %v1625_v8 = vmul.f32 %v4626_v5, %v1624_v40  ;;  %v968_v29 = vsel %vm6057_vm5, %v5813_v23, %v964_v47  ;;  %4637 = vrsqrt.f32 %v6066_v3  ;;  %v1632_v24 = vmul.f32 %v6079_v16, %v1631_v59 }
 0x124   : > { %v1614_v0 = vsub.f32 1.5, %v1613_v17  ;;  %v1643_v15 = vmul.f32 0.5, %v1642_v46  ;;  %4639 = vrsqrt.f32 %v6042_v51  ;;  %v972_v47 = vmul.f32 0.5, %v971_v1 }
 0x125   : > { %1178 = vmatmul.bf16.gmra.mxu0 %v6064_v60  ;;  %v1629_v34 = vsel %vm6087_vm8, %v4626_v5, %v1625_v8  ;;  %v6117_v48 = vpack.c.bf16 %v1083_v6, %v1082_v45  ;;  %v1633_v25 = vmul.f32 0.5, %v1632_v24  ;;  %v982_v26 = vmul.f32 0.5, %v981_v22 }
 0x126   : > { %v1691_v23 = vmul.f32 %v1629_v34, %v5622_v32  ;;  %v1615_v57 = vmul.f32 %v4628_v58, %v1614_v0  ;;  %v1055_v5 = vmul.f32 %v958_v63, %v5570_v13  ;;  %v1056_v30 = vmul.f32 %v968_v29, %v5567_v12 }
 0x127   : > { %v6119_v35 = vpop.eup %4635  ;;  %v1644_v52 = vsub.f32 1.5, %v1643_v15  ;;  %v1634_v39 = vsub.f32 1.5, %v1633_v25  ;;  %vm1646_vm11 = vweird.f32 %v6014_v62  ;;  %vm1647_vm12 = vweird.f32 %v6051_v10 }
 0x128   : > { %v1619_v40 = vsel %vm6112_vm10, %v4628_v58, %v1615_v57  ;;  %v1699_v1 = vmul.f32 %v5751_v27, %v1691_v23  ;;  %v973_v50 = vsub.f32 1.5, %v972_v47  ;;  %vm1636_vm13 = vweird.f32 %v6021_v2  ;;  %vm6140_vm15 = vmor %vm1646_vm11, %vm1647_vm12 }
 0x129   : > { %v6125_v56 = vpop.eup %4637  ;;  %v1690_v32 = vmul.f32 %v1619_v40, %v5619_v31  ;;  %vm1637_vm14 = vweird.f32 %v6079_v16  ;;  %v983_v13 = vsub.f32 1.5, %v982_v26  ;;  %v1074_v58 = vmul.f32 %v5751_v27, %v1055_v5 }
 0x12a   : > { %v6134_v12 = vpop.eup %4639  ;;  %v1075_v62 = vmul.f32 %v5751_v27, %v1056_v30  ;;  %v1645_v31 = vmul.f32 %v6051_v10, %v1644_v52  ;;  %v1635_v28 = vmul.f32 %v6079_v16, %v1634_v39  ;;  %v1651_v2 = vmul.f32 %v6119_v35, %v6047_v49  ;;  %vm6151_vm2 = vmor %vm1636_vm13, %vm1637_vm14 }
 0x12b   : > { %v1698_v45 = vmul.f32 %v5751_v27, %v1690_v32  ;;  %v1661_v8 = vmul.f32 %v6125_v56, %v6066_v3  ;;  %vm975_vm0 = vweird.f32 %v5822_v11  ;;  %vm976_vm1 = vweird.f32 %v5907_v21 }
 0x12c   : > { %v990_v59 = vmul.f32 %v6092_v4, %v5868_v41  ;;  %vm985_vm3 = vweird.f32 %v5870_v43  ;;  %vm986_vm4 = vweird.f32 %v5976_v7  ;;  %v984_v22 = vmul.f32 %v5976_v7, %v983_v13  ;;  %vm6165_vm5 = vmor %vm975_vm0, %vm976_vm1  ;;  %v1832_v13 = vld [vmem:[#allocation7 + $0x48] sm:$0xff] }
 0x12d   : > { %1203 = vmatmul.bf16.gmra.mxu1 %v6117_v48  ;;  %v1706_v46 = vpack.c.bf16 %v1699_v1, %v1698_v45  ;;  %v974_v63 = vmul.f32 %v5907_v21, %v973_v50  ;;  %v1000_v11 = vmul.f32 %v6134_v12, %v6042_v51  ;;  %v6163_v29 = vpack.c.bf16 %v1075_v62, %v1074_v58  ;;  %vm987_vm6 = vmor %vm985_vm3, %vm986_vm4 }
 0x12e   : > { %v1652_v15 = vmul.f32 %v6119_v35, %v1651_v2  ;;  %v1662_v43 = vmul.f32 %v6125_v56, %v1661_v8  ;;  %v1639_v24 = vsel %vm6151_vm2, %v6079_v16, %v1635_v28  ;;  %v1649_v34 = vsel %vm6140_vm15, %v6051_v10, %v1645_v31 }
 0x12f   : > { %1786 = vmatmul.bf16.vlgmr.msra.gmra.mxu3 %v1706_v46  ;;  %v991_v53 = vmul.f32 %v6092_v4, %v990_v59  ;;  %v1001_v23 = vmul.f32 %v6134_v12, %v1000_v11  ;;  %v1692_v47 = vmul.f32 %v1639_v24, %v5634_v37  ;;  %v1693_v57 = vmul.f32 %v1649_v34, %v5631_v36  ;;  %v1363_v46 = vld [vmem:[%s7219_s16 + $0x28] sm:$0xff] }
 0x130   : > { %v978_v25 = vsel %vm6165_vm5, %v5907_v21, %v974_v63  ;;  %v988_v16 = vsel %vm987_vm6, %v5976_v7, %v984_v22  ;;  %v1653_v26 = vmul.f32 0.5, %v1652_v15  ;;  %v1663_v5 = vmul.f32 0.5, %v1662_v43  ;;  %v1362_v63 = vld [vmem:[%s7219_s16 + $0x20] sm:$0xff] }
 0x131   : > { %v992_v10 = vmul.f32 0.5, %v991_v53  ;;  %v1057_v30 = vmul.f32 %v978_v25, %v5573_v14  ;;  %v1058_v52 = vmul.f32 %v988_v16, %v5585_v19  ;;  %v1700_v39 = vmul.f32 %v5751_v27, %v1692_v47  ;;  %v1360_v47 = vld [vmem:[%s7219_s16 + $0x10] sm:$0xff] }
 0x132   : > { %v1701_v40 = vmul.f32 %v5751_v27, %v1693_v57  ;;  %v1002_v37 = vmul.f32 0.5, %v1001_v23  ;;  %v1654_v32 = vsub.f32 1.5, %v1653_v26  ;;  %v1664_v36 = vsub.f32 1.5, %v1663_v5  ;;  %v1361_v23 = vld [vmem:[%s7219_s16 + $0x18] sm:$0xff] }
 0x133   : > { %vm1656_vm7 = vweird.f32 %v6047_v49  ;;  %vm1657_vm8 = vweird.f32 %v6119_v35  ;;  %vm1666_vm9 = vweird.f32 %v6066_v3  ;;  %vm1667_vm10 = vweird.f32 %v6125_v56 }
 0x134   : > { %v993_v14 = vsub.f32 1.5, %v992_v10  ;;  %v1076_v19 = vmul.f32 %v5751_v27, %v1057_v30  ;;  %v1077_v21 = vmul.f32 %v5751_v27, %v1058_v52  ;;  %v1707_v7 = vpack.c.bf16 %v1701_v40, %v1700_v39  ;;  %vm6198_vm11 = vmor %vm1656_vm7, %vm1657_vm8  ;;  %v1359_v30 = vld [vmem:[%s7219_s16 + $0x8] sm:$0xff]  ;;  %v1358_v52 = vld [vmem:[%s7219_s16] sm:$0xff] }
 0x135   : > { %1183 = vmatmul.bf16.gmra.mxu0 %v6163_v29  ;;  %v1003_v1 = vsub.f32 1.5, %v1002_v37  ;;  %v1655_v50 = vmul.f32 %v6119_v35, %v1654_v32  ;;  %v1665_v49 = vmul.f32 %v6125_v56, %v1664_v36  ;;  %vm995_vm12 = vweird.f32 %v5868_v41  ;;  %vm1668_vm14 = vmor %vm1666_vm9, %vm1667_vm10 }
 0x136   : > { %vm996_vm13 = vweird.f32 %v6092_v4  ;;  %vm1005_vm15 = vweird.f32 %v6042_v51  ;;  %vm1006_vm0 = vweird.f32 %v6134_v12  ;;  %v6208_v3 = vpack.c.bf16 %v1077_v21, %v1076_v19  ;;  %v1838_v19 = vld [vmem:[#allocation7 + $0x78] sm:$0xff]  ;;  %v1837_v21 = vld [vmem:[#allocation7 + $0x70] sm:$0xff] }
 0x137   : > { %vm997_vm1 = vmor %vm995_vm12, %vm996_vm13  ;;  %v1004_v58 = vmul.f32 %v6134_v12, %v1003_v1  ;;  %v1659_v62 = vsel %vm6198_vm11, %v6119_v35, %v1655_v50  ;;  %v1669_v41 = vsel %vm1668_vm14, %v6125_v56, %v1665_v49  ;;  %1839 = vmatpush.msrb.mxu3 %v1838_v19  ;;  %vm1366_vm9 = vcmask 523264   ;;  %v1834_v1 = vld [vmem:[#allocation7 + $0x58] sm:$0xff]  ;;  %v1833_v50 = vld [vmem:[#allocation7 + $0x50] sm:$0xff] }
 0x138   : > { %vm1007_vm2 = vmor %vm1005_vm15, %vm1006_vm0  ;;  %v1694_v45 = vmul.f32 %v1659_v62, %v5637_v38  ;;  %v1695_v31 = vmul.f32 %v1669_v41, %v5646_v42  ;;  %v1365_v38 = vld [vmem:[%s7219_s16 + $0x38] sm:$0xff]  ;;  %v1364_v42 = vld [vmem:[%s7219_s16 + $0x30] sm:$0xff]  ;;  %vm1948_vm10 = vcmask 261120  }
 0x139   : > { %v1008_v6 = vsel %vm1007_vm2, %v6134_v12, %v1004_v58  ;;  %1423 = vmatpush.msra.mxu2 %v1365_v38  ;;  %1840 = vmatpush.msrb.mxu3 %v1837_v21  ;;  %v1831_v49 = vld [vmem:[#allocation7 + $0x40] sm:$0xff]  ;;  %v1829_v62 = vld [vmem:[#allocation7 + $0x30] sm:$0xff]  ;;  %v1828_v41 = vld [vmem:[#allocation7 + $0x28] sm:$0xff] }
 0x13a   : > { %v1060_v2 = vmul.f32 %v1008_v6, %v5588_v20  ;;  %v1702_v8 = vmul.f32 %v5751_v27, %v1694_v45  ;;  %v1703_v35 = vmul.f32 %v5751_v27, %v1695_v31  ;;  %v1826_v31 = vld [vmem:[#allocation7 + $0x18] sm:$0xff] }
 0x13b   : > { %1424 = vmatpush.msra.mxu2 %v1364_v42 }
 0x13c   : > { %v1079_v20 = vmul.f32 %v5751_v27, %v1060_v2  ;;  %v1708_v12 = vpack.c.bf16 %v1703_v35, %v1702_v8  ;;  %v1824_v2 = vld [vmem:[#allocation7 + $0x8] sm:$0xff]  ;;  %v1823_v8 = vld [vmem:[#allocation7] sm:$0xff] }
 0x13d   : > { %1285 = vmatmul.bf16.vlgmr.msrb.gmra.mxu1 %v5783_v9  ;;  %v994_v9 = vmul.f32 %v6092_v4, %v993_v14  ;;  %1425 = vmatpush.msra.mxu2 %v1363_v46 }
 0x13f   : > { %1791 = vmatmul.bf16.gmra.mxu3 %v1707_v7  ;;  %v998_v51 = vsel %vm997_vm1, %v6092_v4, %v994_v9  ;;  %v1593_v4 = vpop.xlane.xlu2 %1592  ;;  %1426 = vmatpush.msra.mxu2 %v1362_v63  ;;  %v1836_v7 = vld [vmem:[#allocation7 + $0x68] sm:$0xff] }
 0x140   : > { %v1059_v28 = vmul.f32 %v998_v51, %v5582_v18  ;;  %v1591_v18 = vpop.xlane.xlu1 %1590  ;;  %v1601_v17 = vmul.f32 %v1593_v4, %v5681_v61  ;;  %1841 = vmatpush.msrb.mxu3 %v1836_v7  ;;  %v1827_v51 = vld [vmem:[#allocation7 + $0x20] sm:$0xff] }
 0x141   : > { %1427 = vmatpush.msra.mxu2 %v1361_v23 }
 0x142   : > { %v1078_v56 = vmul.f32 %v5751_v27, %v1059_v28  ;;  %v1609_v59 = vadd.f32 1e-06, %v1601_v17  ;;  %v1825_v28 = vld [vmem:[#allocation7 + $0x10] sm:$0xff] }
 0x143   : > { %1428 = vmatpush.msra.mxu2 %v1360_v47 }
 0x144   : > { %v6241_v11 = vpack.c.bf16 %v1079_v20, %v1078_v56  ;;  %4641 = vrsqrt.f32 %v1609_v59  ;;  %vm1686_vm3 = vweird.f32 %v1609_v59 }
 0x145   : > { %1188 = vmatmul.bf16.gmra.mxu0 %v6208_v3  ;;  %1429 = vmatpush.msra.mxu2 %v1359_v30 }
 0x147   : > { %1430 = vmatpush.msra.mxu2 %v1358_v52 }
 0x14a   : > { %v4642_v0 = vpop.eup %4641 }
 0x14b   : > { %v1681_v43 = vmul.f32 %v4642_v0, %v1609_v59  ;;  %vm1687_vm4 = vweird.f32 %v4642_v0  ;;  %v4593_v59 = vld [vmem:[%s7221_s14] ss:$0 sm:$0xff] }
 0x14c   : > { %vm1688_vm6 = vmor %vm1686_vm3, %vm1687_vm4 }
 0x14d   : > { %1290 = vmatmul.bf16.gmra.mxu1 %v5935_v44  ;;  %v1600_v44 = vmul.f32 %v1591_v18, %v5681_v61  ;;  %v1682_v34 = vmul.f32 %v4642_v0, %v1681_v43 }
 0x14f   : > { %v1608_v22 = vadd.f32 1e-06, %v1600_v44  ;;  %1796 = vmatmul.bf16.gmra.mxu3 %v1708_v12  ;;  %v1683_v57 = vmul.f32 0.5, %v1682_v34 }
 0x151   : > { %4643 = vrsqrt.f32 %v1608_v22  ;;  %v1684_v16 = vsub.f32 1.5, %v1683_v57  ;;  %vm1676_vm5 = vweird.f32 %v1608_v22 }
 0x153   : > { %v1685_v5 = vmul.f32 %v4642_v0, %v1684_v16 }
 0x155   : > { %1193 = vmatmul.bf16.gmra.mxu0 %v6241_v11  ;;  %v1689_v10 = vsel %vm1688_vm6, %v4642_v0, %v1685_v5 }
 0x156   : > { %v1697_v40 = vmul.f32 %v1689_v10, %v5666_v54  ;;  %v6266_v54 = vld [vmem:[%s7220_s24] ss:$0 sm:$0xff] }
 0x157   : > { %v4644_v15 = vpop.eup %4643 }
 0x158   : > { %v1671_v24 = vmul.f32 %v4644_v15, %v1608_v22  ;;  %vm1677_vm7 = vweird.f32 %v4644_v15  ;;  %v1705_v32 = vmul.f32 %v5751_v27, %v1697_v40 }
 0x159   : > { %vm1678_vm8 = vmor %vm1676_vm5, %vm1677_vm7 }
 0x15a   : > { %v1672_v53 = vmul.f32 %v4644_v15, %v1671_v24 }
 0x15c   : > { %v1673_v25 = vmul.f32 0.5, %v1672_v53 }
 0x15d   : > { %1295 = vmatmul.bf16.gmra.mxu1 %v6064_v60 }
 0x15e   : > { %v1674_v26 = vsub.f32 1.5, %v1673_v25 }
 0x160   : > { %v1675_v60 = vmul.f32 %v4644_v15, %v1674_v26 }
 0x162   : > { %v1679_v39 = vsel %vm1678_vm8, %v4644_v15, %v1675_v60 }
 0x163   : > { %v1696_v37 = vmul.f32 %v1679_v39, %v5669_v55  ;;  %v1835_v55 = vld [vmem:[#allocation7 + $0x60] sm:$0xff] }
 0x164   : > { %1842 = vmatpush.msrb.mxu3 %v1835_v55 }
 0x165   : > { %v1704_v36 = vmul.f32 %v5751_v27, %v1696_v37 }
 0x166   : > { %1843 = vmatpush.msrb.mxu3 %v1834_v1 }
 0x167   : > { %v1709_v14 = vpack.c.bf16 %v1705_v32, %v1704_v36 }
 0x168   : > { %1844 = vmatpush.msrb.mxu3 %v1833_v50 }
 0x169   : > { %1801 = vmatmul.bf16.gmra.mxu3 %v1709_v14 }
 0x16a   : > { %1845 = vmatpush.msrb.mxu3 %v1832_v13 }
 0x16c   : > { %1846 = vmatpush.msrb.mxu3 %v1831_v49 }
 0x16d   : > { %1300 = vmatmul.bf16.gmra.mxu1 %v6163_v29 }
 0x17d   : > { %1305 = vmatmul.bf16.gmra.mxu1 %v6208_v3  ;;  %v1830_v3 = vld [vmem:[#allocation7 + $0x38] sm:$0xff] }
 0x17e   : > { %1847 = vmatpush.msrb.mxu3 %v1830_v3 }
 0x180   : > { %1848 = vmatpush.msrb.mxu3 %v1829_v62 }
 0x182   : > { %v1169_v27 = vpop.f32.mrf.mxu0  ;;  %1849 = vmatpush.msrb.mxu3 %v1828_v41 }
 0x183   : > { %v6269_v29 = vadd.f32 %v6266_v54, %v1169_v27 }
 0x184   : > { %1850 = vmatpush.msrb.mxu3 %v1827_v51  ;;  %v1326_v51 = vld [vmem:[%s7222_s6] sm:$0xff] }
 0x185   : > { %4018 = vmatmul.msk.f32.vlgmr.msra.gmra.mxu2 %vm1366_vm9, %v6269_v29 }
 0x186   : > { %1851 = vmatpush.msrb.mxu3 %v1826_v31 }
 0x188   : > { %1852 = vmatpush.msrb.mxu3 %v1825_v28  ;;  %v1342_v28 = vmul.f32 %v1326_v51, %v6269_v29  ;;  %v1328_v29 = vld [vmem:[%s7222_s6 + $0x10] sm:$0xff] }
 0x18a   : > { %v1171_v9 = vpop.f32.mrf.mxu0  ;;  %1853 = vmatpush.msrb.mxu3 %v1824_v2 }
 0x18b   : > { %v6274_v58 = vadd.f32 %v6266_v54, %v1171_v9 }
 0x18c   : > { %1854 = vmatpush.msrb.mxu3 %v1823_v8 }
 0x18d   : > { %4019 = vmatmul.msk.f32.gmra.mxu2 %vm1366_vm9, %v6274_v58  ;;  %1310 = vmatmul.bf16.gmra.mxu1 %v6241_v11 }
 0x192   : > { %v1174_v45 = vpop.f32.mrf.mxu0 }
 0x193   : > { %v6280_v6 = vadd.f32 %v6266_v54, %v1174_v45  ;;  %v1480_v45 = vld [vmem:[%s7223_s17] sm:$0xff] }
 0x195   : > { %4020 = vmatmul.msk.f32.gmra.mxu2 %vm1366_vm9, %v6280_v6 }
 0x19a   : > { %v1176_v35 = vpop.f32.mrf.mxu0  ;;  %v1199_v38 = vpop.f32.mrf.mxu1 }
 0x19b   : > { %v6285_v56 = vadd.f32 %v6266_v54, %v1176_v35  ;;  %v6363_v19 = vadd.f32 %v6266_v54, %v1199_v38  ;;  %v1327_v35 = vld [vmem:[%s7222_s6 + $0x8] sm:$0xff] }
 0x19c   : > { %v1481_v38 = vld [vmem:[%s7223_s17 + $0x8] sm:$0xff] }
 0x19d   : > { %4021 = vmatmul.msk.f32.gmra.mxu2 %vm1366_vm9, %v6285_v56  ;;  %1315 = vmatmul.bf16.gmra.mxu1 %v6019_v33 }
 0x1a2   : > { %v1179_v42 = vpop.f32.mrf.mxu0  ;;  %v1201_v18 = vpop.f32.mrf.mxu1 }
 0x1a3   : > { %v6291_v4 = vadd.f32 %v6266_v54, %v1179_v42  ;;  %v6370_v7 = vadd.f32 %v6266_v54, %v1201_v18  ;;  %v1343_v18 = vmul.f32 %v1327_v35, %v6274_v58 }
 0x1a5   : > { %4022 = vmatmul.msk.f32.gmra.mxu2 %vm1366_vm9, %v6291_v4 }
 0x1aa   : > { %v1181_v20 = vpop.f32.mrf.mxu0  ;;  %v1204_v17 = vpop.f32.mrf.mxu1 }
 0x1ab   : > { %v6296_v12 = vadd.f32 %v6266_v54, %v1181_v20  ;;  %v6380_v50 = vadd.f32 %v6266_v54, %v1204_v17 }
 0x1ad   : > { %4023 = vmatmul.msk.f32.gmra.mxu2 %vm1366_vm9, %v6296_v12  ;;  %1320 = vmatmul.bf16.gmra.mxu1 %v6117_v48 }
 0x1b2   : > { %v1184_v44 = vpop.f32.mrf.mxu0  ;;  %v1206_v46 = vpop.f32.mrf.mxu1 }
 0x1b3   : > { %v6302_v33 = vadd.f32 %v6266_v54, %v1184_v44  ;;  %v1787_v22 = vpop.f32.mrf.mxu3  ;;  %v6390_v3 = vadd.f32 %v6266_v54, %v1206_v46 }
 0x1b4   : > { %v6309_v63 = vadd.f32 %v4593_v59, %v1787_v22  ;;  %v1482_v22 = vld [vmem:[%s7223_s17 + $0x10] sm:$0xff] }
 0x1b5   : > { %4024 = vmatmul.msk.f32.gmra.mxu2 %vm1366_vm9, %v6302_v33 }
 0x1b6   : > { %1855 = vmatmul.f32.vlgmr.msrb.gmra.mxu3 %v6309_v63 }
 0x1ba   : > { %v1186_v11 = vpop.f32.mrf.mxu0  ;;  %v6315_v0 = vpop.f32.mrf.mxu1 }
 0x1bb   : > { %v6313_v48 = vadd.f32 %v6266_v54, %v1186_v11  ;;  %v1789_v15 = vpop.f32.mrf.mxu3 }
 0x1bc   : > { %v6319_v43 = vadd.f32 %v4593_v59, %v1789_v15 }
 0x1bd   : > { %4025 = vmatmul.msk.f32.gmra.mxu2 %vm1366_vm9, %v6313_v48 }
 0x1be   : > { %1858 = vmatmul.f32.gmra.mxu3 %v6319_v43 }
 0x1c2   : > { %v1189_v24 = vpop.f32.mrf.mxu0  ;;  %v6325_v53 = vpop.f32.mrf.mxu1 }
 0x1c3   : > { %v6323_v34 = vadd.f32 %v6266_v54, %v1189_v24  ;;  %v1792_v23 = vpop.f32.mrf.mxu3 }
 0x1c4   : > { %v6329_v47 = vadd.f32 %v4593_v59, %v1792_v23  ;;  %v1344_v23 = vmul.f32 %v1328_v29, %v6280_v6  ;;  %v1485_v29 = vld [vmem:[%s7223_s17 + $0x28] sm:$0xff] }
 0x1c5   : > { %4026 = vmatmul.msk.f32.gmra.mxu2 %vm1366_vm9, %v6323_v34 }
 0x1c6   : > { %1861 = vmatmul.f32.gmra.mxu3 %v6329_v47 }
 0x1ca   : > { %v1191_v57 = vpop.f32.mrf.mxu0  ;;  %v6335_v16 = vpop.f32.mrf.mxu1 }
 0x1cb   : > { %v6333_v25 = vadd.f32 %v6266_v54, %v1191_v57  ;;  %v1794_v26 = vpop.f32.mrf.mxu3 }
 0x1cc   : > { %v6339_v5 = vadd.f32 %v4593_v59, %v1794_v26 }
 0x1cd   : > { %4027 = vmatmul.msk.f32.gmra.mxu2 %vm1366_vm9, %v6333_v25 }
 0x1ce   : > { %1864 = vmatmul.f32.gmra.mxu3 %v6339_v5 }
 0x1d2   : > { %v1194_v60 = vpop.f32.mrf.mxu0  ;;  %v6345_v30 = vpop.f32.mrf.mxu1 }
 0x1d3   : > { %v6343_v10 = vadd.f32 %v6266_v54, %v1194_v60  ;;  %v1797_v52 = vpop.f32.mrf.mxu3 }
 0x1d4   : > { %v6349_v39 = vadd.f32 %v4593_v59, %v1797_v52  ;;  %v1329_v52 = vld [vmem:[%s7222_s6 + $0x18] sm:$0xff] }
 0x1d5   : > { %4028 = vmatmul.msk.f32.gmra.mxu2 %vm1366_vm9, %v6343_v10 }
 0x1d6   : > { %1867 = vmatmul.f32.gmra.mxu3 %v6349_v39 }
 0x1da   : > { %v1196_v40 = vpop.f32.mrf.mxu0  ;;  %v6355_v32 = vpop.f32.mrf.mxu1 }
 0x1db   : > { %v6353_v37 = vadd.f32 %v6266_v54, %v1196_v40  ;;  %v1799_v36 = vpop.f32.mrf.mxu3  ;;  %v1483_v40 = vld [vmem:[%s7223_s17 + $0x18] sm:$0xff] }
 0x1dc   : > { %v6359_v14 = vadd.f32 %v4593_v59, %v1799_v36 }
 0x1dd   : > { %4029 = vmatmul.msk.f32.gmra.mxu2 %vm1366_vm9, %v6353_v37 }
 0x1de   : > { %1870 = vmatmul.f32.gmra.mxu3 %v6359_v14 }
 0x1e2   : > { %v6365_v21 = vpop.f32.mrf.mxu1 }
 0x1e5   : > { %4030 = vmatmul.msk.f32.gmra.mxu2 %vm1366_vm9, %v6363_v19 }
 0x1ea   : > { %v6372_v55 = vpop.f32.mrf.mxu1 }
 0x1ec   : > { %v1802_v27 = vpop.f32.mrf.mxu3 }
 0x1ed   : > { %4031 = vmatmul.msk.f32.gmra.mxu2 %vm1366_vm9, %v6370_v7  ;;  %v6376_v1 = vadd.f32 %v4593_v59, %v1802_v27  ;;  %v1345_v27 = vmul.f32 %v1329_v52, %v6285_v56 }
 0x1ef   : > { %1873 = vmatmul.f32.gmra.mxu3 %v6376_v1 }
 0x1f2   : > { %v6382_v13 = vpop.f32.mrf.mxu1 }
 0x1f4   : > { %v1804_v49 = vpop.f32.mrf.mxu3 }
 0x1f5   : > { %4032 = vmatmul.msk.f32.gmra.mxu2 %vm1366_vm9, %v6380_v50  ;;  %v6386_v9 = vadd.f32 %v4593_v59, %v1804_v49 }
 0x1f7   : > { %1876 = vmatmul.f32.gmra.mxu3 %v6386_v9 }
 0x1fa   : > { %v6392_v62 = vpop.f32.mrf.mxu1 }
 0x1fd   : > { %4033 = vmatmul.msk.f32.gmra.mxu2 %vm1366_vm9, %v6390_v3 }
 0x202   : > { %v6396_v41 = vpop.f32.mrf.mxu1 }
 0x208   : > { %v1432_v31 = vpop.f32.mrf.mxu2 }
 0x209   : > { %v1496_v54 = vmul.f32 %v1480_v45, %v1432_v31 }
 0x20a   : > { %v1311_v8 = vpop.f32.mrf.mxu1 }
 0x20b   : > { %v1512_v2 = vadd.f32 %v1496_v54, %v1342_v28  ;;  %v1330_v28 = vld [vmem:[%s7222_s6 + $0x20] sm:$0xff] }
 0x20c   : > { %v1484_v54 = vld [vmem:[%s7223_s17 + $0x20] sm:$0xff] }
 0x20d   : > { %v1528_v17 = vpack.c.bf16 %v1512_v2, %v1512_v2 }
 0x20f   : > { %v1924_v11 = vunpack.c.l.b16 %v1528_v17 }
 0x210   : > { %v1435_v42 = vpop.f32.mrf.mxu2 }
 0x211   : > { %v1497_v20 = vmul.f32 %v1481_v38, %v1435_v42  ;;  %v1346_v42 = vmul.f32 %v1330_v28, %v6291_v4 }
 0x212   : > { %v1313_v46 = vpop.f32.mrf.mxu1 }
 0x213   : > { %v1513_v44 = vadd.f32 %v1497_v20, %v1343_v18 }
 0x215   : > { %v1529_v59 = vpack.c.bf16 %v1513_v44, %v1513_v44  ;;  %v1331_v44 = vld [vmem:[%s7222_s6 + $0x28] sm:$0xff] }
 0x217   : > { %v1925_v15 = vunpack.c.l.b16 %v1529_v59  ;;  %v6443_v59 = vld [vmem:[%s7224_s9] ss:$0 sm:$0xff]  ;;  %s4324_s9 = sshll.u32 %s7179_s26, 3  ;;  %s3740_s26 = scalar_lea.sflag [#allocation4], %s773_s12 }
 0x218   : > { %v1438_v24 = vpop.f32.mrf.mxu2 }
 0x219   : > { %v1498_v57 = vmul.f32 %v1482_v22, %v1438_v24  ;;  %v6419_v58 = vpack.c.b16 %v1925_v15, %v1924_v11  ;;  %v1347_v11 = vmul.f32 %v1331_v44, %v6296_v12 }
 0x21a   : > { %v1316_v60 = vpop.f32.mrf.mxu1 }
 0x21b   : > { %v1514_v26 = vadd.f32 %v1498_v57, %v1344_v23  ;;  %v1317_v52 = vadd.f32 %v6443_v59, %v1316_v60  ;;  %v1312_v60 = vadd.f32 %v6443_v59, %v1311_v8  ;;  %v1307_v8 = vadd.f32 %v6443_v59, %v6392_v62 }
 0x21d   : > { %v1530_v51 = vpack.c.bf16 %v1514_v26, %v1514_v26 }
 0x21f   : > { %v1926_v2 = vunpack.c.l.b16 %v1530_v51  ;;  %v1314_v51 = vadd.f32 %v6443_v59, %v1313_v46  ;;  %v1309_v46 = vadd.f32 %v6443_v59, %v6396_v41  ;;  %v1333_v41 = vld [vmem:[%s7222_s6 + $0x38] sm:$0xff] }
 0x220   : > { %v1441_v36 = vpop.f32.mrf.mxu2 }
 0x221   : > { %v1499_v49 = vmul.f32 %v1483_v40, %v1441_v36 }
 0x222   : > { %v1318_v6 = vpop.f32.mrf.mxu1 }
 0x223   : > { %v1515_v45 = vadd.f32 %v1499_v49, %v1345_v27  ;;  %v1319_v24 = vadd.f32 %v6443_v59, %v1318_v6  ;;  %v1332_v49 = vld [vmem:[%s7222_s6 + $0x30] sm:$0xff] }
 0x224   : > { %v1486_v6 = vld [vmem:[%s7223_s17 + $0x30] sm:$0xff] }
 0x225   : > { %v1531_v31 = vpack.c.bf16 %v1515_v45, %v1515_v45  ;;  %v1557_v45 = vpack.c.bf16 %v1319_v24, %v1319_v24  ;;  %v1553_v24 = vpack.c.bf16 %v1309_v46, %v1309_v46 }
 0x227   : > { %v1927_v35 = vunpack.c.l.b16 %v1531_v31  ;;  %v2103_v44 = vunpack.c.l.b16 %v1557_v45  ;;  %v1299_v45 = vadd.f32 %v6443_v59, %v6365_v21 }
 0x228   : > { %v1444_v38 = vpop.f32.mrf.mxu2 }
 0x229   : > { %v1500_v18 = vmul.f32 %v1484_v54, %v1444_v38  ;;  %v6435_v56 = vpack.c.b16 %v1927_v35, %v1926_v2  ;;  %v1556_v54 = vpack.c.bf16 %v1317_v52, %v1317_v52  ;;  %v1552_v52 = vpack.c.bf16 %v1307_v8, %v1307_v8 }
 0x22a   : > { %v1321_v17 = vpop.f32.mrf.mxu1 }
 0x22b   : > { %v1516_v20 = vadd.f32 %v1500_v18, %v1346_v42  ;;  %v1322_v4 = vadd.f32 %v6443_v59, %v1321_v17  ;;  %v1348_v42 = vmul.f32 %v1332_v49, %v6302_v33  ;;  %v1555_v17 = vpack.c.bf16 %v1314_v51, %v1314_v51  ;;  %v1807_v51 = vld [vmem:[%s5504_s28] sm:$0xff] }
 0x22c   : > { %v1815_v21 = vmul.f32 %v1807_v51, %v6309_v63  ;;  %v1287_v51 = vadd.f32 %v6443_v59, %v6315_v0  ;;  %v1489_v0 = vld [vmem:[%s7223_s17 + $0x48] sm:$0xff] }
 0x22d   : > { %v1532_v23 = vpack.c.bf16 %v1516_v20, %v1516_v20  ;;  %v1558_v40 = vpack.c.bf16 %v1322_v4, %v1322_v4 }
 0x22f   : > { %v1928_v31 = vunpack.c.l.b16 %v1532_v23  ;;  %v2104_v2 = vunpack.c.l.b16 %v1558_v40  ;;  %v2101_v23 = vunpack.c.l.b16 %v1555_v17 }
 0x230   : > { %v1447_v22 = vpop.f32.mrf.mxu2 }
 0x231   : > { %v1501_v15 = vmul.f32 %v1485_v29, %v1447_v22  ;;  %v1554_v22 = vpack.c.bf16 %v1312_v60, %v1312_v60 }
 0x232   : > { %v1323_v26 = vpop.f32.mrf.mxu1 }
 0x233   : > { %v1517_v57 = vadd.f32 %v1501_v15, %v1347_v11  ;;  %v1324_v36 = vadd.f32 %v6443_v59, %v1323_v26  ;;  %v2102_v11 = vunpack.c.l.b16 %v1556_v54  ;;  %v1304_v15 = vadd.f32 %v6443_v59, %v6382_v13 }
 0x234   : > { %v1302_v26 = vadd.f32 %v6443_v59, %v6372_v55  ;;  %v2100_v40 = vunpack.c.l.b16 %v1554_v22  ;;  %v1881_v55 = vld [vmem:[%s5511_s22 + $0x8] sm:$0xff] }
 0x235   : > { %v1533_v27 = vpack.c.bf16 %v1517_v57, %v1517_v57  ;;  %v1559_v12 = vpack.c.bf16 %v1324_v36, %v1324_v36  ;;  %v6477_v62 = vpack.c.b16 %v2103_v44, %v2102_v11  ;;  %v1487_v57 = vld [vmem:[%s7223_s17 + $0x38] sm:$0xff]  ;;  %v1880_v36 = vld [vmem:[%s5511_s22] sm:$0xff] }
 0x236   : > { %v1334_v44 = vld [vmem:[%s7222_s6 + $0x40] sm:$0xff] }
 0x237   : > { %v1929_v28 = vunpack.c.l.b16 %v1533_v27  ;;  %v2105_v35 = vunpack.c.l.b16 %v1559_v12  ;;  %v1349_v27 = vmul.f32 %v1333_v41, %v6313_v48  ;;  %v1808_v12 = vld [vmem:[%s5504_s28 + $0x8] sm:$0xff]  ;;  %v1488_v11 = vld [vmem:[%s7223_s17 + $0x40] sm:$0xff] }
 0x238   : > { %v1450_v38 = vpop.f32.mrf.mxu2 }
 0x239   : > { %v1502_v18 = vmul.f32 %v1486_v6, %v1450_v38  ;;  %v6462_v20 = vpack.c.b16 %v1929_v28, %v1928_v31  ;;  %v6466_v29 = vpack.c.b16 %v2105_v35, %v2104_v2  ;;  %v1856_v33 = vpop.f32.mrf.mxu3  ;;  %v1551_v6 = vpack.c.bf16 %v1304_v15, %v1304_v15 }
 0x23a   : > { %v2099_v31 = vunpack.c.l.b16 %v1553_v24  ;;  %v6492_v28 = vpack.c.b16 %v2101_v23, %v2100_v40  ;;  %v1888_v2 = vmul.f32 %v1880_v36, %v1856_v33  ;;  %v1297_v35 = vadd.f32 %v6443_v59, %v6355_v32 }
 0x23b   : > { %v1518_v4 = vadd.f32 %v1502_v18, %v1348_v42  ;;  %2122 = vmatpush.bf16.msrb.mxu0 %v6466_v29  ;;  %2288 = vmatpush.bf16.msra.mxu3 %v6466_v29  ;;  %v1550_v38 = vpack.c.bf16 %v1302_v26, %v1302_v26  ;;  %v2098_v42 = vunpack.c.l.b16 %v1552_v52  ;;  %v1816_v18 = vmul.f32 %v1808_v12, %v6319_v43 }
 0x23c   : > { %v1294_v32 = vadd.f32 %v6443_v59, %v6345_v30  ;;  %v2097_v8 = vunpack.c.l.b16 %v1551_v6  ;;  %v1896_v33 = vadd.f32 %v1888_v2, %v1815_v21  ;;  %v1292_v15 = vadd.f32 %v6443_v59, %v6335_v16  ;;  %v1882_v2 = vld [vmem:[%s5511_s22 + $0x10] sm:$0xff]  ;;  %v1810_v21 = vld [vmem:[%s5504_s28 + $0x18] sm:$0xff] }
 0x23d   : > { %v1534_v60 = vpack.c.bf16 %v1518_v4, %v1518_v4  ;;  %v1549_v4 = vpack.c.bf16 %v1299_v45, %v1299_v45  ;;  %v6506_v22 = vpack.c.b16 %v2099_v31, %v2098_v42  ;;  %v1548_v24 = vpack.c.bf16 %v1297_v35, %v1297_v35 }
 0x23e   : > { %v2096_v23 = vunpack.c.l.b16 %v1550_v38  ;;  %v1547_v36 = vpack.c.bf16 %v1294_v32, %v1294_v32  ;;  %v1546_v45 = vpack.c.bf16 %v1292_v15, %v1292_v15 }
 0x23f   : > { %2123 = vmatpush.bf16.msrb.mxu0 %v6477_v62  ;;  %2289 = vmatpush.bf16.msra.mxu3 %v6477_v62  ;;  %v1930_v63 = vunpack.c.l.b16 %v1534_v60  ;;  %v2094_v12 = vunpack.c.l.b16 %v1548_v24 }
 0x240   : > { %v1453_v13 = vpop.f32.mrf.mxu2  ;;  %v6522_v16 = vpack.c.b16 %v2097_v8, %v2096_v23  ;;  %v2093_v31 = vunpack.c.l.b16 %v1547_v36  ;;  %v2092_v60 = vunpack.c.l.b16 %v1546_v45 }
 0x241   : > { %v1503_v49 = vmul.f32 %v1487_v57, %v1453_v13  ;;  %v1859_v48 = vpop.f32.mrf.mxu3  ;;  %v1350_v57 = vmul.f32 %v1334_v44, %v6323_v34  ;;  %v1289_v13 = vadd.f32 %v6443_v59, %v6325_v53  ;;  %v1335_v53 = vld [vmem:[%s7222_s6 + $0x48] sm:$0xff]  ;;  %v1544_v59 = vpack.c.bf16 %v1287_v51, %v1287_v51  ;;  %v1491_v51 = vld [vmem:[%s7223_s17 + $0x58] sm:$0xff] }
 0x242   : > { %v1889_v17 = vmul.f32 %v1881_v55, %v1859_v48  ;;  %v1351_v35 = vmul.f32 %v1335_v53, %v6333_v25  ;;  %v1809_v48 = vld [vmem:[%s5504_s28 + $0x10] sm:$0xff]  ;;  %v1818_v25 = vmul.f32 %v1810_v21, %v6339_v5 }
 0x243   : > { %v1519_v54 = vadd.f32 %v1503_v49, %v1349_v27  ;;  %2124 = vmatpush.bf16.msrb.mxu0 %v6492_v28  ;;  %2290 = vmatpush.bf16.msra.mxu3 %v6492_v28  ;;  %v2095_v27 = vunpack.c.l.b16 %v1549_v4  ;;  %v1545_v6 = vpack.c.bf16 %v1289_v13, %v1289_v13  ;;  %v2090_v4 = vunpack.c.l.b16 %v1544_v59  ;;  %v1885_v59 = vld [vmem:[%s5511_s22 + $0x28] sm:$0xff] }
 0x244   : > { %v1897_v43 = vadd.f32 %v1889_v17, %v1816_v18  ;;  %v6542_v18 = vpack.c.b16 %v2093_v31, %v2092_v60  ;;  %v1811_v31 = vld [vmem:[%s5504_s28 + $0x20] sm:$0xff] }
 0x245   : > { %v1535_v46 = vpack.c.bf16 %v1519_v54, %v1519_v54  ;;  %v6531_v55 = vpack.c.b16 %v2095_v27, %v2094_v12  ;;  %v2091_v42 = vunpack.c.l.b16 %v1545_v6 }
 0x246   : > { %v6516_v52 = vpack.c.bf16 %v1897_v43, %v1896_v33 }
 0x247   : > { %v1931_v41 = vunpack.c.l.b16 %v1535_v46  ;;  %2125 = vmatpush.bf16.msrb.mxu0 %v6506_v22  ;;  %2291 = vmatpush.bf16.msra.mxu3 %v6506_v22  ;;  %v1883_v46 = vld [vmem:[%s5511_s22 + $0x18] sm:$0xff]  ;;  %v6549_v43 = vpack.c.b16 %v2091_v42, %v2090_v4 }
 0x248   : > { %v1456_v30 = vpop.f32.mrf.mxu2 }
 0x249   : > { %v1504_v26 = vmul.f32 %v1488_v11, %v1456_v30  ;;  %v6518_v40 = vpack.c.b16 %v1931_v41, %v1930_v63  ;;  %v1862_v34 = vpop.f32.mrf.mxu3  ;;  %v1817_v11 = vmul.f32 %v1809_v48, %v6329_v47  ;;  %v1490_v47 = vld [vmem:[%s7223_s17 + $0x50] sm:$0xff] }
 0x24a   : > { %v1890_v32 = vmul.f32 %v1882_v2, %v1862_v34  ;;  %v1884_v34 = vld [vmem:[%s5511_s22 + $0x20] sm:$0xff] }
 0x24b   : > { %v1520_v49 = vadd.f32 %v1504_v26, %v1350_v57  ;;  %2126 = vmatpush.bf16.msrb.mxu0 %v6522_v16  ;;  %2292 = vmatpush.bf16.msra.mxu3 %v6522_v16  ;;  %v1336_v26 = vld [vmem:[%s7222_s6 + $0x50] sm:$0xff] }
 0x24c   : > { %v1898_v15 = vadd.f32 %v1890_v32, %v1817_v11  ;;  %v1352_v27 = vmul.f32 %v1336_v26, %v6343_v10 }
 0x24d   : > { %v1536_v17 = vpack.c.bf16 %v1520_v49, %v1520_v49  ;;  %v1337_v49 = vld [vmem:[%s7222_s6 + $0x58] sm:$0xff] }
 0x24e   : > { %v1353_v6 = vmul.f32 %v1337_v49, %v6353_v37  ;;  %v1495_v49 = vld [vmem:[%s7223_s17 + $0x78] sm:$0xff] }
 0x24f   : > { %2127 = vmatpush.bf16.msrb.mxu0 %v6531_v55  ;;  %2293 = vmatpush.bf16.msra.mxu3 %v6531_v55  ;;  %v1932_v41 = vunpack.c.l.b16 %v1536_v17 }
 0x250   : > { %v1459_v54 = vpop.f32.mrf.mxu2 }
 0x251   : > { %v1505_v38 = vmul.f32 %v1489_v0, %v1459_v54  ;;  %v1865_v8 = vpop.f32.mrf.mxu3  ;;  %v1812_v0 = vld [vmem:[%s5504_s28 + $0x28] sm:$0xff] }
 0x252   : > { %v1891_v33 = vmul.f32 %v1883_v46, %v1865_v8 }
 0x253   : > { %v1521_v44 = vadd.f32 %v1505_v38, %v1351_v35  ;;  %2128 = vmatpush.bf16.msrb.mxu0 %v6542_v18  ;;  %2294 = vmatpush.bf16.msra.mxu3 %v6542_v18  ;;  %v1819_v35 = vmul.f32 %v1811_v31, %v6349_v39  ;;  %v1820_v38 = vmul.f32 %v1812_v0, %v6359_v14  ;;  %v1494_v14 = vld [vmem:[%s7223_s17 + $0x70] sm:$0xff] }
 0x254   : > { %v1899_v24 = vadd.f32 %v1891_v33, %v1818_v25  ;;  %v1813_v25 = vld [vmem:[%s5504_s28 + $0x30] sm:$0xff] }
 0x255   : > { %v1537_v63 = vpack.c.bf16 %v1521_v44, %v1521_v44  ;;  %v1340_v33 = vld [vmem:[%s7222_s6 + $0x70] sm:$0xff] }
 0x256   : > { %v6556_v5 = vpack.c.bf16 %v1899_v24, %v1898_v15  ;;  %v1886_v24 = vld [vmem:[%s5511_s22 + $0x30] sm:$0xff] }
 0x257   : > { %v1933_v23 = vunpack.c.l.b16 %v1537_v63  ;;  %2129 = vmatpush.bf16.msrb.mxu0 %v6549_v43  ;;  %2295 = vmatpush.bf16.msra.mxu3 %v6549_v43  ;;  %v1814_v63 = vld [vmem:[%s5504_s28 + $0x38] sm:$0xff]  ;;  %s3951_s28 = sshll.u32 %s773_s12, 6 }
 0x258   : > { %v1462_v30 = vpop.f32.mrf.mxu2  ;;  %s7027_s14 = scalar_lea.vmem [#allocation14], %s3951_s28 }
 0x259   : > { %v6558_v57 = vpack.c.b16 %v1933_v23, %v1932_v41  ;;  %v1506_v13 = vmul.f32 %v1490_v47, %v1462_v30  ;;  %v1868_v36 = vpop.f32.mrf.mxu3  ;;  %v1821_v41 = vmul.f32 %v1813_v25, %v6376_v1  ;;  %v1887_v23 = vld [vmem:[%s5511_s22 + $0x38] sm:$0xff]  ;;  %v1822_v30 = vmul.f32 %v1814_v63, %v6386_v9  ;;  %v1493_v47 = vld [vmem:[%s7223_s17 + $0x68] sm:$0xff]  ;;  %v1492_v9 = vld [vmem:[%s7223_s17 + $0x60] sm:$0xff]  ;;  %s4325_s22 = sshll.u32 %s5197_s23, 4 }
 0x25a   : > { %v1892_v10 = vmul.f32 %v1884_v34, %v1868_v36  ;;  %v1356_v36 = vmul.f32 %v1340_v33, %v6380_v50  ;;  %v1341_v1 = vld [vmem:[%s7222_s6 + $0x78] sm:$0xff]  ;;  %v1338_v50 = vld [vmem:[%s7222_s6 + $0x60] sm:$0xff]  ;;  %v1968_v63 = vsel %vm1948_vm10, %v6462_v20, 0  ;;  %v1965_v33 = vsel %vm1948_vm10, %v6435_v56, 0  ;;  %s3751_s4 = sadd.s32 %s4325_s22, %s4324_s9 }
 0x25b   : > { %v1522_v45 = vadd.f32 %v1506_v13, %v1352_v27  ;;  %v1339_v13 = vld [vmem:[%s7222_s6 + $0x68] sm:$0xff]  ;;  %v1357_v0 = vmul.f32 %v1341_v1, %v6390_v3  ;;  %s4326_s13 = sshll.u32 %s3751_s4, 3 }
 0x25c   : > { %v1900_v46 = vadd.f32 %v1892_v10, %v1819_v35  ;;  %v1355_v31 = vmul.f32 %v1339_v13, %v6370_v7  ;;  %v1354_v10 = vmul.f32 %v1338_v50, %v6363_v19 }
 0x25d   : > { %v1538_v60 = vpack.c.bf16 %v1522_v45, %v1522_v45 }
 0x25f   : > { %v1934_v21 = vunpack.c.l.b16 %v1538_v60 }
 0x260   : > { %v1465_v12 = vpop.f32.mrf.mxu2 }
 0x261   : > { %v1507_v53 = vmul.f32 %v1491_v51, %v1465_v12  ;;  %v1871_v2 = vpop.f32.mrf.mxu3 }
 0x262   : > { %v1893_v48 = vmul.f32 %v1885_v59, %v1871_v2 }
 0x263   : > { %v1523_v54 = vadd.f32 %v1507_v53, %v1353_v6 }
 0x264   : > { %v1901_v37 = vadd.f32 %v1893_v48, %v1820_v38 }
 0x265   : > { %v1539_v42 = vpack.c.bf16 %v1523_v54, %v1523_v54 }
 0x266   : > { %v6577_v32 = vpack.c.bf16 %v1901_v37, %v1900_v46 }
 0x267   : > { %v1935_v17 = vunpack.c.l.b16 %v1539_v42 }
 0x268   : > { %v1468_v44 = vpop.f32.mrf.mxu2 }
 0x269   : > { %v6579_v4 = vpack.c.b16 %v1935_v17, %v1934_v21  ;;  %v1508_v59 = vmul.f32 %v1492_v9, %v1468_v44 }
 0x26b   : > { %v1524_v42 = vadd.f32 %v1508_v59, %v1354_v10  ;;  %v1977_v25 = vsel %vm1948_vm10, %v6579_v4, 0 }
 0x26d   : > { %v1540_v17 = vpack.c.bf16 %v1524_v42, %v1524_v42 }
 0x26f   : > { %v1936_v44 = vunpack.c.l.b16 %v1540_v17 }
 0x270   : > { %v1471_v8 = vpop.f32.mrf.mxu2 }
 0x271   : > { %v1509_v12 = vmul.f32 %v1493_v47, %v1471_v8 }
 0x272   : > { %v1874_v11 = vpop.f32.mrf.mxu3 }
 0x273   : > { %v1894_v26 = vmul.f32 %v1886_v24, %v1874_v11  ;;  %v1525_v2 = vadd.f32 %v1509_v12, %v1355_v31 }
 0x275   : > { %v1902_v51 = vadd.f32 %v1894_v26, %v1821_v41  ;;  %v1541_v21 = vpack.c.bf16 %v1525_v2, %v1525_v2  ;;  %v1962_v41 = vsel %vm1948_vm10, %v6419_v58, 0 }
 0x277   : > { %v1937_v3 = vunpack.c.l.b16 %v1541_v21 }
 0x278   : > { %v1474_v39 = vpop.f32.mrf.mxu2 }
 0x279   : > { %v1510_v15 = vmul.f32 %v1494_v14, %v1474_v39  ;;  %v1946_v11 = vpack.c.b16 %v1937_v3, %v1936_v44  ;;  %v1974_v39 = vsel %vm1948_vm10, %v6558_v57, 0  ;;  %v1971_v14 = vsel %vm1948_vm10, %v6518_v40, 0 }
 0x27a   : > { %v1877_v27 = vpop.f32.mrf.mxu3 }
 0x27b   : > { %v1895_v45 = vmul.f32 %v1887_v23, %v1877_v27  ;;  %v1526_v34 = vadd.f32 %v1510_v15, %v1356_v36  ;;  %v1980_v19 = vsel %vm1948_vm10, %v1946_v11, 0 }
 0x27d   : > { %v1903_v53 = vadd.f32 %v1895_v45, %v1822_v30  ;;  %v1542_v35 = vpack.c.bf16 %v1526_v34, %v1526_v34 }
 0x27f   : > { %v6614_v54 = vpack.c.bf16 %v1903_v53, %v1902_v51  ;;  %v1938_v46 = vunpack.c.l.b16 %v1542_v35  ;;  %v4356_v51 = vld [vmem:[#allocation8] sm:$0xff] }
 0x280   : > { %v1477_v6 = vpop.f32.mrf.mxu2 }
 0x281   : > { %v1511_v60 = vmul.f32 %v1495_v49, %v1477_v6 }
 0x283   : > { %v1527_v38 = vadd.f32 %v1511_v60, %v1357_v0 }
 0x285   : > { %v1543_v48 = vpack.c.bf16 %v1527_v38, %v1527_v38 }
 0x287   : > { %v1939_v37 = vunpack.c.l.b16 %v1543_v48 }
 0x289   : > { %v1947_v8 = vpack.c.b16 %v1939_v37, %v1938_v46 }
 0x28b   : > { %v1983_v7 = vsel %vm1948_vm10, %v1947_v8, 0 }
 0x28c   : > { %1985 = vmatpush.bf16.xpose.msrb.mxu2 %v1983_v7  ;;  %2199 = vmatpush.bf16.xpose.msra.mxu1 %v1983_v7 }
 0x294   : > { %1986 = vmatpush.bf16.xpose.msrb.mxu2 %v1980_v19  ;;  %2200 = vmatpush.bf16.xpose.msra.mxu1 %v1980_v19 }
 0x29c   : > { %1987 = vmatpush.bf16.xpose.msrb.mxu2 %v1977_v25  ;;  %2201 = vmatpush.bf16.xpose.msra.mxu1 %v1977_v25 }
 0x2a4   : > { %1988 = vmatpush.bf16.xpose.msrb.mxu2 %v1974_v39  ;;  %2202 = vmatpush.bf16.xpose.msra.mxu1 %v1974_v39 }
 0x2ac   : > { %1989 = vmatpush.bf16.xpose.msrb.mxu2 %v1971_v14  ;;  %2203 = vmatpush.bf16.xpose.msra.mxu1 %v1971_v14 }
 0x2b4   : > { %1990 = vmatpush.bf16.xpose.msrb.mxu2 %v1968_v63  ;;  %2204 = vmatpush.bf16.xpose.msra.mxu1 %v1968_v63 }
 0x2bc   : > { %1991 = vmatpush.bf16.xpose.msrb.mxu2 %v1965_v33  ;;  %2205 = vmatpush.bf16.xpose.msra.mxu1 %v1965_v33 }
 0x2c4   : > { %1992 = vmatpush.bf16.xpose.msrb.mxu2 %v1962_v41  ;;  %2206 = vmatpush.bf16.xpose.msra.mxu1 %v1962_v41 }
 0x2cb   : > { %4067 = vmatmul.msk.bf16.vlgmr.msrb.gmra.mxu2 %vm1948_vm10, %v6516_v52 }
 0x2db   : > { %4068 = vmatmul.msk.bf16.gmra.mxu2 %vm1948_vm10, %v6556_v5 }
 0x2eb   : > { %4069 = vmatmul.msk.bf16.gmra.mxu2 %vm1948_vm10, %v6577_v32 }
 0x2fb   : > { %4070 = vmatmul.msk.bf16.gmra.mxu2 %vm1948_vm10, %v6614_v54 }
 0x34e   : > { %v1994_v15 = vpop.f32.mrf.mxu2 }
 0x34f   : > { %2014 = vmax.xlane.f32.xlu0 %v1994_v15 }
 0x356   : > { %v1996_v24 = vpop.f32.mrf.mxu2 }
 0x357   : > { %2016 = vmax.xlane.f32.xlu1 %v1996_v24 }
 0x35e   : > { %v1999_v23 = vpop.f32.mrf.mxu2 }
 0x35f   : > { %2018 = vmax.xlane.f32.xlu2 %v1999_v23 }
 0x366   : > { %v2001_v30 = vpop.f32.mrf.mxu2 }
 0x367   : > { %2020 = vmax.xlane.f32.xlu0 %v2001_v30 }
 0x36e   : > { %v2004_v47 = vpop.f32.mrf.mxu2 }
 0x36f   : > { %2022 = vmax.xlane.f32.xlu1 %v2004_v47 }
 0x376   : > { %v2006_v26 = vpop.f32.mrf.mxu2 }
 0x377   : > { %2024 = vmax.xlane.f32.xlu2 %v2006_v26 }
 0x37b   : > { %2469 = vrot.lane.b32.xlu0 %v1947_v8, %s5221_s27 }
 0x37e   : > { %v6649_v13 = vpop.f32.mrf.mxu2 }
 0x386   : > { %v6658_v36 = vpop.f32.mrf.mxu2 }
 0x388   : > { %2467 = vrot.lane.b32.xlu1 %v1946_v11, %s5221_s27 }
 0x38f   : > { %2179 = vrot.lane.b32.xlu2 %v6516_v52, %s5221_s27 }
 0x390   : > { %2183 = vrot.lane.b32.xlu1 %v6577_v32, %s5221_s27 }
 0x397   : > { %2181 = vrot.lane.b32.xlu2 %v6556_v5, %s5221_s27 }
 0x39f   : > { %2463 = vrot.lane.b32.xlu2 %v6558_v57, %s5221_s27 }
 0x3a5   : > { %2026 = vmax.xlane.f32.xlu0 %v6649_v13 }
 0x3a7   : > { %2459 = vrot.lane.b32.xlu2 %v6462_v20, %s5221_s27  ;;  %v4357_v20 = vld [vmem:[#allocation8 + $0x8] sm:$0xff] }
 0x3a8   : > { %2424 = vmatpush.bf16.msra.mxu0 %v4357_v20 }
 0x3ac   : > { %2425 = vmatpush.bf16.msra.mxu0 %v4356_v51 }
 0x3af   : > { %2455 = vrot.lane.b32.xlu2 %v6419_v58, %s5221_s27 }
 0x3b7   : > { %2447 = vrot.lane.b32.xlu2 %v6516_v52, %s5222_s8 }
 0x3b9   : > { %2465 = vrot.lane.b32.xlu0 %v6579_v4, %s5221_s27 }
 0x3ba   : > { %2028 = vmax.xlane.f32.xlu1 %v6658_v36 }
 0x3c1   : > { %2461 = vrot.lane.b32.xlu0 %v6518_v40, %s5221_s27 }
 0x3c2   : > { %v2015_v57 = vpop.xlane.xlu0 %2014 }
 0x3c3   : > { %v2030_v27 = vsub.f32 %v1994_v15, %v2015_v57 }
 0x3c5   : > { %v2038_v58 = vmul.f32 1.442695, %v2030_v27 }
 0x3c7   : > { %4645 = vpow2.f32 %v2038_v58 }
 0x3c9   : > { %2457 = vrot.lane.b32.xlu0 %v6435_v56, %s5221_s27 }
 0x3ca   : > { %v2017_v1 = vpop.xlane.xlu1 %2016 }
 0x3cb   : > { %v2031_v9 = vsub.f32 %v1996_v24, %v2017_v1 }
 0x3cd   : > { %v2040_v49 = vmul.f32 1.442695, %v2031_v9  ;;  %v4646_v40 = vpop.eup %4645 }
 0x3cf   : > { %4647 = vpow2.f32 %v2040_v49 }
 0x3d2   : > { %v2019_v4 = vpop.xlane.xlu2 %2018 }
 0x3d3   : > { %v2032_v45 = vsub.f32 %v1999_v23, %v2019_v4  ;;  %2185 = vrot.lane.b32.xlu1 %v6614_v54, %s5221_s27 }
 0x3d5   : > { %v4648_v12 = vpop.eup %4647  ;;  %v2042_v34 = vmul.f32 1.442695, %v2032_v45 }
 0x3d6   : > { %v2070_v50 = vpack.c.bf16 %v4648_v12, %v4646_v40 }
 0x3d7   : > { %4649 = vpow2.f32 %v2042_v34 }
 0x3d8   : > { %2130 = vmatmul.bf16.vlgmr.msrb.gmra.mxu0 %v2070_v50 }
 0x3da   : > { %v2021_v56 = vpop.xlane.xlu0 %2020 }
 0x3db   : > { %v2033_v6 = vsub.f32 %v2001_v30, %v2021_v56 }
 0x3dd   : > { %v2044_v53 = vmul.f32 1.442695, %v2033_v6  ;;  %v4650_v31 = vpop.eup %4649 }
 0x3df   : > { %4651 = vpow2.f32 %v2044_v53 }
 0x3e0   : > { %2058 = vadd.xlane.f32.xlu2 %v4650_v31 }
 0x3e2   : > { %v2023_v0 = vpop.xlane.xlu1 %2022 }
 0x3e3   : > { %v2034_v60 = vsub.f32 %v2004_v47, %v2023_v0 }
 0x3e5   : > { %v4652_v59 = vpop.eup %4651  ;;  %v2046_v2 = vmul.f32 1.442695, %v2034_v60 }
 0x3e6   : > { %v2071_v10 = vpack.c.bf16 %v4652_v59, %v4650_v31 }
 0x3e7   : > { %4653 = vpow2.f32 %v2046_v2 }
 0x3e8   : > { %2135 = vmatmul.bf16.gmra.mxu0 %v2071_v10 }
 0x3ea   : > { %v2025_v35 = vpop.xlane.xlu2 %2024 }
 0x3eb   : > { %v2035_v38 = vsub.f32 %v2006_v26, %v2025_v35 }
 0x3ed   : > { %v2048_v42 = vmul.f32 1.442695, %v2035_v38  ;;  %v2470_v48 = vpop.permute.xlu0 %2469  ;;  %v4654_v37 = vpop.eup %4653 }
 0x3ee   : > { %v2505_v21 = vsel %vm1948_vm10, %v2470_v48, 0 }
 0x3ef   : > { %4655 = vpow2.f32 %v2048_v42  ;;  %2507 = vmatpush.bf16.xpose.msrb.mxu1 %v2505_v21  ;;  %2754 = vmatpush.bf16.xpose.msrb.mxu0 %v2505_v21 }
 0x3f2   : > { %v2180_v46 = vpop.permute.xlu2 %2179 }
 0x3f3   : > { %4071 = vmatmul.msk.bf16.vlgmr.msra.gmra.mxu1 %vm1948_vm10, %v2180_v46  ;;  %2056 = vadd.xlane.f32.xlu0 %v4648_v12 }
 0x3f5   : > { %v4656_v17 = vpop.eup %4655 }
 0x3f6   : > { %2064 = vadd.xlane.f32.xlu2 %v4656_v17  ;;  %v2072_v8 = vpack.c.bf16 %v4656_v17, %v4654_v37 }
 0x3f8   : > { %2140 = vmatmul.bf16.gmra.mxu0 %v2072_v8 }
 0x3fa   : > { %v2468_v7 = vpop.permute.xlu1 %2467  ;;  %v2182_v44 = vpop.permute.xlu2 %2181 }
 0x3fb   : > { %v2502_v3 = vsel %vm1948_vm10, %v2468_v7, 0 }
 0x3fc   : > { %2508 = vmatpush.bf16.xpose.msrb.mxu1 %v2502_v3  ;;  %2755 = vmatpush.bf16.xpose.msrb.mxu0 %v2502_v3 }
 0x3fd   : > { %2054 = vadd.xlane.f32.xlu1 %v4646_v40 }
 0x402   : > { %v2184_v11 = vpop.permute.xlu1 %2183  ;;  %v2464_v23 = vpop.permute.xlu2 %2463 }
 0x403   : > { %4072 = vmatmul.msk.bf16.gmra.mxu1 %vm1948_vm10, %v2182_v44  ;;  %v2496_v30 = vsel %vm1948_vm10, %v2464_v23, 0 }
 0x407   : > { %2449 = vrot.lane.b32.xlu0 %v6556_v5, %s5222_s8 }
 0x413   : > { %4073 = vmatmul.msk.bf16.gmra.mxu1 %vm1948_vm10, %v2184_v11 }
 0x416   : > { %2451 = vrot.lane.b32.xlu1 %v6577_v32, %s5222_s8 }
 0x418   : > { %v2027_v19 = vpop.xlane.xlu0 %2026 }
 0x419   : > { %v2036_v25 = vsub.f32 %v6649_v13, %v2027_v19 }
 0x41b   : > { %v2050_v39 = vmul.f32 1.442695, %v2036_v25 }
 0x41d   : > { %4657 = vpow2.f32 %v2050_v39 }
 0x423   : > { %v4658_v14 = vpop.eup %4657 }
 0x424   : > { %2066 = vadd.xlane.f32.xlu2 %v4658_v14 }
 0x42b   : > { %v2466_v63 = vpop.permute.xlu0 %2465 }
 0x42c   : > { %v2499_v33 = vsel %vm1948_vm10, %v2466_v63, 0 }
 0x42d   : > { %2509 = vmatpush.bf16.xpose.msrb.mxu1 %v2499_v33  ;;  %2756 = vmatpush.bf16.xpose.msrb.mxu0 %v2499_v33  ;;  %v2029_v41 = vpop.xlane.xlu1 %2028 }
 0x42e   : > { %v2037_v15 = vsub.f32 %v6658_v36, %v2029_v41  ;;  %v2460_v36 = vpop.permute.xlu2 %2459 }
 0x42f   : > { %v2490_v27 = vsel %vm1948_vm10, %v2460_v36, 0 }
 0x430   : > { %v2052_v24 = vmul.f32 1.442695, %v2037_v15 }
 0x432   : > { %4659 = vpow2.f32 %v2052_v24 }
 0x433   : > { %v2462_v26 = vpop.permute.xlu0 %2461 }
 0x434   : > { %v2493_v57 = vsel %vm1948_vm10, %v2462_v26, 0 }
 0x435   : > { %2510 = vmatpush.bf16.xpose.msrb.mxu1 %v2496_v30  ;;  %2757 = vmatpush.bf16.xpose.msrb.mxu0 %v2496_v30 }
 0x436   : > { %v2456_v9 = vpop.permute.xlu2 %2455 }
 0x437   : > { %v2484_v49 = vsel %vm1948_vm10, %v2456_v9, 0 }
 0x438   : > { %v4660_v47 = vpop.eup %4659 }
 0x439   : > { %2068 = vadd.xlane.f32.xlu0 %v4660_v47  ;;  %v2073_v13 = vpack.c.bf16 %v4660_v47, %v4658_v14 }
 0x43b   : > { %2145 = vmatmul.bf16.gmra.mxu0 %v2073_v13  ;;  %v2458_v58 = vpop.permute.xlu0 %2457 }
 0x43c   : > { %2453 = vrot.lane.b32.xlu2 %v6614_v54, %s5222_s8  ;;  %v2487_v1 = vsel %vm1948_vm10, %v2458_v58, 0 }
 0x43d   : > { %2511 = vmatpush.bf16.xpose.msrb.mxu1 %v2493_v57  ;;  %2758 = vmatpush.bf16.xpose.msrb.mxu0 %v2493_v57 }
 0x43e   : > { %v2448_v51 = vpop.permute.xlu2 %2447 }
 0x440   : > { %2060 = vadd.xlane.f32.xlu1 %v4652_v59 }
 0x444   : > { %2738 = vrot.lane.b32.xlu2 %v6577_v32, %s5223_s19 }
 0x445   : > { %2512 = vmatpush.bf16.xpose.msrb.mxu1 %v2490_v27  ;;  %2759 = vmatpush.bf16.xpose.msrb.mxu0 %v2490_v27  ;;  %v2186_v20 = vpop.permute.xlu1 %2185 }
 0x446   : > { %4074 = vmatmul.msk.bf16.gmra.mxu1 %vm1948_vm10, %v2186_v20 }
 0x448   : > { %2062 = vadd.xlane.f32.xlu1 %v4654_v37 }
 0x44d   : > { %2513 = vmatpush.bf16.xpose.msrb.mxu1 %v2487_v1  ;;  %2760 = vmatpush.bf16.xpose.msrb.mxu0 %v2487_v1 }
 0x44e   : > { %2740 = vrot.lane.b32.xlu0 %v6614_v54, %s5223_s19 }
 0x453   : > { %v2059_v31 = vpop.xlane.xlu2 %2058 }
 0x455   : > { %2514 = vmatpush.bf16.xpose.msrb.mxu1 %v2484_v49  ;;  %2761 = vmatpush.bf16.xpose.msrb.mxu0 %v2484_v49  ;;  %v2131_v4 = vpop.f32.mrf.mxu0 }
 0x45c   : > { %4099 = vmatmul.msk.bf16.vlgmr.msrb.gmra.mxu1 %vm1948_vm10, %v2448_v51 }
 0x45d   : > { %v2133_v34 = vpop.f32.mrf.mxu0 }
 0x461   : > { %2734 = vrot.lane.b32.xlu1 %v6516_v52, %s5223_s19 }
 0x465   : > { %v2136_v42 = vpop.f32.mrf.mxu0 }
 0x466   : > { %v2057_v32 = vpop.xlane.xlu0 %2056 }
 0x467   : > { %4661 = vrcp.f32 %v2057_v32 }
 0x469   : > { %2736 = vrot.lane.b32.xlu1 %v6556_v5, %s5223_s19  ;;  %v2065_v60 = vpop.xlane.xlu2 %2064  ;;  %s3754_s19 = sshll.u32 %s7027_s14, 4  ;;  %s3755_s19 = int_to_ptr.vmem [resolvable:$true] %s3754_s19 }
 0x46d   : > { %v4662_v54 = vpop.eup %4661  ;;  %v2138_v48 = vpop.f32.mrf.mxu0 }
 0x46e   : > { %v2160_v50 = vmul.f32 %v4662_v54, %v2133_v34 }
 0x470   : > { %v6694_v45 = vpop.f32.mrf.mxu1  ;;  %v2055_v40 = vpop.xlane.xlu1 %2054 }
 0x471   : > { %4663 = vrcp.f32 %v2055_v40 }
 0x472   : > { %4665 = vrcp.f32 %v2059_v31 }
 0x475   : > { %v2141_v37 = vpop.f32.mrf.mxu0 }
 0x477   : > { %v4664_v12 = vpop.eup %4663 }
 0x478   : > { %v2159_v56 = vmul.f32 %v4664_v12, %v2131_v4  ;;  %v6696_v6 = vpop.f32.mrf.mxu1  ;;  %v4666_v21 = vpop.eup %4665 }
 0x479   : > { %2230 = vmax.xlane.f32.xlu2 %v6696_v6  ;;  %v2450_v53 = vpop.permute.xlu0 %2449  ;;  %v2161_v17 = vmul.f32 %v4666_v21, %v2136_v42 }
 0x47a   : > { %v2167_v52 = vpack.c.bf16 %v2160_v50, %v2159_v56  ;;  %4100 = vmatmul.msk.bf16.gmra.mxu1 %vm1948_vm10, %v2450_v53 }
 0x47c   : > { %4095 = vmatmul.msk.bf16.vlgmr.msra.gmra.mxu0 %vm1948_vm10, %v2167_v52 }
 0x480   : > { %v6701_v5 = vpop.f32.mrf.mxu1 }
 0x481   : > { %2232 = vmax.xlane.f32.xlu0 %v6701_v5 }
 0x488   : > { %v6704_v0 = vpop.f32.mrf.mxu1  ;;  %v2452_v59 = vpop.permute.xlu1 %2451 }
 0x48a   : > { %4101 = vmatmul.msk.bf16.gmra.mxu1 %vm1948_vm10, %v2452_v59 }
 0x490   : > { %v6707_v10 = vpop.f32.mrf.mxu1 }
 0x491   : > { %2236 = vmax.xlane.f32.xlu2 %v6707_v10 }
 0x493   : > { %2228 = vmax.xlane.f32.xlu1 %v6694_v45 }
 0x495   : > { %2608 = vrot.lane.b32.xlu0 %v6477_v62, %s5221_s27 }
 0x497   : > { %v2067_v2 = vpop.xlane.xlu2 %2066 }
 0x498   : > { %v6715_v38 = vpop.f32.mrf.mxu1 }
 0x49b   : > { %2234 = vmax.xlane.f32.xlu1 %v6704_v0 }
 0x49f   : > { %v2454_v35 = vpop.permute.xlu2 %2453 }
 0x4a0   : > { %4102 = vmatmul.msk.bf16.gmra.mxu1 %vm1948_vm10, %v2454_v35 }
 0x4a3   : > { %2238 = vmax.xlane.f32.xlu1 %v6715_v38 }
 0x4a7   : > { %v2739_v57 = vpop.permute.xlu2 %2738 }
 0x4a9   : > { %2610 = vrot.lane.b32.xlu2 %v6466_v29, %s5221_s27 }
 0x4ac   : > { %v2069_v63 = vpop.xlane.xlu0 %2068 }
 0x4b1   : > { %2604 = vrot.lane.b32.xlu2 %v6506_v22, %s5221_s27  ;;  %v2143_v22 = vpop.f32.mrf.mxu0 }
 0x4b3   : > { %v2061_v62 = vpop.xlane.xlu1 %2060 }
 0x4b4   : > { %4667 = vrcp.f32 %v2061_v62 }
 0x4b9   : > { %2602 = vrot.lane.b32.xlu2 %v6522_v16, %s5221_s27  ;;  %v2146_v39 = vpop.f32.mrf.mxu0 }
 0x4ba   : > { %v4668_v46 = vpop.eup %4667 }
 0x4bb   : > { %v2162_v8 = vmul.f32 %v4668_v46, %v2138_v48  ;;  %v2063_v7 = vpop.xlane.xlu1 %2062 }
 0x4bc   : > { %4669 = vrcp.f32 %v2063_v7 }
 0x4bd   : > { %v2168_v3 = vpack.c.bf16 %v2162_v8, %v2161_v17  ;;  %4671 = vrcp.f32 %v2065_v60 }
 0x4be   : > { %4673 = vrcp.f32 %v2069_v63 }
 0x4bf   : > { %4096 = vmatmul.msk.bf16.gmra.mxu0 %vm1948_vm10, %v2168_v3  ;;  %4675 = vrcp.f32 %v2067_v2 }
 0x4c1   : > { %v2148_v33 = vpop.f32.mrf.mxu0 }
 0x4c2   : > { %v4670_v44 = vpop.eup %4669 }
 0x4c3   : > { %v6725_v29 = vpop.f32.mrf.mxu1  ;;  %v2163_v11 = vmul.f32 %v4670_v44, %v2141_v37  ;;  %v4672_v19 = vpop.eup %4671 }
 0x4c4   : > { %2240 = vmax.xlane.f32.xlu1 %v6725_v29  ;;  %v2164_v25 = vmul.f32 %v4672_v19, %v2143_v22  ;;  %v4674_v41 = vpop.eup %4673 }
 0x4c5   : > { %v2166_v15 = vmul.f32 %v4674_v41, %v2148_v33  ;;  %v4676_v23 = vpop.eup %4675 }
 0x4c6   : > { %v2169_v14 = vpack.c.bf16 %v2164_v25, %v2163_v11  ;;  %v2165_v30 = vmul.f32 %v4676_v23, %v2146_v39 }
 0x4c8   : > { %v2170_v47 = vpack.c.bf16 %v2166_v15, %v2165_v30 }
 0x4cb   : > { %v6728_v16 = vpop.f32.mrf.mxu1 }
 0x4cc   : > { %2242 = vmax.xlane.f32.xlu1 %v6728_v16 }
 0x4cf   : > { %4097 = vmatmul.msk.bf16.gmra.mxu0 %vm1948_vm10, %v2169_v14 }
 0x4d3   : > { %v2735_v13 = vpop.permute.xlu1 %2734 }
 0x4d9   : > { %v6732_v24 = vpop.f32.mrf.mxu1 }
 0x4da   : > { %2536 = vmax.xlane.f32.xlu0 %v6732_v24 }
 0x4db   : > { %v2737_v20 = vpop.permute.xlu1 %2736 }
 0x4df   : > { %4098 = vmatmul.msk.bf16.gmra.mxu0 %vm1948_vm10, %v2170_v47 }
 0x4e1   : > { %v6736_v26 = vpop.f32.mrf.mxu1 }
 0x4e2   : > { %2538 = vmax.xlane.f32.xlu2 %v6736_v26 }
 0x4e5   : > { %2606 = vrot.lane.b32.xlu1 %v6492_v28, %s5221_s27  ;;  %v2741_v28 = vpop.permute.xlu0 %2740 }
 0x4ec   : > { %v2231_v27 = vpop.xlane.xlu2 %2230 }
 0x4ed   : > { %2600 = vrot.lane.b32.xlu1 %v6531_v55, %s5221_s27  ;;  %v2245_v55 = vsub.f32 %v6696_v6, %v2231_v27 }
 0x4ef   : > { %4115 = vmatmul.msk.bf16.vlgmr.msrb.gmra.mxu0 %vm1948_vm10, %v2735_v13  ;;  %v2254_v9 = vmul.f32 1.442695, %v2245_v55 }
 0x4f1   : > { %4677 = vpow2.f32 %v2254_v9 }
 0x4f4   : > { %v2233_v32 = vpop.xlane.xlu0 %2232 }
 0x4f5   : > { %2598 = vrot.lane.b32.xlu1 %v6542_v18, %s5221_s27  ;;  %v2246_v6 = vsub.f32 %v6701_v5, %v2233_v32 }
 0x4f7   : > { %v6746_v36 = vpop.f32.mrf.mxu1  ;;  %v6762_v12 = vpop.eup %4677  ;;  %v2256_v52 = vmul.f32 1.442695, %v2246_v6 }
 0x4f9   : > { %v6787_v21 = vpop.f32.mrf.mxu0 }
 0x4fd   : > { %2596 = vrot.lane.b32.xlu1 %v6549_v43, %s5221_s27  ;;  %s7226_s27 = sld [smem:[#allocation47_spill]] }
 0x4ff   : > { %v6750_v58 = vpop.f32.mrf.mxu1  ;;  %4116 = vmatmul.msk.bf16.gmra.mxu0 %vm1948_vm10, %v2737_v20 }
 0x500   : > { %2542 = vmax.xlane.f32.xlu0 %v6750_v58 }
 0x501   : > { %v6795_v37 = vpop.f32.mrf.mxu0 }
 0x503   : > { %s3753_s8 = scalar_lea.hbm %s7226_s27, %s4326_s13  ;;  %s5091_s9 = scalar_lea.hbm %s7226_s27, 256 }
 0x504   : > { %v2237_v1 = vpop.xlane.xlu2 %2236  ;;  %s3756_s23 = sshll.u32 %s3753_s8, 4  ;;  %s3757_s23 = int_to_ptr.hbm [resolvable:$true] %s3756_s23 }
 0x505   : > { %v2248_v35 = vsub.f32 %v6707_v10, %v2237_v1 }
 0x506   : > { %v2229_v49 = vpop.xlane.xlu1 %2228 }
 0x507   : > { %v2244_v18 = vsub.f32 %v6694_v45, %v2229_v49  ;;  %v6756_v51 = vpop.f32.mrf.mxu1  ;;  %v2609_v34 = vpop.permute.xlu0 %2608  ;;  %v2260_v62 = vmul.f32 1.442695, %v2248_v35 }
 0x508   : > { %2544 = vmax.xlane.f32.xlu2 %v6756_v51 }
 0x509   : > { %v2252_v43 = vmul.f32 1.442695, %v2244_v18 }
 0x50b   : > { %4679 = vpow2.f32 %v2252_v43 }
 0x50c   : > { %v2611_v4 = vpop.permute.xlu2 %2610 }
 0x50d   : > { %2620 = vmatpush.bf16.msrb.mxu3 %v2611_v4  ;;  %2843 = vmatpush.bf16.msra.mxu1 %v2611_v4 }
 0x50e   : > { %v2235_v40 = vpop.xlane.xlu1 %2234 }
 0x50f   : > { %v6759_v54 = vpop.f32.mrf.mxu1  ;;  %4117 = vmatmul.msk.bf16.gmra.mxu0 %vm1948_vm10, %v2739_v57  ;;  %v2247_v50 = vsub.f32 %v6704_v0, %v2235_v40 }
 0x510   : > { %2546 = vmax.xlane.f32.xlu0 %v6759_v54 }
 0x511   : > { %v6765_v45 = vpop.eup %4679  ;;  %2621 = vmatpush.bf16.msrb.mxu3 %v2609_v34  ;;  %2844 = vmatpush.bf16.msra.mxu1 %v2609_v34  ;;  %v2258_v53 = vmul.f32 1.442695, %v2247_v50 }
 0x512   : > { %v2284_v56 = vpack.c.bf16 %v6762_v12, %v6765_v45 }
 0x513   : > { %4681 = vpow2.f32 %v2258_v53 }
 0x514   : > { %2296 = vmatmul.bf16.vlgmr.msra.gmra.mxu3 %v2284_v56  ;;  %4683 = vpow2.f32 %v2256_v52  ;;  %v2605_v14 = vpop.permute.xlu2 %2604 }
 0x516   : > { %v2239_v59 = vpop.xlane.xlu1 %2238 }
 0x517   : > { %v2249_v2 = vsub.f32 %v6715_v38, %v2239_v59 }
 0x519   : > { %v6774_v60 = vpop.eup %4681  ;;  %v2262_v42 = vmul.f32 1.442695, %v2249_v2 }
 0x51a   : > { %v6777_v0 = vpop.eup %4683 }
 0x51b   : > { %v2285_v5 = vpack.c.bf16 %v6774_v60, %v6777_v0  ;;  %4685 = vpow2.f32 %v2262_v42 }
 0x51c   : > { %4687 = vpow2.f32 %v2260_v62  ;;  %v2603_v41 = vpop.permute.xlu2 %2602 }
 0x51d   : > { %v6771_v31 = vpop.f32.mrf.mxu1 }
 0x51e   : > { %2548 = vmax.xlane.f32.xlu2 %v6771_v31 }
 0x51f   : > { %4118 = vmatmul.msk.bf16.gmra.mxu0 %vm1948_vm10, %v2741_v28 }
 0x521   : > { %v6789_v46 = vpop.eup %4685 }
 0x522   : > { %v6791_v38 = vpop.eup %4687 }
 0x523   : > { %v2286_v10 = vpack.c.bf16 %v6789_v46, %v6791_v38 }
 0x524   : > { %2301 = vmatmul.bf16.gmra.mxu3 %v2285_v5 }
 0x525   : > { %v6783_v48 = vpop.f32.mrf.mxu1 }
 0x526   : > { %2550 = vmax.xlane.f32.xlu0 %v6783_v48 }
 0x527   : > { %2540 = vmax.xlane.f32.xlu1 %v6746_v36 }
 0x534   : > { %2306 = vmatmul.bf16.gmra.mxu3 %v2286_v10 }
 0x537   : > { %v2241_v17 = vpop.xlane.xlu1 %2240 }
 0x538   : > { %v2250_v8 = vsub.f32 %v6725_v29, %v2241_v17 }
 0x53a   : > { %v2264_v3 = vmul.f32 1.442695, %v2250_v8 }
 0x53c   : > { %v6798_v7 = vpop.f32.mrf.mxu0  ;;  %4689 = vpow2.f32 %v2264_v3 }
 0x53f   : > { %v2243_v22 = vpop.xlane.xlu1 %2242 }
 0x540   : > { %v2251_v44 = vsub.f32 %v6728_v16, %v2243_v22 }
 0x542   : > { %v2266_v11 = vmul.f32 1.442695, %v2251_v44  ;;  %v6803_v25 = vpop.eup %4689 }
 0x544   : > { %4691 = vpow2.f32 %v2266_v11  ;;  %v6801_v19 = vpop.f32.mrf.mxu0 }
 0x54a   : > { %v6805_v39 = vpop.eup %4691 }
 0x54b   : > { %v2287_v63 = vpack.c.bf16 %v6805_v39, %v6803_v25 }
 0x54c   : > { %v6809_v29 = vpop.f32.mrf.mxu0 }
 0x54d   : > { %2311 = vmatmul.bf16.gmra.mxu3 %v2287_v63  ;;  %v2537_v30 = vpop.xlane.xlu0 %2536 }
 0x54e   : > { %v2552_v57 = vsub.f32 %v6732_v24, %v2537_v30 }
 0x550   : > { %v2560_v28 = vmul.f32 1.442695, %v2552_v57 }
 0x554   : > { %v6811_v33 = vpop.f32.mrf.mxu0 }
 0x555   : > { %v2539_v23 = vpop.xlane.xlu2 %2538 }
 0x556   : > { %v2553_v13 = vsub.f32 %v6736_v26, %v2539_v23 }
 0x557   : > { %v2607_v16 = vpop.permute.xlu1 %2606 }
 0x558   : > { %2622 = vmatpush.bf16.msrb.mxu3 %v2607_v16  ;;  %2845 = vmatpush.bf16.msra.mxu1 %v2607_v16  ;;  %v2562_v27 = vmul.f32 1.442695, %v2553_v13 }
 0x55a   : > { %4693 = vpow2.f32 %v2562_v27 }
 0x55b   : > { %4695 = vpow2.f32 %v2560_v28 }
 0x55c   : > { %v6813_v15 = vpop.f32.mrf.mxu0  ;;  %2623 = vmatpush.bf16.msrb.mxu3 %v2605_v14  ;;  %2846 = vmatpush.bf16.msra.mxu1 %v2605_v14 }
 0x55f   : > { %v2601_v47 = vpop.permute.xlu1 %2600 }
 0x560   : > { %2624 = vmatpush.bf16.msrb.mxu3 %v2603_v41  ;;  %2847 = vmatpush.bf16.msra.mxu1 %v2603_v41  ;;  %v6822_v26 = vpop.eup %4693 }
 0x561   : > { %v4696_v49 = vpop.eup %4695 }
 0x562   : > { %v2592_v24 = vpack.c.bf16 %v6822_v26, %v4696_v49 }
 0x564   : > { %v6817_v20 = vpop.f32.mrf.mxu0  ;;  %2625 = vmatpush.bf16.msrb.mxu3 %v2601_v47  ;;  %2848 = vmatpush.bf16.msra.mxu1 %v2601_v47 }
 0x567   : > { %v2599_v55 = vpop.permute.xlu1 %2598 }
 0x568   : > { %2626 = vmatpush.bf16.msrb.mxu3 %v2599_v55  ;;  %2849 = vmatpush.bf16.msra.mxu1 %v2599_v55 }
 0x56c   : > { %v6819_v1 = vpop.f32.mrf.mxu0 }
 0x56d   : > { %2783 = vmax.xlane.f32.xlu2 %v6819_v1 }
 0x56f   : > { %v2597_v9 = vpop.permute.xlu1 %2596 }
 0x570   : > { %2627 = vmatpush.bf16.msrb.mxu3 %v2597_v9  ;;  %2850 = vmatpush.bf16.msra.mxu1 %v2597_v9 }
 0x573   : > { %2628 = vmatmul.bf16.vlgmr.msrb.gmra.mxu3 %v2592_v24  ;;  %v2543_v40 = vpop.xlane.xlu0 %2542 }
 0x574   : > { %v6825_v18 = vpop.f32.mrf.mxu0  ;;  %v2555_v50 = vsub.f32 %v6750_v58, %v2543_v40 }
 0x575   : > { %2785 = vmax.xlane.f32.xlu0 %v6825_v18 }
 0x576   : > { %v2566_v56 = vmul.f32 1.442695, %v2555_v50  ;;  %v4359_v50 = vld [vmem:[#allocation8 + $0x18] sm:$0xff] }
 0x577   : > { %2371 = vmatpush.bf16.msra.mxu2 %v4359_v50 }
 0x578   : > { %4697 = vpow2.f32 %v2566_v56 }
 0x57b   : > { %v2545_v52 = vpop.xlane.xlu2 %2544 }
 0x57c   : > { %v6828_v32 = vpop.f32.mrf.mxu0  ;;  %v2556_v5 = vsub.f32 %v6756_v51, %v2545_v52 }
 0x57d   : > { %2787 = vmax.xlane.f32.xlu2 %v6828_v32 }
 0x57e   : > { %v2568_v42 = vmul.f32 1.442695, %v2556_v5  ;;  %v4698_v62 = vpop.eup %4697  ;;  %v4358_v5 = vld [vmem:[#allocation8 + $0x10] sm:$0xff] }
 0x57f   : > { %2372 = vmatpush.bf16.msra.mxu2 %v4358_v5 }
 0x583   : > { %v2547_v35 = vpop.xlane.xlu0 %2546 }
 0x584   : > { %v6831_v43 = vpop.f32.mrf.mxu0 }
 0x585   : > { %2789 = vmax.xlane.f32.xlu0 %v6831_v43 }
 0x58c   : > { %v6834_v4 = vpop.f32.mrf.mxu0 }
 0x58d   : > { %2791 = vmax.xlane.f32.xlu1 %v6834_v4 }
 0x591   : > { %v2549_v51 = vpop.xlane.xlu2 %2548 }
 0x592   : > { %v2558_v3 = vsub.f32 %v6771_v31, %v2549_v51 }
 0x594   : > { %v6837_v34 = vpop.f32.mrf.mxu0 }
 0x595   : > { %2793 = vmax.xlane.f32.xlu2 %v6837_v34 }
 0x59a   : > { %v2541_v6 = vpop.xlane.xlu1 %2540 }
 0x59b   : > { %v2554_v53 = vsub.f32 %v6746_v36, %v2541_v6  ;;  %v2557_v36 = vsub.f32 %v6759_v54, %v2547_v35  ;;  %v2572_v54 = vmul.f32 1.442695, %v2558_v3 }
 0x59c   : > { %v6842_v59 = vpop.f32.mrf.mxu0 }
 0x59d   : > { %v2564_v2 = vmul.f32 1.442695, %v2554_v53  ;;  %2795 = vmax.xlane.f32.xlu0 %v6842_v59  ;;  %2268 = vadd.xlane.f32.xlu2 %v6765_v45  ;;  %v2570_v45 = vmul.f32 1.442695, %v2557_v36 }
 0x59f   : > { %4699 = vpow2.f32 %v2564_v2 }
 0x5a0   : > { %4701 = vpow2.f32 %v2568_v42 }
 0x5a1   : > { %4703 = vpow2.f32 %v2570_v45 }
 0x5a2   : > { %4705 = vpow2.f32 %v2572_v54 }
 0x5a4   : > { %v6847_v58 = vpop.f32.mrf.mxu0 }
 0x5a5   : > { %v4700_v10 = vpop.eup %4699  ;;  %2270 = vadd.xlane.f32.xlu0 %v6762_v12  ;;  %2797 = vmax.xlane.f32.xlu1 %v6847_v58  ;;  %v2551_v12 = vpop.xlane.xlu0 %2550 }
 0x5a6   : > { %2274 = vadd.xlane.f32.xlu2 %v6774_v60  ;;  %v2593_v17 = vpack.c.bf16 %v4698_v62, %v4700_v10  ;;  %v4702_v8 = vpop.eup %4701  ;;  %v2559_v44 = vsub.f32 %v6783_v48, %v2551_v12  ;;  %v6861_v48 = vpop.f32.mrf.mxu3 }
 0x5a7   : > { %v4704_v22 = vpop.eup %4703 }
 0x5a8   : > { %2633 = vmatmul.bf16.gmra.mxu3 %v2593_v17  ;;  %v2594_v60 = vpack.c.bf16 %v4704_v22, %v4702_v8  ;;  %v2574_v11 = vmul.f32 1.442695, %v2559_v44 }
 0x5aa   : > { %4707 = vpow2.f32 %v2574_v11 }
 0x5ad   : > { %2276 = vadd.xlane.f32.xlu0 %v6791_v38  ;;  %2272 = vadd.xlane.f32.xlu1 %v6777_v0  ;;  %v4706_v38 = vpop.eup %4705 }
 0x5ae   : > { %2584 = vadd.xlane.f32.xlu2 %v4702_v8 }
 0x5b0   : > { %v4708_v31 = vpop.eup %4707 }
 0x5b1   : > { %v2595_v0 = vpack.c.bf16 %v4708_v31, %v4706_v38 }
 0x5b5   : > { %2586 = vadd.xlane.f32.xlu0 %v4704_v22  ;;  %2278 = vadd.xlane.f32.xlu1 %v6789_v46  ;;  %v6863_v46 = vpop.f32.mrf.mxu3 }
 0x5b6   : > { %2282 = vadd.xlane.f32.xlu2 %v6805_v39 }
 0x5b8   : > { %2638 = vmatmul.bf16.gmra.mxu3 %v2594_v60 }
 0x5bd   : > { %2588 = vadd.xlane.f32.xlu0 %v4706_v38  ;;  %2280 = vadd.xlane.f32.xlu1 %v6803_v25  ;;  %v6865_v14 = vpop.f32.mrf.mxu3 }
 0x5be   : > { %2576 = vadd.xlane.f32.xlu2 %v4696_v49 }
 0x5c5   : > { %2578 = vadd.xlane.f32.xlu0 %v6822_v26  ;;  %2590 = vadd.xlane.f32.xlu1 %v4708_v31  ;;  %v6869_v30 = vpop.f32.mrf.mxu3 }
 0x5c8   : > { %2643 = vmatmul.bf16.gmra.mxu3 %v2595_v0 }
 0x5cd   : > { %2580 = vadd.xlane.f32.xlu0 %v4700_v10 }
 0x5e0   : > { %v2784_v39 = vpop.xlane.xlu2 %2783 }
 0x5e1   : > { %v2799_v63 = vsub.f32 %v6819_v1, %v2784_v39  ;;  %v6872_v1 = vpop.f32.mrf.mxu3 }
 0x5e3   : > { %v2807_v41 = vmul.f32 1.442695, %v2799_v63 }
 0x5e5   : > { %4709 = vpow2.f32 %v2807_v41  ;;  %v4361_v41 = vld [vmem:[#allocation8 + $0x28] sm:$0xff] }
 0x5e6   : > { %4420 = vmatpush.bf16.msra.mxu3 %v4361_v41  ;;  %2703 = vmatpush.bf16.msrb.mxu2 %v4361_v41 }
 0x5e8   : > { %v2786_v25 = vpop.xlane.xlu0 %2785 }
 0x5e9   : > { %v2800_v16 = vsub.f32 %v6825_v18, %v2786_v25  ;;  %v6875_v18 = vpop.f32.mrf.mxu3  ;;  %v4360_v25 = vld [vmem:[#allocation8 + $0x20] sm:$0xff] }
 0x5ea   : > { %4421 = vmatpush.bf16.msra.mxu3 %v4360_v25  ;;  %2704 = vmatpush.bf16.msrb.mxu2 %v4360_v25 }
 0x5eb   : > { %v4710_v23 = vpop.eup %4709  ;;  %v2809_v47 = vmul.f32 1.442695, %v2800_v16 }
 0x5ec   : > { %2823 = vadd.xlane.f32.xlu1 %v4710_v23 }
 0x5ed   : > { %4711 = vpow2.f32 %v2809_v47 }
 0x5f0   : > { %v2788_v13 = vpop.xlane.xlu2 %2787 }
 0x5f1   : > { %v2801_v57 = vsub.f32 %v6828_v32, %v2788_v13  ;;  %v6878_v52 = vpop.f32.mrf.mxu3 }
 0x5f3   : > { %v4712_v27 = vpop.eup %4711  ;;  %v2811_v28 = vmul.f32 1.442695, %v2801_v57 }
 0x5f4   : > { %v2839_v55 = vpack.c.bf16 %v4712_v27, %v4710_v23  ;;  %2582 = vadd.xlane.f32.xlu1 %v4698_v62  ;;  %2825 = vadd.xlane.f32.xlu2 %v4712_v27 }
 0x5f5   : > { %4713 = vpow2.f32 %v2811_v28 }
 0x5f6   : > { %2851 = vmatmul.bf16.vlgmr.msra.gmra.mxu1 %v2839_v55 }
 0x5f8   : > { %v2790_v26 = vpop.xlane.xlu0 %2789 }
 0x5f9   : > { %v2802_v9 = vsub.f32 %v6831_v43, %v2790_v26  ;;  %v6881_v62 = vpop.f32.mrf.mxu3 }
 0x5fb   : > { %v4714_v49 = vpop.eup %4713  ;;  %v2813_v24 = vmul.f32 1.442695, %v2802_v9 }
 0x5fc   : > { %2827 = vadd.xlane.f32.xlu2 %v4714_v49 }
 0x5fd   : > { %4715 = vpow2.f32 %v2813_v24 }
 0x600   : > { %v2792_v40 = vpop.xlane.xlu1 %2791 }
 0x601   : > { %v2803_v32 = vsub.f32 %v6834_v4, %v2792_v40  ;;  %v6884_v3 = vpop.f32.mrf.mxu3 }
 0x603   : > { %v4716_v56 = vpop.eup %4715  ;;  %v2815_v6 = vmul.f32 1.442695, %v2803_v32 }
 0x604   : > { %2829 = vadd.xlane.f32.xlu0 %v4716_v56  ;;  %v2840_v53 = vpack.c.bf16 %v4716_v56, %v4714_v49 }
 0x605   : > { %4717 = vpow2.f32 %v2815_v6 }
 0x606   : > { %2856 = vmatmul.bf16.gmra.mxu1 %v2840_v53 }
 0x608   : > { %v2794_v43 = vpop.xlane.xlu2 %2793 }
 0x609   : > { %v2804_v2 = vsub.f32 %v6837_v34, %v2794_v43  ;;  %v6889_v39 = vpop.f32.mrf.mxu3 }
 0x60b   : > { %v4718_v35 = vpop.eup %4717  ;;  %v2817_v42 = vmul.f32 1.442695, %v2804_v2 }
 0x60c   : > { %2831 = vadd.xlane.f32.xlu1 %v4718_v35 }
 0x60d   : > { %4719 = vpow2.f32 %v2817_v42 }
 0x610   : > { %v2796_v4 = vpop.xlane.xlu0 %2795  ;;  %v2269_v45 = vpop.xlane.xlu2 %2268 }
 0x611   : > { %v2805_v10 = vsub.f32 %v6842_v59, %v2796_v4 }
 0x613   : > { %v4720_v36 = vpop.eup %4719  ;;  %v2819_v17 = vmul.f32 1.442695, %v2805_v10 }
 0x614   : > { %2833 = vadd.xlane.f32.xlu2 %v4720_v36  ;;  %v2841_v51 = vpack.c.bf16 %v4720_v36, %v4718_v35 }
 0x615   : > { %4721 = vpow2.f32 %v2819_v17 }
 0x616   : > { %2861 = vmatmul.bf16.gmra.mxu1 %v2841_v51  ;;  %4723 = vrcp.f32 %v2269_v45 }
 0x618   : > { %v2271_v34 = vpop.xlane.xlu0 %2270  ;;  %v2798_v8 = vpop.xlane.xlu1 %2797 }
 0x619   : > { %4725 = vrcp.f32 %v2271_v34  ;;  %v2806_v54 = vsub.f32 %v6847_v58, %v2798_v8  ;;  %v2275_v63 = vpop.xlane.xlu2 %2274 }
 0x61b   : > { %v4722_v12 = vpop.eup %4721  ;;  %v2821_v22 = vmul.f32 1.442695, %v2806_v54 }
 0x61c   : > { %2835 = vadd.xlane.f32.xlu0 %v4722_v12  ;;  %v4724_v44 = vpop.eup %4723 }
 0x61d   : > { %4727 = vpow2.f32 %v2821_v22  ;;  %v2325_v60 = vmul.f32 %v4724_v44, %v6861_v48 }
 0x61f   : > { %v4726_v59 = vpop.eup %4725 }
 0x620   : > { %v2326_v11 = vmul.f32 %v4726_v59, %v6863_v46  ;;  %v2273_v31 = vpop.xlane.xlu1 %2272  ;;  %v2277_v13 = vpop.xlane.xlu0 %2276  ;;  %v4363_v59 = vld [vmem:[#allocation8 + $0x38] sm:$0xff] }
 0x621   : > { %4729 = vrcp.f32 %v2273_v31  ;;  %v2585_v55 = vpop.xlane.xlu2 %2584  ;;  %2926 = vmatpush.bf16.msrb.mxu3 %v4363_v59 }
 0x622   : > { %v2333_v38 = vpack.c.bf16 %v2326_v11, %v2325_v60  ;;  %4731 = vrcp.f32 %v2275_v63  ;;  %v4362_v11 = vld [vmem:[#allocation8 + $0x30] sm:$0xff] }
 0x623   : > { %v4728_v0 = vpop.eup %4727 }
 0x624   : > { %4083 = vmatmul.msk.bf16.vlgmr.msra.gmra.mxu2 %vm1948_vm10, %v2333_v38  ;;  %2837 = vadd.xlane.f32.xlu1 %v4728_v0  ;;  %v2842_v58 = vpack.c.bf16 %v4728_v0, %v4722_v12 }
 0x625   : > { %2927 = vmatpush.bf16.msrb.mxu3 %v4362_v11 }
 0x626   : > { %2866 = vmatmul.bf16.gmra.mxu1 %v2842_v58 }
 0x627   : > { %v4730_v48 = vpop.eup %4729 }
 0x628   : > { %v4732_v46 = vpop.eup %4731  ;;  %v2327_v23 = vmul.f32 %v4730_v48, %v6865_v14  ;;  %v2279_v57 = vpop.xlane.xlu1 %2278 }
 0x629   : > { %v2328_v47 = vmul.f32 %v4732_v46, %v6869_v30  ;;  %4733 = vrcp.f32 %v2279_v57  ;;  %v2587_v26 = vpop.xlane.xlu0 %2586  ;;  %v2283_v53 = vpop.xlane.xlu2 %2282 }
 0x62a   : > { %4735 = vrcp.f32 %v2277_v13 }
 0x62b   : > { %v6892_v16 = vpop.f32.mrf.mxu3  ;;  %v2334_v27 = vpack.c.bf16 %v2328_v47, %v2327_v23  ;;  %4737 = vrcp.f32 %v2585_v55 }
 0x62c   : > { %4739 = vrcp.f32 %v2587_v26 }
 0x62f   : > { %v4734_v9 = vpop.eup %4733 }
 0x630   : > { %v4736_v24 = vpop.eup %4735  ;;  %v2330_v14 = vmul.f32 %v4734_v9, %v6875_v18  ;;  %v2281_v40 = vpop.xlane.xlu1 %2280 }
 0x631   : > { %v2329_v30 = vmul.f32 %v4736_v24, %v6872_v1  ;;  %v4738_v32 = vpop.eup %4737  ;;  %4741 = vrcp.f32 %v2281_v40  ;;  %v2589_v35 = vpop.xlane.xlu0 %2588 }
 0x632   : > { %v4740_v56 = vpop.eup %4739  ;;  %4743 = vrcp.f32 %v2283_v53  ;;  %v2577_v54 = vpop.xlane.xlu2 %2576 }
 0x633   : > { %v6896_v28 = vpop.f32.mrf.mxu3  ;;  %v2335_v50 = vpack.c.bf16 %v2330_v14, %v2329_v30  ;;  %4745 = vrcp.f32 %v2589_v35 }
 0x634   : > { %4084 = vmatmul.msk.bf16.gmra.mxu2 %vm1948_vm10, %v2334_v27 }
 0x637   : > { %v4742_v18 = vpop.eup %4741 }
 0x638   : > { %v2591_v42 = vpop.xlane.xlu1 %2590  ;;  %v4744_v1 = vpop.eup %4743  ;;  %v2331_v10 = vmul.f32 %v4742_v18, %v6878_v52 }
 0x639   : > { %4747 = vrcp.f32 %v2591_v42  ;;  %v2332_v36 = vmul.f32 %v4744_v1, %v6881_v62  ;;  %v4746_v17 = vpop.eup %4745  ;;  %v2579_v45 = vpop.xlane.xlu0 %2578 }
 0x63a   : > { %4749 = vrcp.f32 %v2579_v45 }
 0x63b   : > { %v2639_v49 = vpop.f32.mrf.mxu3  ;;  %v2336_v51 = vpack.c.bf16 %v2332_v36, %v2331_v10  ;;  %4751 = vrcp.f32 %v2577_v54 }
 0x63c   : > { %v2661_v43 = vmul.f32 %v4738_v32, %v2639_v49 }
 0x63f   : > { %v4748_v34 = vpop.eup %4747 }
 0x640   : > { %v4750_v52 = vpop.eup %4749 }
 0x641   : > { %v4752_v60 = vpop.eup %4751  ;;  %v2658_v62 = vmul.f32 %v4750_v52, %v6889_v39  ;;  %v2581_v63 = vpop.xlane.xlu0 %2580 }
 0x642   : > { %v2657_v31 = vmul.f32 %v4752_v60, %v6884_v3  ;;  %4753 = vrcp.f32 %v2581_v63 }
 0x643   : > { %v2641_v6 = vpop.f32.mrf.mxu3 }
 0x644   : > { %v2662_v2 = vmul.f32 %v4740_v56, %v2641_v6  ;;  %4085 = vmatmul.msk.bf16.gmra.mxu2 %vm1948_vm10, %v2335_v50  ;;  %v2665_v0 = vpack.c.bf16 %v2658_v62, %v2657_v31 }
 0x646   : > { %v2667_v5 = vpack.c.bf16 %v2662_v2, %v2661_v43 }
 0x648   : > { %4113 = vmatmul.msk.bf16.vlgmr.msra.gmra.mxu3 %vm1948_vm10, %v2667_v5  ;;  %v4754_v41 = vpop.eup %4753 }
 0x649   : > { %v2659_v48 = vmul.f32 %v4754_v41, %v6892_v16 }
 0x64b   : > { %v2644_v4 = vpop.f32.mrf.mxu3 }
 0x64c   : > { %v2663_v12 = vmul.f32 %v4746_v17, %v2644_v4 }
 0x653   : > { %v2646_v8 = vpop.f32.mrf.mxu3 }
 0x654   : > { %v2664_v22 = vmul.f32 %v4748_v34, %v2646_v8  ;;  %4086 = vmatmul.msk.bf16.gmra.mxu2 %vm1948_vm10, %v2336_v51 }
 0x656   : > { %v2668_v44 = vpack.c.bf16 %v2664_v22, %v2663_v12 }
 0x658   : > { %4114 = vmatmul.msk.bf16.gmra.mxu3 %vm1948_vm10, %v2668_v44 }
 0x65f   : > { %v2824_v38 = vpop.xlane.xlu1 %2823 }
 0x664   : > { %4111 = vmatmul.msk.bf16.vlgmr.msrb.gmra.mxu2 %vm1948_vm10, %v2665_v0 }
 0x667   : > { %v2583_v58 = vpop.xlane.xlu1 %2582  ;;  %v2826_v23 = vpop.xlane.xlu2 %2825 }
 0x668   : > { %4755 = vrcp.f32 %v2583_v58 }
 0x669   : > { %4757 = vrcp.f32 %v2824_v38 }
 0x66a   : > { %4759 = vrcp.f32 %v2826_v23 }
 0x66e   : > { %v4756_v25 = vpop.eup %4755 }
 0x66f   : > { %v2660_v46 = vmul.f32 %v4756_v25, %v6896_v28  ;;  %v4758_v3 = vpop.eup %4757  ;;  %v2828_v9 = vpop.xlane.xlu2 %2827 }
 0x670   : > { %v4760_v13 = vpop.eup %4759  ;;  %4761 = vrcp.f32 %v2828_v9 }
 0x671   : > { %v2666_v39 = vpack.c.bf16 %v2660_v46, %v2659_v48  ;;  %v4853_v46 = vld [vmem:[%s5613_s5] sm:$0xff] }
 0x673   : > { %v2852_v47 = vpop.f32.mrf.mxu1 }
 0x674   : > { %4112 = vmatmul.msk.bf16.gmra.mxu2 %vm1948_vm10, %v2666_v39  ;;  %v2880_v27 = vmul.f32 %v4758_v3, %v2852_v47 }
 0x676   : > { %v4762_v28 = vpop.eup %4761 }
 0x677   : > { %v2830_v49 = vpop.xlane.xlu0 %2829 }
 0x678   : > { %4763 = vrcp.f32 %v2830_v49 }
 0x67b   : > { %v2854_v57 = vpop.f32.mrf.mxu1 }
 0x67c   : > { %v2881_v55 = vmul.f32 %v4760_v13, %v2854_v57 }
 0x67e   : > { %v2888_v26 = vpack.c.bf16 %v2881_v55, %v2880_v27  ;;  %v4764_v24 = vpop.eup %4763  ;;  %v4854_v55 = vld [vmem:[%s5613_s5 + $0x8] sm:$0xff] }
 0x67f   : > { %v2832_v50 = vpop.xlane.xlu1 %2831 }
 0x680   : > { %4127 = vmatmul.msk.bf16.vlgmr.msrb.gmra.mxu3 %vm1948_vm10, %v2888_v26  ;;  %4765 = vrcp.f32 %v2832_v50 }
 0x683   : > { %v2857_v16 = vpop.f32.mrf.mxu1 }
 0x684   : > { %v2882_v30 = vmul.f32 %v4762_v28, %v2857_v16  ;;  %v4855_v28 = vld [vmem:[%s5613_s5 + $0x10] sm:$0xff] }
 0x686   : > { %v4766_v53 = vpop.eup %4765 }
 0x687   : > { %v2834_v56 = vpop.xlane.xlu2 %2833 }
 0x688   : > { %4767 = vrcp.f32 %v2834_v56  ;;  %v4856_v56 = vld [vmem:[%s5613_s5 + $0x18] sm:$0xff] }
 0x68b   : > { %v2859_v14 = vpop.f32.mrf.mxu1 }
 0x68c   : > { %v2883_v40 = vmul.f32 %v4764_v24, %v2859_v14 }
 0x68e   : > { %v2889_v32 = vpack.c.bf16 %v2883_v40, %v2882_v30  ;;  %v4768_v43 = vpop.eup %4767 }
 0x68f   : > { %v2836_v18 = vpop.xlane.xlu0 %2835 }
 0x690   : > { %4128 = vmatmul.msk.bf16.gmra.mxu3 %vm1948_vm10, %v2889_v32  ;;  %4769 = vrcp.f32 %v2836_v18 }
 0x693   : > { %v2862_v6 = vpop.f32.mrf.mxu1 }
 0x694   : > { %v2884_v5 = vmul.f32 %v4766_v53, %v2862_v6 }
 0x696   : > { %v4770_v36 = vpop.eup %4769 }
 0x697   : > { %v2838_v4 = vpop.xlane.xlu1 %2837 }
 0x698   : > { %4771 = vrcp.f32 %v2838_v4 }
 0x69b   : > { %v2864_v2 = vpop.f32.mrf.mxu1 }
 0x69c   : > { %v2885_v35 = vmul.f32 %v4768_v43, %v2864_v2 }
 0x69e   : > { %v2890_v42 = vpack.c.bf16 %v2885_v35, %v2884_v5  ;;  %v4772_v17 = vpop.eup %4771  ;;  %v4857_v35 = vld [vmem:[%s5613_s5 + $0x20] sm:$0xff] }
 0x6a0   : > { %4129 = vmatmul.msk.bf16.gmra.mxu3 %vm1948_vm10, %v2890_v42 }
 0x6a3   : > { %v2867_v1 = vpop.f32.mrf.mxu1 }
 0x6a4   : > { %v2886_v51 = vmul.f32 %v4770_v36, %v2867_v1  ;;  %v4858_v36 = vld [vmem:[%s5613_s5 + $0x28] sm:$0xff] }
 0x6a7   : > { %v2374_v10 = vpop.f32.mrf.mxu2 }
 0x6a8   : > { %v2428_v63 = vadd.f32 %v6787_v21, %v2374_v10 }
 0x6ab   : > { %v2869_v45 = vpop.f32.mrf.mxu1 }
 0x6ac   : > { %v2887_v34 = vmul.f32 %v4772_v17, %v2869_v45 }
 0x6ae   : > { %v2891_v8 = vpack.c.bf16 %v2887_v34, %v2886_v51 }
 0x6af   : > { %v2376_v54 = vpop.f32.mrf.mxu2 }
 0x6b0   : > { %4130 = vmatmul.msk.bf16.gmra.mxu3 %vm1948_vm10, %v2891_v8  ;;  %v2430_v39 = vadd.f32 %v6795_v37, %v2376_v54  ;;  %v4859_v54 = vld [vmem:[%s5613_s5 + $0x30] sm:$0xff] }
 0x6b7   : > { %v2379_v12 = vpop.f32.mrf.mxu2 }
 0x6b8   : > { %v2433_v26 = vadd.f32 %v6798_v7, %v2379_v12 }
 0x6bf   : > { %v2381_v22 = vpop.f32.mrf.mxu2 }
 0x6c0   : > { %v2435_v30 = vadd.f32 %v6801_v19, %v2381_v22 }
 0x6c7   : > { %v2384_v44 = vpop.f32.mrf.mxu2 }
 0x6c8   : > { %v2438_v53 = vadd.f32 %v6809_v29, %v2384_v44 }
 0x6cb   : > { %v2716_v52 = vpop.f32.mrf.mxu3 }
 0x6cc   : > { %v2730_v2 = vadd.f32 %v2716_v52, %v2438_v53  ;;  %v4391_v53 = vld [vmem:[#allocation11 + $0x54] sm:$0xf0] }
 0x6cf   : > { %v2386_v59 = vpop.f32.mrf.mxu2 }
 0x6d0   : > { %v2440_v18 = vadd.f32 %v6811_v33, %v2386_v59 }
 0x6d3   : > { %v2718_v62 = vpop.f32.mrf.mxu3 }
 0x6d4   : > { %v2731_v1 = vadd.f32 %v2718_v62, %v2440_v18  ;;  %v4165_v18 = vld [vmem:[#allocation10 + $0x40] sm:$0xf] }
 0x6d7   : > { %v2389_v60 = vpop.f32.mrf.mxu2 }
 0x6d8   : > { %v2443_v45 = vadd.f32 %v6813_v15, %v2389_v60  ;;  %v4860_v15 = vld [vmem:[%s5613_s5 + $0x38] sm:$0xff]  ;;  %s5085_s5 = sshra.s32 %s3757_s23, 4  ;;  %s5086_s5 = int_to_ptr.hbm [resolvable:$true] %s5085_s5 }
 0x6d9   : > { %s5087_s24 = scalar_lea.hbm %s5086_s5, 64  ;;  %p5092_p13 = scmp.lt.s32.totalorder %s5086_s5, %s7226_s27 }
 0x6da   : > { %p5088_p1 = scmp.ne.s32.totalorder %s5086_s5, %s5087_s24  ;;  %p5093_p0 = scmp.lt.s32.totalorder %s5091_s9, %s5087_s24 }
 0x6db   : > { %v2721_v38 = vpop.f32.mrf.mxu3 }
 0x6dc   : > { %v2732_v34 = vadd.f32 %v2721_v38, %v2443_v45  ;;  %v4389_v45 = vld [vmem:[#allocation11 + $0x44] sm:$0xf0]  ;;  %p5089_p11 = pnand %p5088_p1, %p5475_p8  ;;  %p5094_p3 = por %p5093_p0, %p5092_p13 }
 0x6de   : > { %p5090_p12 = pneg %p5089_p11 }
 0x6df   : > { %v2391_v11 = vpop.f32.mrf.mxu2 }
 0x6e0   : > { %v2445_v22 = vadd.f32 %v6817_v20, %v2391_v11  ;;  %v4253_v20 = vld [vmem:[#allocation11 + $0x70] sm:$0xf]  ;;  %v4395_v11 = vld [vmem:[#allocation11 + $0x74] sm:$0xf0]  ;;  %p5095_p5 = pnand %p5094_p3, %p5090_p12 }
 0x6e3   : > { %v2723_v0 = vpop.f32.mrf.mxu3 }
 0x6e4   : > { %v2733_v59 = vadd.f32 %v2723_v0, %v2445_v22  ;;  %v4394_v0 = vld [vmem:[#allocation11 + $0x74] sm:$0xf] }
 0x6e7   : > { %v2706_v31 = vpop.f32.mrf.mxu2 }
 0x6e8   : > { %v2726_v58 = vadd.f32 %v2706_v31, %v2428_v63  ;;  %v4189_v31 = vld [vmem:[#allocation10 + $0x70] sm:$0xf]  ;;  %v4379_v63 = vld [vmem:[#allocation10 + $0x74] sm:$0xf0] }
 0x6ef   : > { %v2708_v41 = vpop.f32.mrf.mxu2 }
 0x6f0   : > { %v2727_v3 = vadd.f32 %v2708_v41, %v2430_v39  ;;  %v4190_v41 = vor.u32 %v4379_v63, %v4189_v31  ;;  %v4255_v39 = vld [vmem:[#allocation11 + $0x78] sm:$0xf0]  ;;  %v4221_v63 = vld [vmem:[#allocation11 + $0x30] sm:$0xf] }
 0x6f1   : > { %v4159_v31 = vld [vmem:[#allocation10 + $0x38] sm:$0xf0] }
 0x6f2   : > { %3205 = vmatpush.bf16.msra.mxu2 %v4190_v41  ;;  %v4387_v41 = vld [vmem:[#allocation11 + $0x34] sm:$0xf0] }
 0x6f7   : > { %v2711_v27 = vpop.f32.mrf.mxu2 }
 0x6f8   : > { %v2728_v49 = vadd.f32 %v2711_v27, %v2433_v26  ;;  %v4245_v26 = vld [vmem:[#allocation11 + $0x60] sm:$0xf] }
 0x6ff   : > { %v2713_v14 = vpop.f32.mrf.mxu2 }
 0x700   : > { %v2729_v32 = vadd.f32 %v2713_v14, %v2435_v30  ;;  %v4173_v30 = vld [vmem:[#allocation10 + $0x50] sm:$0xf] }
 0x703   : > { %v2929_v25 = vpop.f32.mrf.mxu3 }
 0x704   : > { %v2949_v48 = vadd.f32 %v2929_v25, %v2726_v58  ;;  %v4378_v58 = vld [vmem:[#allocation10 + $0x74] sm:$0xf]  ;;  %v4191_v25 = vld [vmem:[#allocation10 + $0x78] sm:$0xf0] }
 0x706   : > { %v6919_v23 = vadd.f32 %v4853_v46, %v2949_v48  ;;  %v4194_v48 = vor.u32 %v4378_v58, %v4191_v25  ;;  %v4254_v46 = vor.u32 %v4395_v11, %v4253_v20  ;;  %v4386_v25 = vld [vmem:[#allocation11 + $0x34] sm:$0xf]  ;;  %v4223_v20 = vld [vmem:[#allocation11 + $0x38] sm:$0xf0]  ;;  %v4222_v11 = vor.u32 %v4387_v41, %v4221_v63 }
 0x708   : > { %v2966_v47 = vmul.f32 %v6919_v23, %v6919_v23  ;;  %3234 = vmatpush.bf16.msra.mxu0 %v4194_v48  ;;  %3359 = vmatpush.bf16.msrb.mxu1 %v4254_v46  ;;  %v4226_v48 = vor.u32 %v4386_v25, %v4223_v20  ;;  %v4149_v46 = vld [vmem:[#allocation10 + $0x20] sm:$0xf] }
 0x70a   : > { %2974 = vadd.xlane.f32.xlu2 %v2966_v47  ;;  %v4258_v47 = vor.u32 %v4394_v0, %v4255_v39  ;;  %v4369_v0 = vld [vmem:[#allocation10 + $0x24] sm:$0xf0]  ;;  %v4368_v39 = vld [vmem:[#allocation10 + $0x24] sm:$0xf] }
 0x70b   : > { %v2931_v13 = vpop.f32.mrf.mxu3 }
 0x70c   : > { %v2950_v57 = vadd.f32 %v2931_v13, %v2727_v3  ;;  %v4181_v3 = vld [vmem:[#allocation10 + $0x60] sm:$0xf]  ;;  %v4377_v13 = vld [vmem:[#allocation10 + $0x64] sm:$0xf0]  ;;  %3388 = vmatpush.bf16.msra.mxu3 %v4258_v47  ;;  %v4150_v47 = vor.u32 %v4369_v0, %v4149_v46 }
 0x70d   : > { %v4182_v27 = vor.u32 %v4377_v13, %v4181_v3  ;;  %v4151_v3 = vld [vmem:[#allocation10 + $0x28] sm:$0xf0]  ;;  %v4213_v13 = vld [vmem:[#allocation11 + $0x20] sm:$0xf] }
 0x70e   : > { %v6925_v21 = vadd.f32 %v4854_v55, %v2950_v57  ;;  %v4376_v57 = vld [vmem:[#allocation10 + $0x64] sm:$0xf]  ;;  %v4183_v55 = vld [vmem:[#allocation10 + $0x68] sm:$0xf0] }
 0x70f   : > { %3206 = vmatpush.bf16.msra.mxu2 %v4182_v27 }
 0x710   : > { %v2967_v9 = vmul.f32 %v6925_v21, %v6925_v21 }
 0x712   : > { %2976 = vadd.xlane.f32.xlu0 %v2967_v9  ;;  %v4393_v9 = vld [vmem:[#allocation11 + $0x64] sm:$0xf0] }
 0x713   : > { %v2934_v37 = vpop.f32.mrf.mxu3 }
 0x714   : > { %v2951_v16 = vadd.f32 %v2934_v37, %v2728_v49  ;;  %v4186_v49 = vor.u32 %v4376_v57, %v4183_v55  ;;  %v4246_v37 = vor.u32 %v4393_v9, %v4245_v26  ;;  %v4385_v57 = vld [vmem:[#allocation11 + $0x24] sm:$0xf0]  ;;  %v4154_v55 = vor.u32 %v4368_v39, %v4151_v3  ;;  %v4384_v9 = vld [vmem:[#allocation11 + $0x24] sm:$0xf] }
 0x715   : > { %v4214_v26 = vor.u32 %v4385_v57, %v4213_v13  ;;  %v6977_v57 = vld [vmem:[%s7225_s25] ss:$0 sm:$0xff] }
 0x716   : > { %v6931_v24 = vadd.f32 %v4855_v28, %v2951_v16  ;;  %v4392_v16 = vld [vmem:[#allocation11 + $0x64] sm:$0xf]  ;;  %v4247_v28 = vld [vmem:[#allocation11 + $0x68] sm:$0xf0]  ;;  %3235 = vmatpush.bf16.msra.mxu0 %v4186_v49  ;;  %3360 = vmatpush.bf16.msrb.mxu1 %v4246_v37 }
 0x717   : > { %v4250_v14 = vor.u32 %v4392_v16, %v4247_v28  ;;  %v4215_v49 = vld [vmem:[#allocation11 + $0x28] sm:$0xf0]  ;;  %v4141_v28 = vld [vmem:[#allocation10 + $0x10] sm:$0xf] }
 0x718   : > { %v2968_v40 = vmul.f32 %v6931_v24, %v6931_v24  ;;  %v4218_v16 = vor.u32 %v4384_v9, %v4215_v49 }
 0x719   : > { %3389 = vmatpush.bf16.msra.mxu3 %v4250_v14  ;;  %v4367_v14 = vld [vmem:[#allocation10 + $0x14] sm:$0xf0] }
 0x71a   : > { %2978 = vadd.xlane.f32.xlu1 %v2968_v40  ;;  %v4375_v40 = vld [vmem:[#allocation10 + $0x54] sm:$0xf0] }
 0x71b   : > { %v2936_v7 = vpop.f32.mrf.mxu3 }
 0x71c   : > { %v2952_v50 = vadd.f32 %v2936_v7, %v2729_v32  ;;  %v4374_v32 = vld [vmem:[#allocation10 + $0x54] sm:$0xf]  ;;  %v4174_v7 = vor.u32 %v4375_v40, %v4173_v30 }
 0x71d   : > { %v4366_v30 = vld [vmem:[#allocation10 + $0x14] sm:$0xf] }
 0x71e   : > { %v6937_v6 = vadd.f32 %v4856_v56, %v2952_v50  ;;  %v4175_v50 = vld [vmem:[#allocation10 + $0x58] sm:$0xf0]  ;;  %v4237_v56 = vld [vmem:[#allocation11 + $0x50] sm:$0xf]  ;;  %3207 = vmatpush.bf16.msra.mxu2 %v4174_v7  ;;  %v4142_v7 = vor.u32 %v4367_v14, %v4141_v28 }
 0x720   : > { %v2969_v43 = vmul.f32 %v6937_v6, %v6937_v6 }
 0x722   : > { %2980 = vadd.xlane.f32.xlu2 %v2969_v43  ;;  %v4178_v43 = vor.u32 %v4374_v32, %v4175_v50  ;;  %v4143_v50 = vld [vmem:[#allocation10 + $0x18] sm:$0xf0] }
 0x723   : > { %v2939_v5 = vpop.f32.mrf.mxu3 }
 0x724   : > { %v2953_v19 = vadd.f32 %v2939_v5, %v2730_v2  ;;  %v4238_v2 = vor.u32 %v4391_v53, %v4237_v56  ;;  %v4390_v5 = vld [vmem:[#allocation11 + $0x54] sm:$0xf]  ;;  %3236 = vmatpush.bf16.msra.mxu0 %v4178_v43  ;;  %v4205_v56 = vld [vmem:[#allocation11 + $0x10] sm:$0xf]  ;;  %v4146_v43 = vor.u32 %v4366_v30, %v4143_v50 }
 0x726   : > { %v6943_v42 = vadd.f32 %v4857_v35, %v2953_v19  ;;  %v4239_v19 = vld [vmem:[#allocation11 + $0x58] sm:$0xf0]  ;;  %3361 = vmatpush.bf16.msrb.mxu1 %v4238_v2  ;;  %v4383_v2 = vld [vmem:[#allocation11 + $0x14] sm:$0xf0] }
 0x727   : > { %v4242_v35 = vor.u32 %v4390_v5, %v4239_v19  ;;  %v4382_v5 = vld [vmem:[#allocation11 + $0x14] sm:$0xf]  ;;  %v4207_v19 = vld [vmem:[#allocation11 + $0x18] sm:$0xf0] }
 0x728   : > { %v2970_v4 = vmul.f32 %v6943_v42, %v6943_v42 }
 0x729   : > { %3390 = vmatpush.bf16.msra.mxu3 %v4242_v35  ;;  %v4206_v35 = vor.u32 %v4383_v2, %v4205_v56 }
 0x72a   : > { %2982 = vadd.xlane.f32.xlu0 %v2970_v4  ;;  %v4373_v4 = vld [vmem:[#allocation10 + $0x44] sm:$0xf0] }
 0x72b   : > { %v2941_v10 = vpop.f32.mrf.mxu3 }
 0x72c   : > { %v2954_v29 = vadd.f32 %v2941_v10, %v2731_v1  ;;  %v4372_v1 = vld [vmem:[#allocation10 + $0x44] sm:$0xf]  ;;  %v4166_v10 = vor.u32 %v4373_v4, %v4165_v18  ;;  %v4210_v18 = vor.u32 %v4382_v5, %v4207_v19 }
 0x72e   : > { %v6949_v17 = vadd.f32 %v4858_v36, %v2954_v29  ;;  %v4167_v29 = vld [vmem:[#allocation10 + $0x48] sm:$0xf0]  ;;  %v4229_v36 = vld [vmem:[#allocation11 + $0x40] sm:$0xf]  ;;  %3208 = vmatpush.bf16.msra.mxu2 %v4166_v10  ;;  %v4365_v10 = vld [vmem:[#allocation10 + $0x4] sm:$0xf0] }
 0x730   : > { %v2971_v51 = vmul.f32 %v6949_v17, %v6949_v17 }
 0x732   : > { %2984 = vadd.xlane.f32.xlu1 %v2971_v51 }
 0x733   : > { %v2944_v8 = vpop.f32.mrf.mxu3 }
 0x734   : > { %v2955_v33 = vadd.f32 %v2944_v8, %v2732_v34  ;;  %v4170_v34 = vor.u32 %v4372_v1, %v4167_v29  ;;  %v4230_v8 = vor.u32 %v4389_v45, %v4229_v36  ;;  %v4133_v1 = vld [vmem:[#allocation10] sm:$0xf]  ;;  %v4364_v29 = vld [vmem:[#allocation10 + $0x4] sm:$0xf]  ;;  %v4135_v45 = vld [vmem:[#allocation10 + $0x8] sm:$0xf0] }
 0x735   : > { %v4134_v36 = vor.u32 %v4365_v10, %v4133_v1 }
 0x736   : > { %v6955_v12 = vadd.f32 %v4859_v54, %v2955_v33  ;;  %v4388_v33 = vld [vmem:[#allocation11 + $0x44] sm:$0xf]  ;;  %v4231_v54 = vld [vmem:[#allocation11 + $0x48] sm:$0xf0]  ;;  %3237 = vmatpush.bf16.msra.mxu0 %v4170_v34  ;;  %3362 = vmatpush.bf16.msrb.mxu1 %v4230_v8  ;;  %v4381_v34 = vld [vmem:[#allocation11 + $0x4] sm:$0xf0] }
 0x738   : > { %v2972_v44 = vmul.f32 %v6955_v12, %v6955_v12 }
 0x73a   : > { %2986 = vadd.xlane.f32.xlu2 %v2972_v44  ;;  %v4234_v44 = vor.u32 %v4388_v33, %v4231_v54  ;;  %3363 = vmatpush.bf16.msrb.mxu1 %v4222_v11  ;;  %v4138_v54 = vor.u32 %v4364_v29, %v4135_v45 }
 0x73b   : > { %v2946_v52 = vpop.f32.mrf.mxu3 }
 0x73c   : > { %v2956_v62 = vadd.f32 %v2946_v52, %v2733_v59  ;;  %v4157_v59 = vld [vmem:[#allocation10 + $0x30] sm:$0xf]  ;;  %v4371_v52 = vld [vmem:[#allocation10 + $0x34] sm:$0xf0]  ;;  %3391 = vmatpush.bf16.msra.mxu3 %v4234_v44  ;;  %v4380_v44 = vld [vmem:[#allocation11 + $0x4] sm:$0xf] }
 0x73e   : > { %v6961_v60 = vadd.f32 %v4860_v15, %v2956_v62  ;;  %v4370_v62 = vld [vmem:[#allocation10 + $0x34] sm:$0xf]  ;;  %3364 = vmatpush.bf16.msrb.mxu1 %v4214_v26 }
 0x73f   : > { %v4162_v58 = vor.u32 %v4370_v62, %v4159_v31 }
 0x740   : > { %v2973_v38 = vmul.f32 %v6961_v60, %v6961_v60  ;;  %3392 = vmatpush.bf16.msra.mxu3 %v4226_v48 }
 0x741   : > { %3238 = vmatpush.bf16.msra.mxu0 %v4162_v58 }
 0x742   : > { %2988 = vadd.xlane.f32.xlu0 %v2973_v38  ;;  %v4158_v38 = vor.u32 %v4371_v52, %v4157_v59  ;;  %3365 = vmatpush.bf16.msrb.mxu1 %v4206_v35  ;;  %v4199_v59 = vld [vmem:[#allocation11 + $0x8] sm:$0xf0] }
 0x743   : > { %v4202_v62 = vor.u32 %v4380_v44, %v4199_v59 }
 0x744   : > { %3209 = vmatpush.bf16.msra.mxu2 %v4158_v38  ;;  %3393 = vmatpush.bf16.msra.mxu3 %v4218_v16 }
 0x745   : > { %3239 = vmatpush.bf16.msra.mxu0 %v4154_v55 }
 0x748   : > { %3210 = vmatpush.bf16.msra.mxu2 %v4150_v47  ;;  %3394 = vmatpush.bf16.msra.mxu3 %v4210_v18 }
 0x749   : > { %3240 = vmatpush.bf16.msra.mxu0 %v4146_v43 }
 0x74c   : > { %3211 = vmatpush.bf16.msra.mxu2 %v4142_v7  ;;  %3395 = vmatpush.bf16.msra.mxu3 %v4202_v62 }
 0x74d   : > { %3241 = vmatpush.bf16.msra.mxu0 %v4138_v54 }
 0x750   : > { %3212 = vmatpush.bf16.msra.mxu2 %v4134_v36 }
 0x77d   : > { %v2975_v51 = vpop.xlane.xlu2 %2974 }
 0x77e   : > { %v2990_v22 = vmul.f32 %v2975_v51, %v5681_v61  ;;  %v4197_v51 = vld [vmem:[#allocation11] sm:$0xf] }
 0x780   : > { %v6966_v15 = vadd.f32 1e-06, %v2990_v22  ;;  %v4198_v22 = vor.u32 %v4381_v34, %v4197_v51 }
 0x782   : > { %4773 = vrsqrt.f32 %v6966_v15  ;;  %3366 = vmatpush.bf16.msrb.mxu1 %v4198_v22  ;;  %vm3012_vm12 = vweird.f32 %v6966_v15 }
 0x785   : > { %v2977_v27 = vpop.xlane.xlu0 %2976 }
 0x786   : > { %v2991_v37 = vmul.f32 %v2977_v27, %v5681_v61 }
 0x788   : > { %v4774_v40 = vpop.eup %4773  ;;  %v2999_v32 = vadd.f32 1e-06, %v2991_v37 }
 0x789   : > { %v3007_v53 = vmul.f32 %v4774_v40, %v6966_v15  ;;  %vm3013_vm11 = vweird.f32 %v4774_v40 }
 0x78a   : > { %4775 = vrsqrt.f32 %v2999_v32  ;;  %vm3014_vm13 = vmor %vm3012_vm12, %vm3013_vm11  ;;  %vm3022_vm15 = vweird.f32 %v2999_v32 }
 0x78b   : > { %v3008_v4 = vmul.f32 %v4774_v40, %v3007_v53 }
 0x78d   : > { %v3009_v8 = vmul.f32 0.5, %v3008_v4  ;;  %v2979_v33 = vpop.xlane.xlu1 %2978 }
 0x78e   : > { %v2992_v52 = vmul.f32 %v2979_v33, %v5681_v61 }
 0x78f   : > { %v3010_v38 = vsub.f32 1.5, %v3009_v8 }
 0x790   : > { %v4776_v31 = vpop.eup %4775  ;;  %v3000_v63 = vadd.f32 1e-06, %v2992_v52 }
 0x791   : > { %v3017_v58 = vmul.f32 %v4776_v31, %v2999_v32  ;;  %v3011_v41 = vmul.f32 %v4774_v40, %v3010_v38  ;;  %vm3023_vm14 = vweird.f32 %v4776_v31 }
 0x792   : > { %4777 = vrsqrt.f32 %v3000_v63  ;;  %vm3024_vm0 = vmor %vm3022_vm15, %vm3023_vm14  ;;  %vm3032_vm2 = vweird.f32 %v3000_v63 }
 0x793   : > { %v3018_v25 = vmul.f32 %v4776_v31, %v3017_v58  ;;  %v3015_v46 = vsel %vm3014_vm13, %v4774_v40, %v3011_v41 }
 0x794   : > { %v3086_v15 = vmul.f32 %v3015_v46, %v6919_v23 }
 0x795   : > { %v3019_v20 = vmul.f32 0.5, %v3018_v25  ;;  %v2981_v11 = vpop.xlane.xlu2 %2980 }
 0x796   : > { %v2993_v48 = vmul.f32 %v2981_v11, %v5681_v61  ;;  %v3097_v37 = vmul.f32 %v6977_v57, %v3086_v15 }
 0x797   : > { %v3020_v0 = vsub.f32 1.5, %v3019_v20 }
 0x798   : > { %v4778_v39 = vpop.eup %4777  ;;  %v3001_v47 = vadd.f32 1e-06, %v2993_v48 }
 0x799   : > { %v3021_v3 = vmul.f32 %v4776_v31, %v3020_v0  ;;  %v3027_v13 = vmul.f32 %v4778_v39, %v3000_v63  ;;  %vm3033_vm1 = vweird.f32 %v4778_v39 }
 0x79a   : > { %4779 = vrsqrt.f32 %v3001_v47  ;;  %vm3034_vm3 = vmor %vm3032_vm2, %vm3033_vm1  ;;  %vm3042_vm5 = vweird.f32 %v3001_v47 }
 0x79b   : > { %v3025_v27 = vsel %vm3024_vm0, %v4776_v31, %v3021_v3  ;;  %v3028_v55 = vmul.f32 %v4778_v39, %v3027_v13 }
 0x79c   : > { %v3087_v26 = vmul.f32 %v3025_v27, %v6925_v21 }
 0x79d   : > { %v3029_v9 = vmul.f32 0.5, %v3028_v55  ;;  %v2983_v49 = vpop.xlane.xlu0 %2982 }
 0x79e   : > { %v3098_v16 = vmul.f32 %v6977_v57, %v3087_v26  ;;  %v2994_v28 = vmul.f32 %v2983_v49, %v5681_v61 }
 0x79f   : > { %v3030_v14 = vsub.f32 1.5, %v3029_v9 }
 0x7a0   : > { %v4780_v30 = vpop.eup %4779  ;;  %v3002_v40 = vadd.f32 1e-06, %v2994_v28  ;;  %v3105_v32 = vpack.c.bf16 %v3098_v16, %v3097_v37 }
 0x7a1   : > { %v3037_v7 = vmul.f32 %v4780_v30, %v3001_v47  ;;  %v3031_v50 = vmul.f32 %v4778_v39, %v3030_v14  ;;  %vm3043_vm4 = vweird.f32 %v4780_v30 }
 0x7a2   : > { %4781 = vrsqrt.f32 %v3002_v40  ;;  %3213 = vmatmul.bf16.vlgmr.msra.gmra.mxu2 %v3105_v32  ;;  %3242 = vmatmul.bf16.vlgmr.msra.gmra.mxu0 %v3105_v32  ;;  %vm3044_vm6 = vmor %vm3042_vm5, %vm3043_vm4  ;;  %vm3052_vm8 = vweird.f32 %v3002_v40 }
 0x7a3   : > { %v3038_v56 = vmul.f32 %v4780_v30, %v3037_v7  ;;  %3367 = vmatmul.bf16.vlgmr.msrb.gmra.mxu1 %v3105_v32  ;;  %3396 = vmatmul.bf16.vlgmr.msra.gmra.mxu3 %v3105_v32  ;;  %v3035_v5 = vsel %vm3034_vm3, %v4778_v39, %v3031_v50 }
 0x7a4   : > { %v3088_v10 = vmul.f32 %v3035_v5, %v6931_v24  ;;  %v4410_v5 = vld [vmem:[#allocation13 + $0x70] sm:$0xff] }
 0x7a5   : > { %v3039_v53 = vmul.f32 0.5, %v3038_v56  ;;  %v2985_v43 = vpop.xlane.xlu1 %2984 }
 0x7a6   : > { %v2995_v2 = vmul.f32 %v2985_v43, %v5681_v61  ;;  %v3099_v33 = vmul.f32 %v6977_v57, %v3088_v10 }
 0x7a7   : > { %v3040_v19 = vsub.f32 1.5, %v3039_v53 }
 0x7a8   : > { %v4782_v35 = vpop.eup %4781  ;;  %v3003_v18 = vadd.f32 1e-06, %v2995_v2  ;;  %v4411_v2 = vld [vmem:[#allocation13 + $0x78] sm:$0xff] }
 0x7a9   : > { %v3041_v4 = vmul.f32 %v4780_v30, %v3040_v19  ;;  %v3047_v1 = vmul.f32 %v4782_v35, %v3002_v40  ;;  %vm3053_vm7 = vweird.f32 %v4782_v35  ;;  %3694 = vmatpush.bf16.msrb.mxu0 %v4411_v2  ;;  %v4403_v19 = vld [vmem:[#allocation13 + $0x38] sm:$0xff] }
 0x7aa   : > { %4783 = vrsqrt.f32 %v3003_v18  ;;  %vm3054_vm9 = vmor %vm3052_vm8, %vm3053_vm7  ;;  %vm3062_vm11 = vweird.f32 %v3003_v18  ;;  %3665 = vmatpush.bf16.msrb.mxu2 %v4403_v19 }
 0x7ab   : > { %v3045_v29 = vsel %vm3044_vm6, %v4780_v30, %v3041_v4  ;;  %v3048_v36 = vmul.f32 %v4782_v35, %v3047_v1  ;;  %v4408_v4 = vld [vmem:[#allocation13 + $0x60] sm:$0xff]  ;;  %v4401_v1 = vld [vmem:[#allocation13 + $0x28] sm:$0xff] }
 0x7ac   : > { %v3089_v45 = vmul.f32 %v3045_v29, %v6937_v6  ;;  %v4407_v29 = vld [vmem:[#allocation13 + $0x58] sm:$0xff] }
 0x7ad   : > { %v3049_v51 = vmul.f32 0.5, %v3048_v36  ;;  %v2987_v34 = vpop.xlane.xlu2 %2986  ;;  %3695 = vmatpush.bf16.msrb.mxu0 %v4410_v5 }
 0x7ae   : > { %v2996_v8 = vmul.f32 %v2987_v34, %v5681_v61  ;;  %v3100_v54 = vmul.f32 %v6977_v57, %v3089_v45  ;;  %v4400_v45 = vld [vmem:[#allocation13 + $0x20] sm:$0xff] }
 0x7af   : > { %v3050_v22 = vsub.f32 1.5, %v3049_v51  ;;  %v4406_v51 = vld [vmem:[#allocation13 + $0x50] sm:$0xff] }
 0x7b0   : > { %v4784_v44 = vpop.eup %4783  ;;  %v3004_v59 = vadd.f32 1e-06, %v2996_v8  ;;  %v3106_v52 = vpack.c.bf16 %v3100_v54, %v3099_v33  ;;  %v4399_v33 = vld [vmem:[#allocation13 + $0x18] sm:$0xff] }
 0x7b1   : > { %v3057_v62 = vmul.f32 %v4784_v44, %v3003_v18  ;;  %v3051_v38 = vmul.f32 %v4782_v35, %v3050_v22  ;;  %vm3063_vm10 = vweird.f32 %v4784_v44  ;;  %v4402_v18 = vld [vmem:[#allocation13 + $0x30] sm:$0xff] }
 0x7b2   : > { %4785 = vrsqrt.f32 %v3004_v59  ;;  %3218 = vmatmul.bf16.gmra.mxu2 %v3106_v52  ;;  %3247 = vmatmul.bf16.gmra.mxu0 %v3106_v52  ;;  %vm3064_vm12 = vmor %vm3062_vm11, %vm3063_vm10  ;;  %vm3072_vm14 = vweird.f32 %v3004_v59 }
 0x7b3   : > { %v3058_v31 = vmul.f32 %v4784_v44, %v3057_v62  ;;  %3372 = vmatmul.bf16.gmra.mxu1 %v3106_v52  ;;  %3401 = vmatmul.bf16.gmra.mxu3 %v3106_v52  ;;  %v3055_v25 = vsel %vm3054_vm9, %v4782_v35, %v3051_v38  ;;  %v4409_v35 = vld [vmem:[#allocation13 + $0x68] sm:$0xff] }
 0x7b4   : > { %v3090_v39 = vmul.f32 %v3055_v25, %v6943_v42  ;;  %3696 = vmatpush.bf16.msrb.mxu0 %v4409_v35  ;;  %3666 = vmatpush.bf16.msrb.mxu2 %v4402_v18  ;;  %v4405_v52 = vld [vmem:[#allocation13 + $0x48] sm:$0xff] }
 0x7b5   : > { %v3059_v63 = vmul.f32 0.5, %v3058_v31  ;;  %v2989_v58 = vpop.xlane.xlu0 %2988  ;;  %v4398_v31 = vld [vmem:[#allocation13 + $0x10] sm:$0xff] }
 0x7b6   : > { %v2997_v41 = vmul.f32 %v2989_v58, %v5681_v61  ;;  %v3101_v27 = vmul.f32 %v6977_v57, %v3090_v39 }
 0x7b7   : > { %v3060_v20 = vsub.f32 1.5, %v3059_v63  ;;  %v4404_v63 = vld [vmem:[#allocation13 + $0x40] sm:$0xff] }
 0x7b8   : > { %v4786_v11 = vpop.eup %4785  ;;  %v3005_v48 = vadd.f32 1e-06, %v2997_v41  ;;  %3697 = vmatpush.bf16.msrb.mxu0 %v4408_v4  ;;  %3667 = vmatpush.bf16.msrb.mxu2 %v4401_v1 }
 0x7b9   : > { %v3061_v46 = vmul.f32 %v4784_v44, %v3060_v20  ;;  %v3067_v0 = vmul.f32 %v4786_v11, %v3004_v59  ;;  %vm3073_vm13 = vweird.f32 %v4786_v11 }
 0x7ba   : > { %4787 = vrsqrt.f32 %v3005_v48  ;;  %vm3074_vm15 = vmor %vm3072_vm14, %vm3073_vm13  ;;  %vm3082_vm1 = vweird.f32 %v3005_v48 }
 0x7bb   : > { %v3065_v47 = vsel %vm3064_vm12, %v4784_v44, %v3061_v46  ;;  %v3068_v3 = vmul.f32 %v4786_v11, %v3067_v0 }
 0x7bc   : > { %v3091_v13 = vmul.f32 %v3065_v47, %v6949_v17  ;;  %3698 = vmatpush.bf16.msrb.mxu0 %v4407_v29  ;;  %3668 = vmatpush.bf16.msrb.mxu2 %v4400_v45 }
 0x7bd   : > { %v3069_v15 = vmul.f32 0.5, %v3068_v3 }
 0x7be   : > { %v3102_v61 = vmul.f32 %v6977_v57, %v3091_v13 }
 0x7bf   : > { %v3070_v55 = vsub.f32 1.5, %v3069_v15  ;;  %v4396_v15 = vld [vmem:[#allocation13] sm:$0xff] }
 0x7c0   : > { %v4788_v26 = vpop.eup %4787  ;;  %v3107_v9 = vpack.c.bf16 %v3102_v61, %v3101_v27  ;;  %3699 = vmatpush.bf16.msrb.mxu0 %v4406_v51  ;;  %3669 = vmatpush.bf16.msrb.mxu2 %v4399_v33 }
 0x7c1   : > { %v3077_v49 = vmul.f32 %v4788_v26, %v3005_v48  ;;  %v3071_v37 = vmul.f32 %v4786_v11, %v3070_v55  ;;  %vm3083_vm0 = vweird.f32 %v4788_v26 }
 0x7c2   : > { %3223 = vmatmul.bf16.gmra.mxu2 %v3107_v9  ;;  %3252 = vmatmul.bf16.gmra.mxu0 %v3107_v9  ;;  %vm3084_vm2 = vmor %vm3082_vm1, %vm3083_vm0 }
 0x7c3   : > { %v3078_v16 = vmul.f32 %v4788_v26, %v3077_v49  ;;  %3377 = vmatmul.bf16.gmra.mxu1 %v3107_v9  ;;  %3406 = vmatmul.bf16.gmra.mxu3 %v3107_v9  ;;  %v3075_v14 = vsel %vm3074_vm15, %v4786_v11, %v3071_v37  ;;  %v4397_v11 = vld [vmem:[#allocation13 + $0x8] sm:$0xff] }
 0x7c4   : > { %v3092_v32 = vmul.f32 %v3075_v14, %v6955_v12  ;;  %3700 = vmatpush.bf16.msrb.mxu0 %v4405_v52  ;;  %3670 = vmatpush.bf16.msrb.mxu2 %v4398_v31 }
 0x7c5   : > { %v3079_v28 = vmul.f32 0.5, %v3078_v16 }
 0x7c6   : > { %v3103_v56 = vmul.f32 %v6977_v57, %v3092_v32 }
 0x7c7   : > { %v3080_v30 = vsub.f32 1.5, %v3079_v28 }
 0x7c8   : > { %3701 = vmatpush.bf16.msrb.mxu0 %v4404_v63  ;;  %3671 = vmatpush.bf16.msrb.mxu2 %v4397_v11 }
 0x7c9   : > { %v3081_v40 = vmul.f32 %v4788_v26, %v3080_v30 }
 0x7cb   : > { %v3085_v7 = vsel %vm3084_vm2, %v4788_v26, %v3081_v40 }
 0x7cc   : > { %v3093_v50 = vmul.f32 %v3085_v7, %v6961_v60  ;;  %3672 = vmatpush.bf16.msrb.mxu2 %v4396_v15 }
 0x7ce   : > { %v3104_v53 = vmul.f32 %v6977_v57, %v3093_v50 }
 0x7d0   : > { %v3108_v43 = vpack.c.bf16 %v3104_v53, %v3103_v56 }
 0x7d2   : > { %3228 = vmatmul.bf16.gmra.mxu2 %v3108_v43  ;;  %3257 = vmatmul.bf16.gmra.mxu0 %v3108_v43 }
 0x7d3   : > { %3382 = vmatmul.bf16.gmra.mxu1 %v3108_v43  ;;  %3411 = vmatmul.bf16.gmra.mxu3 %v3108_v43 }
 0x81f   : > { %v3243_v10 = vpop.f32.mrf.mxu0 }
 0x820   : > { %v3418_v57 = vsub.f32 0.0, %v3243_v10  ;;  %v3368_v41 = vpop.f32.mrf.mxu1 }
 0x822   : > { %v3435_v36 = vmul.f32 1.442695, %v3418_v57 }
 0x824   : > { %4789 = vpow2.f32 %v3435_v36 }
 0x825   : > { %v6999_v34 = vpop.f32.mrf.mxu2 }
 0x826   : > { %v3417_v8 = vsub.f32 0.0, %v6999_v34  ;;  %v3397_v54 = vpop.f32.mrf.mxu3 }
 0x827   : > { %v3245_v22 = vpop.f32.mrf.mxu0 }
 0x828   : > { %v3433_v44 = vmul.f32 1.442695, %v3417_v8  ;;  %v3420_v59 = vsub.f32 0.0, %v3245_v22  ;;  %v3370_v49 = vpop.f32.mrf.mxu1 }
 0x82a   : > { %v4790_v62 = vpop.eup %4789  ;;  %4791 = vpow2.f32 %v3433_v44  ;;  %v3439_v38 = vmul.f32 1.442695, %v3420_v59 }
 0x82b   : > { %v3466_v58 = vadd.f32 1.0, %v4790_v62 }
 0x82c   : > { %4793 = vpow2.f32 %v3439_v38 }
 0x82d   : > { %v3216_v25 = vpop.f32.mrf.mxu2  ;;  %4795 = vrcp.f32 %v3466_v58 }
 0x82e   : > { %v3419_v20 = vsub.f32 0.0, %v3216_v25  ;;  %v3399_v47 = vpop.f32.mrf.mxu3 }
 0x82f   : > { %v7002_v48 = vpop.f32.mrf.mxu0 }
 0x830   : > { %v4792_v46 = vpop.eup %4791  ;;  %v3437_v0 = vmul.f32 1.442695, %v3419_v20  ;;  %v3422_v39 = vsub.f32 0.0, %v7002_v48  ;;  %v3373_v51 = vpop.f32.mrf.mxu1 }
 0x831   : > { %v3465_v27 = vadd.f32 1.0, %v4792_v46 }
 0x832   : > { %v4794_v3 = vpop.eup %4793  ;;  %4797 = vpow2.f32 %v3437_v0  ;;  %v3443_v13 = vmul.f32 1.442695, %v3422_v39 }
 0x833   : > { %v3468_v61 = vadd.f32 1.0, %v4794_v3  ;;  %v4796_v9 = vpop.eup %4795 }
 0x834   : > { %4799 = vpow2.f32 %v3443_v13  ;;  %v3498_v32 = vmul.f32 %v4796_v9, %v3243_v10 }
 0x835   : > { %4801 = vrcp.f32 %v3468_v61  ;;  %v7005_v55 = vpop.f32.mrf.mxu2 }
 0x836   : > { %v3421_v26 = vsub.f32 0.0, %v7005_v55  ;;  %4803 = vrcp.f32 %v3465_v27  ;;  %v3402_v56 = vpop.f32.mrf.mxu3  ;;  %v3514_v19 = vmul.f32 %v3498_v32, %v3397_v54 }
 0x837   : > { %v3250_v37 = vpop.f32.mrf.mxu0 }
 0x838   : > { %v4798_v16 = vpop.eup %4797  ;;  %v3441_v28 = vmul.f32 1.442695, %v3421_v26  ;;  %v3424_v14 = vsub.f32 0.0, %v3250_v37  ;;  %v3375_v3 = vpop.f32.mrf.mxu1 }
 0x839   : > { %v3467_v30 = vadd.f32 1.0, %v4798_v16 }
 0x83a   : > { %v4800_v40 = vpop.eup %4799  ;;  %4805 = vpow2.f32 %v3441_v28  ;;  %v3447_v7 = vmul.f32 1.442695, %v3424_v14 }
 0x83b   : > { %v4802_v50 = vpop.eup %4801  ;;  %4807 = vrcp.f32 %v3467_v30  ;;  %v3470_v2 = vadd.f32 1.0, %v4800_v40 }
 0x83c   : > { %v3500_v53 = vmul.f32 %v4802_v50, %v3245_v22  ;;  %4809 = vpow2.f32 %v3447_v7  ;;  %v4804_v43 = vpop.eup %4803 }
 0x83d   : > { %v3221_v5 = vpop.f32.mrf.mxu2  ;;  %v3497_v57 = vmul.f32 %v4804_v43, %v6999_v34  ;;  %4811 = vrcp.f32 %v3470_v2 }
 0x83e   : > { %v3516_v35 = vmul.f32 %v3500_v53, %v3399_v47  ;;  %v3423_v18 = vsub.f32 0.0, %v3221_v5  ;;  %v3404_v62 = vpop.f32.mrf.mxu3 }
 0x83f   : > { %v7008_v4 = vpop.f32.mrf.mxu0  ;;  %v3513_v59 = vmul.f32 %v3497_v57, %v3368_v41 }
 0x840   : > { %v4806_v1 = vpop.eup %4805  ;;  %v3530_v29 = vpack.c.bf16 %v3516_v35, %v3514_v19  ;;  %v3445_v10 = vmul.f32 1.442695, %v3423_v18  ;;  %v3426_v36 = vsub.f32 0.0, %v7008_v4  ;;  %v3378_v35 = vpop.f32.mrf.mxu1 }
 0x841   : > { %v4808_v45 = vpop.eup %4807  ;;  %v3469_v54 = vadd.f32 1.0, %v4806_v1 }
 0x842   : > { %v4810_v8 = vpop.eup %4809  ;;  %v3499_v33 = vmul.f32 %v4808_v45, %v3216_v25  ;;  %4813 = vpow2.f32 %v3445_v10  ;;  %v3451_v22 = vmul.f32 1.442695, %v3426_v36  ;;  %3702 = vmatmul.bf16.vlgmr.msrb.gmra.mxu0 %v3530_v29 }
 0x843   : > { %v3472_v44 = vadd.f32 1.0, %v4810_v8  ;;  %v4812_v63 = vpop.eup %4811 }
 0x844   : > { %v3515_v52 = vmul.f32 %v3499_v33, %v3370_v49  ;;  %4815 = vpow2.f32 %v3451_v22  ;;  %v3502_v41 = vmul.f32 %v4812_v63, %v7002_v48 }
 0x845   : > { %4817 = vrcp.f32 %v3472_v44  ;;  %v7012_v34 = vpop.f32.mrf.mxu2 }
 0x846   : > { %v3529_v38 = vpack.c.bf16 %v3515_v52, %v3513_v59  ;;  %v3425_v31 = vsub.f32 0.0, %v7012_v34  ;;  %4819 = vrcp.f32 %v3469_v54  ;;  %v3518_v26 = vmul.f32 %v3502_v41, %v3402_v56  ;;  %v3407_v16 = vpop.f32.mrf.mxu3 }
 0x847   : > { %v3255_v58 = vpop.f32.mrf.mxu0 }
 0x848   : > { %v4814_v20 = vpop.eup %4813  ;;  %v3449_v25 = vmul.f32 1.442695, %v3425_v31  ;;  %v3428_v11 = vsub.f32 0.0, %v3255_v58  ;;  %3673 = vmatmul.bf16.vlgmr.msrb.gmra.mxu2 %v3529_v38 }
 0x849   : > { %v3471_v46 = vadd.f32 1.0, %v4814_v20  ;;  %v3380_v20 = vpop.f32.mrf.mxu1 }
 0x84a   : > { %v4816_v0 = vpop.eup %4815  ;;  %4821 = vpow2.f32 %v3449_v25  ;;  %v3455_v39 = vmul.f32 1.442695, %v3428_v11 }
 0x84b   : > { %v4818_v47 = vpop.eup %4817  ;;  %4823 = vrcp.f32 %v3471_v46  ;;  %v3474_v27 = vadd.f32 1.0, %v4816_v0 }
 0x84c   : > { %v3504_v13 = vmul.f32 %v4818_v47, %v3250_v37  ;;  %4825 = vpow2.f32 %v3455_v39  ;;  %v4820_v15 = vpop.eup %4819 }
 0x84d   : > { %v3226_v61 = vpop.f32.mrf.mxu2  ;;  %v3501_v30 = vmul.f32 %v4820_v15, %v7005_v55  ;;  %4827 = vrcp.f32 %v3474_v27 }
 0x84e   : > { %v3520_v9 = vmul.f32 %v3504_v13, %v3404_v62  ;;  %v3427_v49 = vsub.f32 0.0, %v3226_v61  ;;  %v3409_v8 = vpop.f32.mrf.mxu3 }
 0x84f   : > { %v7016_v28 = vpop.f32.mrf.mxu0  ;;  %v3517_v2 = vmul.f32 %v3501_v30, %v3373_v51 }
 0x850   : > { %v4822_v14 = vpop.eup %4821  ;;  %v3532_v48 = vpack.c.bf16 %v3520_v9, %v3518_v26  ;;  %v3453_v40 = vmul.f32 1.442695, %v3427_v49  ;;  %v3430_v32 = vsub.f32 0.0, %v7016_v28 }
 0x851   : > { %v4824_v7 = vpop.eup %4823  ;;  %v3473_v56 = vadd.f32 1.0, %v4822_v14 }
 0x852   : > { %v4826_v37 = vpop.eup %4825  ;;  %v3503_v50 = vmul.f32 %v4824_v7, %v3221_v5  ;;  %4829 = vpow2.f32 %v3453_v40  ;;  %v3459_v53 = vmul.f32 1.442695, %v3430_v32  ;;  %3707 = vmatmul.bf16.gmra.mxu0 %v3532_v48 }
 0x853   : > { %v3476_v43 = vadd.f32 1.0, %v4826_v37  ;;  %v4828_v57 = vpop.eup %4827 }
 0x854   : > { %v3519_v19 = vmul.f32 %v3503_v50, %v3375_v3  ;;  %4831 = vpow2.f32 %v3459_v53  ;;  %v3506_v22 = vmul.f32 %v4828_v57, %v7008_v4 }
 0x855   : > { %4833 = vrcp.f32 %v3476_v43  ;;  %v3229_v18 = vpop.f32.mrf.mxu2 }
 0x856   : > { %v3429_v55 = vsub.f32 0.0, %v3229_v18  ;;  %v3531_v1 = vpack.c.bf16 %v3519_v19, %v3517_v2  ;;  %4835 = vrcp.f32 %v3473_v56  ;;  %v3522_v38 = vmul.f32 %v3506_v22, %v3407_v16  ;;  %v3412_v47 = vpop.f32.mrf.mxu3 }
 0x857   : > { %v3260_v29 = vpop.f32.mrf.mxu0 }
 0x858   : > { %v4830_v10 = vpop.eup %4829  ;;  %v3457_v36 = vmul.f32 1.442695, %v3429_v55  ;;  %v3432_v45 = vsub.f32 0.0, %v3260_v29  ;;  %3678 = vmatmul.bf16.gmra.mxu2 %v3531_v1 }
 0x859   : > { %v3475_v5 = vadd.f32 1.0, %v4830_v10 }
 0x85a   : > { %v4832_v33 = vpop.eup %4831  ;;  %4837 = vpow2.f32 %v3457_v36  ;;  %v3463_v51 = vmul.f32 1.442695, %v3432_v45 }
 0x85b   : > { %v4834_v54 = vpop.eup %4833  ;;  %4839 = vrcp.f32 %v3475_v5  ;;  %v3478_v52 = vadd.f32 1.0, %v4832_v33 }
 0x85c   : > { %v3508_v44 = vmul.f32 %v4834_v54, %v3255_v58  ;;  %4841 = vpow2.f32 %v3463_v51  ;;  %v4836_v59 = vpop.eup %4835 }
 0x85d   : > { %v3231_v62 = vpop.f32.mrf.mxu2  ;;  %v3505_v11 = vmul.f32 %v4836_v59, %v7012_v34  ;;  %4843 = vrcp.f32 %v3478_v52  ;;  %v3383_v34 = vpop.f32.mrf.mxu1 }
 0x85e   : > { %v3524_v31 = vmul.f32 %v3508_v44, %v3409_v8  ;;  %v3431_v63 = vsub.f32 0.0, %v3231_v62  ;;  %v3414_v48 = vpop.f32.mrf.mxu3 }
 0x85f   : > { %v3521_v13 = vmul.f32 %v3505_v11, %v3378_v35 }
 0x860   : > { %v4838_v25 = vpop.eup %4837  ;;  %v3534_v46 = vpack.c.bf16 %v3524_v31, %v3522_v38  ;;  %v3461_v0 = vmul.f32 1.442695, %v3431_v63 }
 0x861   : > { %v4840_v41 = vpop.eup %4839  ;;  %v3477_v58 = vadd.f32 1.0, %v4838_v25 }
 0x862   : > { %v4842_v4 = vpop.eup %4841  ;;  %v3507_v39 = vmul.f32 %v4840_v41, %v3226_v61  ;;  %4845 = vpow2.f32 %v3461_v0  ;;  %3712 = vmatmul.bf16.gmra.mxu0 %v3534_v46 }
 0x863   : > { %v3480_v3 = vadd.f32 1.0, %v4842_v4  ;;  %v4844_v26 = vpop.eup %4843 }
 0x864   : > { %v3523_v15 = vmul.f32 %v3507_v39, %v3380_v20  ;;  %v3510_v16 = vmul.f32 %v4844_v26, %v7016_v28 }
 0x865   : > { %4847 = vrcp.f32 %v3480_v3  ;;  %v3385_v56 = vpop.f32.mrf.mxu1 }
 0x866   : > { %v3533_v27 = vpack.c.bf16 %v3523_v15, %v3521_v13  ;;  %4849 = vrcp.f32 %v3477_v58  ;;  %v3526_v40 = vmul.f32 %v3510_v16, %v3412_v47 }
 0x868   : > { %v4846_v9 = vpop.eup %4845  ;;  %3683 = vmatmul.bf16.gmra.mxu2 %v3533_v27 }
 0x869   : > { %v3479_v49 = vadd.f32 1.0, %v4846_v9 }
 0x86b   : > { %v4848_v14 = vpop.eup %4847  ;;  %4851 = vrcp.f32 %v3479_v49 }
 0x86c   : > { %v3512_v61 = vmul.f32 %v4848_v14, %v3260_v29  ;;  %v4850_v30 = vpop.eup %4849 }
 0x86d   : > { %v3509_v7 = vmul.f32 %v4850_v30, %v3229_v18 }
 0x86e   : > { %v3528_v32 = vmul.f32 %v3512_v61, %v3414_v48 }
 0x86f   : > { %v3525_v43 = vmul.f32 %v3509_v7, %v3383_v34 }
 0x870   : > { %v3536_v37 = vpack.c.bf16 %v3528_v32, %v3526_v40 }
 0x871   : > { %v4852_v50 = vpop.eup %4851 }
 0x872   : > { %v3511_v53 = vmul.f32 %v4852_v50, %v3231_v62  ;;  %3717 = vmatmul.bf16.gmra.mxu0 %v3536_v37 }
 0x874   : > { %v3527_v2 = vmul.f32 %v3511_v53, %v3385_v56 }
 0x876   : > { %v3535_v19 = vpack.c.bf16 %v3527_v2, %v3525_v43 }
 0x878   : > { %3688 = vmatmul.bf16.gmra.mxu2 %v3535_v19 }
 0x8bf   : > { %v3703_v28 = vpop.f32.mrf.mxu0 }
 0x8c7   : > { %v3705_v35 = vpop.f32.mrf.mxu0 }
 0x8cb   : > { %v3674_v55 = vpop.f32.mrf.mxu2 }
 0x8cc   : > { %v3704_v1 = vadd.f32 %v3703_v28, %v3674_v55 }
 0x8ce   : > { %v3723_v57 = vadd.f32 %v3704_v1, %v6919_v23 }
 0x8cf   : > { %v3708_v18 = vpop.f32.mrf.mxu0 }
 0x8d0   : > { %3731 = vst [vmem:[%s7027_s14] sm:$0xff] %v3723_v57 }
 0x8d3   : > { %v3676_v29 = vpop.f32.mrf.mxu2 }
 0x8d4   : > { %v3706_v10 = vadd.f32 %v3705_v35, %v3676_v29 }
 0x8d6   : > { %v3724_v36 = vadd.f32 %v3706_v10, %v6925_v21 }
 0x8d7   : > { %v3710_v45 = vpop.f32.mrf.mxu0 }
 0x8d8   : > { %3732 = vst [vmem:[%s7027_s14 + $0x8] sm:$0xff] %v3724_v36 }
 0x8db   : > { %v3679_v5 = vpop.f32.mrf.mxu2 }
 0x8dc   : > { %v3709_v8 = vadd.f32 %v3708_v18, %v3679_v5 }
 0x8de   : > { %v3725_v23 = vadd.f32 %v3709_v8, %v6931_v24 }
 0x8df   : > { %v3713_v51 = vpop.f32.mrf.mxu0 }
 0x8e0   : > { %3733 = vst [vmem:[%s7027_s14 + $0x10] sm:$0xff] %v3725_v23 }
 0x8e3   : > { %v3681_v33 = vpop.f32.mrf.mxu2 }
 0x8e4   : > { %v3711_v22 = vadd.f32 %v3710_v45, %v3681_v33 }
 0x8e6   : > { %v3726_v54 = vadd.f32 %v3711_v22, %v6937_v6 }
 0x8e7   : > { %v3715_v52 = vpop.f32.mrf.mxu0 }
 0x8e8   : > { %3734 = vst [vmem:[%s7027_s14 + $0x18] sm:$0xff] %v3726_v54 }
 0x8eb   : > { %v3684_v44 = vpop.f32.mrf.mxu2 }
 0x8ec   : > { %v3714_v59 = vadd.f32 %v3713_v51, %v3684_v44 }
 0x8ee   : > { %v3727_v21 = vadd.f32 %v3714_v59, %v6943_v42 }
 0x8ef   : > { %v3718_v31 = vpop.f32.mrf.mxu0 }
 0x8f0   : > { %3735 = vst [vmem:[%s7027_s14 + $0x20] sm:$0xff] %v3727_v21 }
 0x8f3   : > { %v3686_v62 = vpop.f32.mrf.mxu2 }
 0x8f4   : > { %v3716_v38 = vadd.f32 %v3715_v52, %v3686_v62 }
 0x8f6   : > { %v3728_v24 = vadd.f32 %v3716_v38, %v6949_v17 }
 0x8f7   : > { %v3720_v42 = vpop.f32.mrf.mxu0 }
 0x8f8   : > { %3736 = vst [vmem:[%s7027_s14 + $0x28] sm:$0xff] %v3728_v24 }
 0x8fb   : > { %v3689_v6 = vpop.f32.mrf.mxu2 }
 0x8fc   : > { %v3719_v63 = vadd.f32 %v3718_v31, %v3689_v6 }
 0x8fe   : > { %v3729_v20 = vadd.f32 %v3719_v63, %v6955_v12 }
 0x900   : > { %3737 = vst [vmem:[%s7027_s14 + $0x30] sm:$0xff] %v3729_v20 }
 0x903   : > { %v3691_v17 = vpop.f32.mrf.mxu2 }
 0x904   : > { %v3721_v25 = vadd.f32 %v3720_v42, %v3691_v17 }
 0x906   : > { %v3730_v11 = vadd.f32 %v3721_v25, %v6961_v60 }
 0x908   : > { %3738 = vst [vmem:[%s7027_s14 + $0x38] sm:$0xff] %v3730_v11 }
 0x909   : > { %5098 = shalt.err (!%p5095_p5)
}
 0x90a   : > { %s5224_s12 = smov 128   ;;  %s5225_s14 = smov 8  }
 0x90b   : > { %4446 = dma.vmem_to_hbm [thread:$0]  (%p5475_p8), %s3755_s19, 1024, %s3757_s23, %s3740_s26, %s5224_s12, %s5224_s12, %s5225_s14  }
 0x90c PF: > { %p4486_p6 = scmp.ge.s32.totalorder %s5209_s3, 2  ;;  %s3771_s13 = sand.u32 1, %s5169_s0  }
 0x90d   : > { %s3772_s15 = scalar_lea.sflag [#allocation4], %s3771_s13 }
 0x90e   : > { %p4472_p7 = pnand %p4486_p6, %p5479_p9 }
 0x910   : > { %p4473_p10 = pneg %p4472_p7 }
 0x912   : > { %5164 = dma.done.wait (%p4473_p10), %s3772_s15, 1024  }
 0x913   : > { %5166 = vsyncadd (%p4473_p10), %s3772_s15, 4294966272  ;;  %s40_s3 = sadd.s32 1, %s5209_s3   ;;  %s7227_s11 = sld [smem:[#allocation21_spill]] }
 0x914   : > { %p37_p2 = scmp.ge.s32.totalorder %s40_s3, 6   ;;  %s7228_s22 = sld [smem:[#allocation27_spill]] }
 0x915   : > { %s7229_s2 = sld [smem:[#allocation23_spill]]  ;;  %s7233_s0 = smov %s5173_s30 }
 0x916   : > { %s7230_s23 = sld [smem:[#allocation24_spill]]  ;;  %s7234_s30 = smov %s5177_s20 }
 0x917   : > { %s7231_s24 = sld [smem:[#allocation25_spill]]  ;;  %s7235_s20 = smov %s5471_s21 }
 0x918   : > { %s7232_s25 = sld [smem:[#allocation26_spill]]  ;;  %s7236_s21 = smov %s5185_s1 }
 0x919   : > { %s7237_s1 = smov %s7227_s11  ;;  %39 = sbr.rel (!%p37_p2) target bundleno = 34 (0x22), region = 178 }
 0x91e   :  { %3778 = vsyncpa [#allocation3], 1 }
 0x91f   :  { %3780 = vsyncpa [#allocation3 + $0x1], 1 }
 0x920   :  { %3781 = vsyncpa [#allocation6], 1 }
 0x921   :  { %3783 = vsyncpa [#allocation6 + $0x1], 1 }
 0x922   :  { %3784 = vsyncpa [#allocation9], 1 }
 0x923   :  { %3785 = vsyncpa [#allocation12], 1 }
 0x924   :  { %3786 = vsyncpa [#allocation4], 1 }
 0x925   :  { %3788 = vsyncpa [#allocation4 + $0x1], 1 }

</bundles_post_ra>
